<compile_context>
chip_gen: v5e
topology: v5e:2x2
jax: 0.10.0
libtpu: 0.0.40
codegen_flags: <defaults>
</compile_context>

<pallas_src>
import functools

import jax
import jax.numpy as jnp
import numpy as np
from jax.experimental import pallas as pl
from jax.experimental.pallas import tpu as pltpu

W_BIT = 4
PACK_NUM = 32 // W_BIT                        # 8
PACK_ORDER = (0, 2, 4, 6, 1, 3, 5, 7)         # AWQ layout
INV_ORDER = tuple(PACK_ORDER.index(j) for j in range(PACK_NUM))


# --------------------------------- Pallas kernel ---------------------------------

def _awq_gemm_kernel(x_ref, qw_ref, s_ref, z_ref, b_ref, o_ref, wcat_ref, *,
                     group_size, groups_per_step):
    """One (TM, TN) output tile, accumulated over the K (quant-group) grid axis.

    x_ref   : [TM, TK]          bfloat16  activations (TK = groups_per_step * G)
    qw_ref  : [TK//8, TN]       int32     K-packed 4-bit weights (kernel layout)
    s_ref   : [gps, 1, TN]      float32   per-group scales
    z_ref   : [gps, 1, TN]      float32   per-group zero points
    b_ref   : [1, TN]           float32   bias row
    o_ref   : [TM, TN]          float32   output tile == accumulator (resident over k)
    wcat_ref: [G, TN]           bfloat16  VMEM scratch holding one dequantized group
    """
    k = pl.program_id(2)

    @pl.when(k == 0)
    def _init():
        # Bias folded into the accumulator init; no finalize copy needed.
        o_ref[...] = jnp.broadcast_to(b_ref[...], o_ref.shape)

    G = group_size
    sub = G // PACK_NUM                                   # K rows per nibble slab

    for g in range(groups_per_step):
        xg = x_ref[:, g * G:(g + 1) * G]                  # [TM, G] bf16 (128-aligned lanes)

        # Load the packed slab ONCE per group (hoisted out of the nibble loop), then unpack
        # the 8 nibble slabs straight into the [G, TN] bf16 scratch at their natural K
        # offsets.  Aligned sublane windows (multiples of G/8), lane-dense over TN; the
        # immediate store bounds vreg live ranges (no large concat held in vregs).
        qwg = qw_ref[g * sub:(g + 1) * sub, :]            # [G/8, TN] int32
        for i in range(PACK_NUM):
            w_i = (qwg if i == 0 else (qwg >> (i * W_BIT))) & 0xF     # ints 0..15
            wcat_ref[i * sub:(i + 1) * sub, :] = (
                w_i.astype(jnp.float32).astype(jnp.bfloat16))

        # One wide MXU matmul per group on the raw integer weights (exact in bf16),
        # f32 accumulation.
        p = jnp.dot(xg, wcat_ref[...],
                    preferred_element_type=jnp.float32)   # [TM, TN] f32

        # Fold zero point & scale per output column:
        #     sum_k x*(w - z)*s = s * (x @ w - rowsum(x) * z)
        # (rowsum is an XLU reduction -> different issue slot than the dequant VALU work)
        rowsum = jnp.sum(xg.astype(jnp.float32), axis=1, keepdims=True)  # [TM, 1]
        o_ref[...] += (p - rowsum * z_ref[g]) * s_ref[g]


# ------------------------- load-time repack (one-time, not hot path) -------------------------

def _unpack_awq(packed):
    """AWQ-packed int32 [R, C//8] -> int values [R, C] in natural channel order."""
    R, CP = packed.shape
    shifts = jnp.array([W_BIT * INV_ORDER[j] for j in range(PACK_NUM)], dtype=jnp.int32)
    vals = (packed[:, :, None] >> shifts[None, None, :]) & 0xF
    return vals.reshape(R, CP * PACK_NUM)


def _repack_k_nibbles(w_int, group_size):
    """int values [K, N] -> kernel-layout packed int32 [K//8, N].

    nibble i of packed row (g*(G//8) + r) holds W[g*G + i*(G//8) + r, :].
    """
    K, N = w_int.shape
    sub = group_size // PACK_NUM
    v = w_int.reshape(K // group_size, PACK_NUM, sub, N).astype(jnp.int32)
    packed = jnp.zeros((K // group_size, sub, N), dtype=jnp.int32)
    for i in range(PACK_NUM):
        packed = packed | ((v[:, i] & 0xF) << (i * W_BIT))
    return packed.reshape(K // PACK_NUM, N)


def repack_awq_params(qweight, qzeros, scales, bias, *, group_size):
    """One-time (load-time) conversion of the module's AWQ buffers into the kernel layout."""
    K, NP = qweight.shape
    N = NP * PACK_NUM
    G = group_size if group_size != -1 else K
    assert K % G == 0, "group_size must divide in_features"
    assert G % 128 == 0, "kernel requires group_size to be a multiple of 128"

    w_int = _unpack_awq(qweight)                                     # [K, N]
    qw_rep = _repack_k_nibbles(w_int, G)                             # [K//8, N]
    z_f32 = _unpack_awq(qzeros).astype(jnp.float32).reshape(K // G, 1, N)
    s_f32 = scales.astype(jnp.float32).reshape(K // G, 1, N)
    if bias is None:
        b_row = jnp.zeros((1, N), jnp.float32)
    else:
        b_row = bias.astype(jnp.float32).reshape(1, N)
    return qw_rep, s_f32, z_f32, b_row


# ------------------------------------ hot path ------------------------------------

def _pick_tile(total, candidates):
    for t in candidates:
        if total % t == 0:
            return t
    return total  # full dim (always legal as a block size)


@functools.partial(jax.jit, static_argnames=("group_size",))
def weight_only_qlinear(x, qw_rep, scales_f32, zeros_f32, bias_row, *, group_size):
    """Forward of WeightOnlyQLinear (asymmetric 4-bit AWQ) using repacked params."""
    *lead, K = x.shape
    N = qw_rep.shape[-1]
    G = group_size if group_size != -1 else K
    n_groups = K // G

    M = int(np.prod(lead)) if lead else 1
    # Reference does x.half(); feed the MXU bf16 (halves activation DMA / VMEM).
    x2 = x.reshape(M, K).astype(jnp.bfloat16)

    # ---- tiling ----
    TM = _pick_tile(M, (256, 128, 64, 32, 16))
    TN = N
    for t in (1024, 512, 256, 128):                 # lane-dense output; >=2 N tiles if possible
        if N % t == 0 and N // t >= 2:
            TN = t
            break
    gps = 1                                         # quant groups per grid step (TK <= ~1024)
    for cand in (8, 4, 2):
        if n_groups % cand == 0 and cand * G <= 1024:
            gps = cand
            break
    TK = gps * G

    grid = (M // TM, N // TN, n_groups // gps)

    kernel = functools.partial(_awq_gemm_kernel, group_size=G, groups_per_step=gps)

    out = pl.pallas_call(
        kernel,
        out_shape=jax.ShapeDtypeStruct((M, N), jnp.float32),
        grid_spec=pltpu.PrefetchScalarGridSpec(
            num_scalar_prefetch=0,
            grid=grid,
            in_specs=[
                pl.BlockSpec((TM, TK), lambda i, j, k: (i, k)),              # activations
                # NOTE: if the weight DMA is ever exposed, pipeline_mode=pl.Buffered(3) here.
                pl.BlockSpec((TK // PACK_NUM, TN), lambda i, j, k: (k, j)),  # packed weights
                pl.BlockSpec((gps, 1, TN), lambda i, j, k: (k, 0, j)),       # scales
                pl.BlockSpec((gps, 1, TN), lambda i, j, k: (k, 0, j)),       # zero points
                pl.BlockSpec((1, TN), lambda i, j, k: (0, j)),               # bias
            ],
            out_specs=pl.BlockSpec((TM, TN), lambda i, j, k: (i, j)),
            scratch_shapes=[pltpu.VMEM((G, TN), jnp.bfloat16)],              # dequant group
        ),
        compiler_params=pltpu.CompilerParams(
            dimension_semantics=("parallel", "parallel", "arbitrary")),
    )(x2, qw_rep, scales_f32, zeros_f32, bias_row)

    return out.reshape(*lead, N)


# ------------------------- synthetic parameter construction & reference -------------------------

def pack_awq(int_vals):
    """Pack 4-bit values [R, C] -> int32 [R, C//8] with the module's AWQ pack order."""
    R, C = int_vals.shape
    cols = int_vals.reshape(R, C // PACK_NUM, PACK_NUM).astype(jnp.int32)
    packed = jnp.zeros((R, C // PACK_NUM), dtype=jnp.int32)
    for i in range(PACK_NUM):
        packed = packed | (cols[:, :, PACK_ORDER[i]] << (i * W_BIT))
    return packed


def reference_forward(x, int_w, zeros, scales, bias, group_size):
    """Pure-JAX reference: dequantize (f32) and matmul with the f16-cast input."""
    *lead, K = x.shape
    N = int_w.shape[1]
    x2 = x.reshape(-1, K).astype(jnp.float16).astype(jnp.float32)
    g_idx = np.arange(K) // group_size
    w_deq = (int_w.astype(jnp.float32) - zeros[g_idx].astype(jnp.float32)) * \
        scales[g_idx].astype(jnp.float32)
    out = x2 @ w_deq + bias.astype(jnp.float32)
    return out.reshape(*lead, N)


if __name__ == "__main__":
    in_features, out_features, group_size = 1024, 256, 128
    batch, seq = 2, 16

    key = jax.random.PRNGKey(0)
    kx, kw, kz, ks, kb = jax.random.split(key, 5)

    x = jax.random.normal(kx, (batch, seq, in_features), dtype=jnp.float32)

    # 4-bit quantized weights / zero points (unpacked, then AWQ-packed as in from_linear).
    int_w = jax.random.randint(kw, (in_features, out_features), 0, 16, dtype=jnp.int32)
    zeros = jax.random.randint(kz, (in_features // group_size, out_features), 0, 16,
                               dtype=jnp.int32)
    scales = (jax.random.uniform(ks, (in_features // group_size, out_features),
                                 minval=0.005, maxval=0.02)
              .astype(jnp.float16))                  # stored as fp16, as in the module
    bias = jax.random.normal(kb, (out_features,), dtype=jnp.float32)

    qweight = pack_awq(int_w)                        # [K, N//8] int32  (module layout)
    qzeros = pack_awq(zeros)                         # [K//G, N//8] int32

    # One-time, load-time repack into the kernel's layout (not in the hot path).
    qw_rep, s_f32, z_f32, b_row = repack_awq_params(
        qweight, qzeros, scales, bias, group_size=group_size)

    out = weight_only_qlinear(x, qw_rep, s_f32, z_f32, b_row, group_size=group_size)
    out = jax.block_until_ready(out)

    ref = reference_forward(x, int_w, zeros, scales, bias, group_size)
    assert out.shape == (batch, seq, out_features), out.shape
    np.testing.assert_allclose(np.asarray(out), np.asarray(ref), rtol=2e-2, atol=5e-2)

    print("KERNEL_OK")
</pallas_src>

<mosaic_0001>
module attributes {stable_mosaic.version = 11 : i64} {
  func.func @_awq_gemm_kernel(%arg0: i32, %arg1: i32, %arg2: i32, %arg3: memref<32x1024xbf16, #tpu.memory_space<vmem>>, %arg4: memref<128x128xi32, #tpu.memory_space<vmem>>, %arg5: memref<8x1x128xf32, #tpu.memory_space<vmem>>, %arg6: memref<8x1x128xf32, #tpu.memory_space<vmem>>, %arg7: memref<1x128xf32, #tpu.memory_space<vmem>>, %arg8: memref<32x128xf32, #tpu.memory_space<vmem>>, %arg9: memref<128x128xbf16, #tpu.memory_space<vmem>>) attributes {dimension_semantics = [#tpu.dimension_semantics<parallel>, #tpu.dimension_semantics<parallel>, #tpu.dimension_semantics<arbitrary>], iteration_bounds = array<i64: 1, 2, 1>, scalar_prefetch = 0 : i64, scratch_operands = 1 : i64, tpu.core_type = #tpu.core_type<tc>, window_params = [{transform_indices = @transform_0, window_bounds = array<i64: 32, 1024>}, {transform_indices = @transform_1, window_bounds = array<i64: 128, 128>}, {transform_indices = @transform_2, window_bounds = array<i64: 8, 1, 128>}, {transform_indices = @transform_3, window_bounds = array<i64: 8, 1, 128>}, {transform_indices = @transform_4, window_bounds = array<i64: 1, 128>}, {transform_indices = @transform_5, window_bounds = array<i64: 32, 128>}]} {
    %c0_i32 = arith.constant 0 : i32
    %0 = arith.cmpi eq, %arg2, %c0_i32 : i32
    %1 = arith.extui %0 : i1 to i32
    %c0_i32_0 = arith.constant 0 : i32
    %2 = arith.cmpi ne, %1, %c0_i32_0 : i32
    scf.if %2 {
      %c0_362 = arith.constant 0 : index
      %c0_363 = arith.constant 0 : index
      %595 = vector.load %arg7[%c0_362, %c0_363] : memref<1x128xf32, #tpu.memory_space<vmem>>, vector<1x128xf32>
      %596 = vector.shape_cast %595 : vector<1x128xf32> to vector<1x128xf32>
      %597 = vector.broadcast %596 : vector<1x128xf32> to vector<32x128xf32>
      %c0_364 = arith.constant 0 : index
      %c0_365 = arith.constant 0 : index
      %598 = vector.load %arg8[%c0_364, %c0_365] : memref<32x128xf32, #tpu.memory_space<vmem>>, vector<32x128xf32>
      tpu.vector_store %arg8[%c0_364, %c0_365], %597 {strides = array<i32>} : memref<32x128xf32, #tpu.memory_space<vmem>>, vector<32x128xf32>,
    } else {
    }
    %c0 = arith.constant 0 : index
    %c0_1 = arith.constant 0 : index
    %3 = vector.load %arg3[%c0, %c0_1] : memref<32x1024xbf16, #tpu.memory_space<vmem>>, vector<32x128xbf16>
    %c0_2 = arith.constant 0 : index
    %c0_3 = arith.constant 0 : index
    %4 = vector.load %arg4[%c0_2, %c0_3] : memref<128x128xi32, #tpu.memory_space<vmem>>, vector<16x128xi32>
    %c15_i32 = arith.constant 15 : i32
    %5 = vector.broadcast %c15_i32 : i32 to vector<16x128xi32>
    %6 = arith.andi %4, %5 : vector<16x128xi32>
    %7 = arith.sitofp %6 : vector<16x128xi32> to vector<16x128xf32>
    %8 = arith.truncf %7 : vector<16x128xf32> to vector<16x128xbf16>
    %c0_4 = arith.constant 0 : index
    %c0_5 = arith.constant 0 : index
    %9 = vector.load %arg9[%c0_4, %c0_5] : memref<128x128xbf16, #tpu.memory_space<vmem>>, vector<16x128xbf16>
    tpu.vector_store %arg9[%c0_4, %c0_5], %8 {strides = array<i32>} : memref<128x128xbf16, #tpu.memory_space<vmem>>, vector<16x128xbf16>,
    %c4_i32 = arith.constant 4 : i32
    %10 = vector.broadcast %c4_i32 : i32 to vector<16x128xi32>
    %11 = arith.shrsi %4, %10 : vector<16x128xi32>
    %c15_i32_6 = arith.constant 15 : i32
    %12 = vector.broadcast %c15_i32_6 : i32 to vector<16x128xi32>
    %13 = arith.andi %11, %12 : vector<16x128xi32>
    %14 = arith.sitofp %13 : vector<16x128xi32> to vector<16x128xf32>
    %15 = arith.truncf %14 : vector<16x128xf32> to vector<16x128xbf16>
    %c16 = arith.constant 16 : index
    %c0_7 = arith.constant 0 : index
    %16 = vector.load %arg9[%c16, %c0_7] : memref<128x128xbf16, #tpu.memory_space<vmem>>, vector<16x128xbf16>
    tpu.vector_store %arg9[%c16, %c0_7], %15 {strides = array<i32>} : memref<128x128xbf16, #tpu.memory_space<vmem>>, vector<16x128xbf16>,
    %c8_i32 = arith.constant 8 : i32
    %17 = vector.broadcast %c8_i32 : i32 to vector<16x128xi32>
    %18 = arith.shrsi %4, %17 : vector<16x128xi32>
    %c15_i32_8 = arith.constant 15 : i32
    %19 = vector.broadcast %c15_i32_8 : i32 to vector<16x128xi32>
    %20 = arith.andi %18, %19 : vector<16x128xi32>
    %21 = arith.sitofp %20 : vector<16x128xi32> to vector<16x128xf32>
    %22 = arith.truncf %21 : vector<16x128xf32> to vector<16x128xbf16>
    %c32 = arith.constant 32 : index
    %c0_9 = arith.constant 0 : index
    %23 = vector.load %arg9[%c32, %c0_9] : memref<128x128xbf16, #tpu.memory_space<vmem>>, vector<16x128xbf16>
    tpu.vector_store %arg9[%c32, %c0_9], %22 {strides = array<i32>} : memref<128x128xbf16, #tpu.memory_space<vmem>>, vector<16x128xbf16>,
    %c12_i32 = arith.constant 12 : i32
    %24 = vector.broadcast %c12_i32 : i32 to vector<16x128xi32>
    %25 = arith.shrsi %4, %24 : vector<16x128xi32>
    %c15_i32_10 = arith.constant 15 : i32
    %26 = vector.broadcast %c15_i32_10 : i32 to vector<16x128xi32>
    %27 = arith.andi %25, %26 : vector<16x128xi32>
    %28 = arith.sitofp %27 : vector<16x128xi32> to vector<16x128xf32>
    %29 = arith.truncf %28 : vector<16x128xf32> to vector<16x128xbf16>
    %c48 = arith.constant 48 : index
    %c0_11 = arith.constant 0 : index
    %30 = vector.load %arg9[%c48, %c0_11] : memref<128x128xbf16, #tpu.memory_space<vmem>>, vector<16x128xbf16>
    tpu.vector_store %arg9[%c48, %c0_11], %29 {strides = array<i32>} : memref<128x128xbf16, #tpu.memory_space<vmem>>, vector<16x128xbf16>,
    %c16_i32 = arith.constant 16 : i32
    %31 = vector.broadcast %c16_i32 : i32 to vector<16x128xi32>
    %32 = arith.shrsi %4, %31 : vector<16x128xi32>
    %c15_i32_12 = arith.constant 15 : i32
    %33 = vector.broadcast %c15_i32_12 : i32 to vector<16x128xi32>
    %34 = arith.andi %32, %33 : vector<16x128xi32>
    %35 = arith.sitofp %34 : vector<16x128xi32> to vector<16x128xf32>
    %36 = arith.truncf %35 : vector<16x128xf32> to vector<16x128xbf16>
    %c64 = arith.constant 64 : index
    %c0_13 = arith.constant 0 : index
    %37 = vector.load %arg9[%c64, %c0_13] : memref<128x128xbf16, #tpu.memory_space<vmem>>, vector<16x128xbf16>
    tpu.vector_store %arg9[%c64, %c0_13], %36 {strides = array<i32>} : memref<128x128xbf16, #tpu.memory_space<vmem>>, vector<16x128xbf16>,
    %c20_i32 = arith.constant 20 : i32
    %38 = vector.broadcast %c20_i32 : i32 to vector<16x128xi32>
    %39 = arith.shrsi %4, %38 : vector<16x128xi32>
    %c15_i32_14 = arith.constant 15 : i32
    %40 = vector.broadcast %c15_i32_14 : i32 to vector<16x128xi32>
    %41 = arith.andi %39, %40 : vector<16x128xi32>
    %42 = arith.sitofp %41 : vector<16x128xi32> to vector<16x128xf32>
    %43 = arith.truncf %42 : vector<16x128xf32> to vector<16x128xbf16>
    %c80 = arith.constant 80 : index
    %c0_15 = arith.constant 0 : index
    %44 = vector.load %arg9[%c80, %c0_15] : memref<128x128xbf16, #tpu.memory_space<vmem>>, vector<16x128xbf16>
    tpu.vector_store %arg9[%c80, %c0_15], %43 {strides = array<i32>} : memref<128x128xbf16, #tpu.memory_space<vmem>>, vector<16x128xbf16>,
    %c24_i32 = arith.constant 24 : i32
    %45 = vector.broadcast %c24_i32 : i32 to vector<16x128xi32>
    %46 = arith.shrsi %4, %45 : vector<16x128xi32>
    %c15_i32_16 = arith.constant 15 : i32
    %47 = vector.broadcast %c15_i32_16 : i32 to vector<16x128xi32>
    %48 = arith.andi %46, %47 : vector<16x128xi32>
    %49 = arith.sitofp %48 : vector<16x128xi32> to vector<16x128xf32>
    %50 = arith.truncf %49 : vector<16x128xf32> to vector<16x128xbf16>
    %c96 = arith.constant 96 : index
    %c0_17 = arith.constant 0 : index
    %51 = vector.load %arg9[%c96, %c0_17] : memref<128x128xbf16, #tpu.memory_space<vmem>>, vector<16x128xbf16>
    tpu.vector_store %arg9[%c96, %c0_17], %50 {strides = array<i32>} : memref<128x128xbf16, #tpu.memory_space<vmem>>, vector<16x128xbf16>,
    %c28_i32 = arith.constant 28 : i32
    %52 = vector.broadcast %c28_i32 : i32 to vector<16x128xi32>
    %53 = arith.shrsi %4, %52 : vector<16x128xi32>
    %c15_i32_18 = arith.constant 15 : i32
    %54 = vector.broadcast %c15_i32_18 : i32 to vector<16x128xi32>
    %55 = arith.andi %53, %54 : vector<16x128xi32>
    %56 = arith.sitofp %55 : vector<16x128xi32> to vector<16x128xf32>
    %57 = arith.truncf %56 : vector<16x128xf32> to vector<16x128xbf16>
    %c112 = arith.constant 112 : index
    %c0_19 = arith.constant 0 : index
    %58 = vector.load %arg9[%c112, %c0_19] : memref<128x128xbf16, #tpu.memory_space<vmem>>, vector<16x128xbf16>
    tpu.vector_store %arg9[%c112, %c0_19], %57 {strides = array<i32>} : memref<128x128xbf16, #tpu.memory_space<vmem>>, vector<16x128xbf16>,
    %c0_20 = arith.constant 0 : index
    %c0_21 = arith.constant 0 : index
    %59 = vector.load %arg9[%c0_20, %c0_21] : memref<128x128xbf16, #tpu.memory_space<vmem>>, vector<128x128xbf16>
    %cst = arith.constant dense<0.000000e+00> : vector<32x128xf32>
    %60 = tpu.matmul %3, %59, %cst {dimension_numbers = #tpu.dot_dimension_numbers<[1], [0], [0], [1], [0, 0, 1, 1], [], []>} : vector<32x128xbf16>, vector<128x128xbf16>, vector<32x128xf32> -> vector<32x128xf32>
    %61 = arith.extf %3 : vector<32x128xbf16> to vector<32x128xf32>
    %cst_22 = arith.constant dense<0.000000e+00> : vector<32xf32>
    %62 = vector.multi_reduction <add>, %61, %cst_22 [1] : vector<32x128xf32> to vector<32xf32>
    %63 = vector.shape_cast %62 : vector<32xf32> to vector<32x1xf32>
    %c0_23 = arith.constant 0 : index
    %c0_24 = arith.constant 0 : index
    %64 = vector.load %arg8[%c0_23, %c0_24] : memref<32x128xf32, #tpu.memory_space<vmem>>, vector<32x128xf32>
    %c0_25 = arith.constant 0 : index
    %c0_26 = arith.constant 0 : index
    %c0_27 = arith.constant 0 : index
    %65 = vector.load %arg6[%c0_25, %c0_26, %c0_27] : memref<8x1x128xf32, #tpu.memory_space<vmem>>, vector<1x1x128xf32>
    %66 = vector.shape_cast %65 : vector<1x1x128xf32> to vector<1x128xf32>
    %67 = vector.broadcast %63 : vector<32x1xf32> to vector<32x128xf32>
    %68 = vector.broadcast %66 : vector<1x128xf32> to vector<32x128xf32>
    %69 = arith.mulf %67, %68 : vector<32x128xf32>
    %70 = arith.subf %60, %69 : vector<32x128xf32>
    %c0_28 = arith.constant 0 : index
    %c0_29 = arith.constant 0 : index
    %c0_30 = arith.constant 0 : index
    %71 = vector.load %arg5[%c0_28, %c0_29, %c0_30] : memref<8x1x128xf32, #tpu.memory_space<vmem>>, vector<1x1x128xf32>
    %72 = vector.shape_cast %71 : vector<1x1x128xf32> to vector<1x128xf32>
    %73 = vector.broadcast %72 : vector<1x128xf32> to vector<32x128xf32>
    %74 = arith.mulf %70, %73 : vector<32x128xf32>
    %75 = arith.addf %64, %74 : vector<32x128xf32>
    %c0_31 = arith.constant 0 : index
    %c0_32 = arith.constant 0 : index
    %76 = vector.load %arg8[%c0_31, %c0_32] : memref<32x128xf32, #tpu.memory_space<vmem>>, vector<32x128xf32>
    tpu.vector_store %arg8[%c0_31, %c0_32], %75 {strides = array<i32>} : memref<32x128xf32, #tpu.memory_space<vmem>>, vector<32x128xf32>,
    %c0_33 = arith.constant 0 : index
    %c128 = arith.constant 128 : index
    %77 = vector.load %arg3[%c0_33, %c128] : memref<32x1024xbf16, #tpu.memory_space<vmem>>, vector<32x128xbf16>
    %c16_34 = arith.constant 16 : index
    %c0_35 = arith.constant 0 : index
    %78 = vector.load %arg4[%c16_34, %c0_35] : memref<128x128xi32, #tpu.memory_space<vmem>>, vector<16x128xi32>
    %c15_i32_36 = arith.constant 15 : i32
    %79 = vector.broadcast %c15_i32_36 : i32 to vector<16x128xi32>
    %80 = arith.andi %78, %79 : vector<16x128xi32>
    %81 = arith.sitofp %80 : vector<16x128xi32> to vector<16x128xf32>
    %82 = arith.truncf %81 : vector<16x128xf32> to vector<16x128xbf16>
    %c0_37 = arith.constant 0 : index
    %c0_38 = arith.constant 0 : index
    %83 = vector.load %arg9[%c0_37, %c0_38] : memref<128x128xbf16, #tpu.memory_space<vmem>>, vector<16x128xbf16>
    tpu.vector_store %arg9[%c0_37, %c0_38], %82 {strides = array<i32>} : memref<128x128xbf16, #tpu.memory_space<vmem>>, vector<16x128xbf16>,
    %c4_i32_39 = arith.constant 4 : i32
    %84 = vector.broadcast %c4_i32_39 : i32 to vector<16x128xi32>
    %85 = arith.shrsi %78, %84 : vector<16x128xi32>
    %c15_i32_40 = arith.constant 15 : i32
    %86 = vector.broadcast %c15_i32_40 : i32 to vector<16x128xi32>
    %87 = arith.andi %85, %86 : vector<16x128xi32>
    %88 = arith.sitofp %87 : vector<16x128xi32> to vector<16x128xf32>
    %89 = arith.truncf %88 : vector<16x128xf32> to vector<16x128xbf16>
    %c16_41 = arith.constant 16 : index
    %c0_42 = arith.constant 0 : index
    %90 = vector.load %arg9[%c16_41, %c0_42] : memref<128x128xbf16, #tpu.memory_space<vmem>>, vector<16x128xbf16>
    tpu.vector_store %arg9[%c16_41, %c0_42], %89 {strides = array<i32>} : memref<128x128xbf16, #tpu.memory_space<vmem>>, vector<16x128xbf16>,
    %c8_i32_43 = arith.constant 8 : i32
    %91 = vector.broadcast %c8_i32_43 : i32 to vector<16x128xi32>
    %92 = arith.shrsi %78, %91 : vector<16x128xi32>
    %c15_i32_44 = arith.constant 15 : i32
    %93 = vector.broadcast %c15_i32_44 : i32 to vector<16x128xi32>
    %94 = arith.andi %92, %93 : vector<16x128xi32>
    %95 = arith.sitofp %94 : vector<16x128xi32> to vector<16x128xf32>
    %96 = arith.truncf %95 : vector<16x128xf32> to vector<16x128xbf16>
    %c32_45 = arith.constant 32 : index
    %c0_46 = arith.constant 0 : index
    %97 = vector.load %arg9[%c32_45, %c0_46] : memref<128x128xbf16, #tpu.memory_space<vmem>>, vector<16x128xbf16>
    tpu.vector_store %arg9[%c32_45, %c0_46], %96 {strides = array<i32>} : memref<128x128xbf16, #tpu.memory_space<vmem>>, vector<16x128xbf16>,
    %c12_i32_47 = arith.constant 12 : i32
    %98 = vector.broadcast %c12_i32_47 : i32 to vector<16x128xi32>
    %99 = arith.shrsi %78, %98 : vector<16x128xi32>
    %c15_i32_48 = arith.constant 15 : i32
    %100 = vector.broadcast %c15_i32_48 : i32 to vector<16x128xi32>
    %101 = arith.andi %99, %100 : vector<16x128xi32>
    %102 = arith.sitofp %101 : vector<16x128xi32> to vector<16x128xf32>
    %103 = arith.truncf %102 : vector<16x128xf32> to vector<16x128xbf16>
    %c48_49 = arith.constant 48 : index
    %c0_50 = arith.constant 0 : index
    %104 = vector.load %arg9[%c48_49, %c0_50] : memref<128x128xbf16, #tpu.memory_space<vmem>>, vector<16x128xbf16>
    tpu.vector_store %arg9[%c48_49, %c0_50], %103 {strides = array<i32>} : memref<128x128xbf16, #tpu.memory_space<vmem>>, vector<16x128xbf16>,
    %c16_i32_51 = arith.constant 16 : i32
    %105 = vector.broadcast %c16_i32_51 : i32 to vector<16x128xi32>
    %106 = arith.shrsi %78, %105 : vector<16x128xi32>
    %c15_i32_52 = arith.constant 15 : i32
    %107 = vector.broadcast %c15_i32_52 : i32 to vector<16x128xi32>
    %108 = arith.andi %106, %107 : vector<16x128xi32>
    %109 = arith.sitofp %108 : vector<16x128xi32> to vector<16x128xf32>
    %110 = arith.truncf %109 : vector<16x128xf32> to vector<16x128xbf16>
    %c64_53 = arith.constant 64 : index
    %c0_54 = arith.constant 0 : index
    %111 = vector.load %arg9[%c64_53, %c0_54] : memref<128x128xbf16, #tpu.memory_space<vmem>>, vector<16x128xbf16>
    tpu.vector_store %arg9[%c64_53, %c0_54], %110 {strides = array<i32>} : memref<128x128xbf16, #tpu.memory_space<vmem>>, vector<16x128xbf16>,
    %c20_i32_55 = arith.constant 20 : i32
    %112 = vector.broadcast %c20_i32_55 : i32 to vector<16x128xi32>
    %113 = arith.shrsi %78, %112 : vector<16x128xi32>
    %c15_i32_56 = arith.constant 15 : i32
    %114 = vector.broadcast %c15_i32_56 : i32 to vector<16x128xi32>
    %115 = arith.andi %113, %114 : vector<16x128xi32>
    %116 = arith.sitofp %115 : vector<16x128xi32> to vector<16x128xf32>
    %117 = arith.truncf %116 : vector<16x128xf32> to vector<16x128xbf16>
    %c80_57 = arith.constant 80 : index
    %c0_58 = arith.constant 0 : index
    %118 = vector.load %arg9[%c80_57, %c0_58] : memref<128x128xbf16, #tpu.memory_space<vmem>>, vector<16x128xbf16>
    tpu.vector_store %arg9[%c80_57, %c0_58], %117 {strides = array<i32>} : memref<128x128xbf16, #tpu.memory_space<vmem>>, vector<16x128xbf16>,
    %c24_i32_59 = arith.constant 24 : i32
    %119 = vector.broadcast %c24_i32_59 : i32 to vector<16x128xi32>
    %120 = arith.shrsi %78, %119 : vector<16x128xi32>
    %c15_i32_60 = arith.constant 15 : i32
    %121 = vector.broadcast %c15_i32_60 : i32 to vector<16x128xi32>
    %122 = arith.andi %120, %121 : vector<16x128xi32>
    %123 = arith.sitofp %122 : vector<16x128xi32> to vector<16x128xf32>
    %124 = arith.truncf %123 : vector<16x128xf32> to vector<16x128xbf16>
    %c96_61 = arith.constant 96 : index
    %c0_62 = arith.constant 0 : index
    %125 = vector.load %arg9[%c96_61, %c0_62] : memref<128x128xbf16, #tpu.memory_space<vmem>>, vector<16x128xbf16>
    tpu.vector_store %arg9[%c96_61, %c0_62], %124 {strides = array<i32>} : memref<128x128xbf16, #tpu.memory_space<vmem>>, vector<16x128xbf16>,
    %c28_i32_63 = arith.constant 28 : i32
    %126 = vector.broadcast %c28_i32_63 : i32 to vector<16x128xi32>
    %127 = arith.shrsi %78, %126 : vector<16x128xi32>
    %c15_i32_64 = arith.constant 15 : i32
    %128 = vector.broadcast %c15_i32_64 : i32 to vector<16x128xi32>
    %129 = arith.andi %127, %128 : vector<16x128xi32>
    %130 = arith.sitofp %129 : vector<16x128xi32> to vector<16x128xf32>
    %131 = arith.truncf %130 : vector<16x128xf32> to vector<16x128xbf16>
    %c112_65 = arith.constant 112 : index
    %c0_66 = arith.constant 0 : index
    %132 = vector.load %arg9[%c112_65, %c0_66] : memref<128x128xbf16, #tpu.memory_space<vmem>>, vector<16x128xbf16>
    tpu.vector_store %arg9[%c112_65, %c0_66], %131 {strides = array<i32>} : memref<128x128xbf16, #tpu.memory_space<vmem>>, vector<16x128xbf16>,
    %c0_67 = arith.constant 0 : index
    %c0_68 = arith.constant 0 : index
    %133 = vector.load %arg9[%c0_67, %c0_68] : memref<128x128xbf16, #tpu.memory_space<vmem>>, vector<128x128xbf16>
    %cst_69 = arith.constant dense<0.000000e+00> : vector<32x128xf32>
    %134 = tpu.matmul %77, %133, %cst_69 {dimension_numbers = #tpu.dot_dimension_numbers<[1], [0], [0], [1], [0, 0, 1, 1], [], []>} : vector<32x128xbf16>, vector<128x128xbf16>, vector<32x128xf32> -> vector<32x128xf32>
    %135 = arith.extf %77 : vector<32x128xbf16> to vector<32x128xf32>
    %cst_70 = arith.constant dense<0.000000e+00> : vector<32xf32>
    %136 = vector.multi_reduction <add>, %135, %cst_70 [1] : vector<32x128xf32> to vector<32xf32>
    %137 = vector.shape_cast %136 : vector<32xf32> to vector<32x1xf32>
    %c0_71 = arith.constant 0 : index
    %c0_72 = arith.constant 0 : index
    %138 = vector.load %arg8[%c0_71, %c0_72] : memref<32x128xf32, #tpu.memory_space<vmem>>, vector<32x128xf32>
    %c1 = arith.constant 1 : index
    %c0_73 = arith.constant 0 : index
    %c0_74 = arith.constant 0 : index
    %139 = vector.load %arg6[%c1, %c0_73, %c0_74] : memref<8x1x128xf32, #tpu.memory_space<vmem>>, vector<1x1x128xf32>
    %140 = vector.shape_cast %139 : vector<1x1x128xf32> to vector<1x128xf32>
    %141 = vector.broadcast %137 : vector<32x1xf32> to vector<32x128xf32>
    %142 = vector.broadcast %140 : vector<1x128xf32> to vector<32x128xf32>
    %143 = arith.mulf %141, %142 : vector<32x128xf32>
    %144 = arith.subf %134, %143 : vector<32x128xf32>
    %c1_75 = arith.constant 1 : index
    %c0_76 = arith.constant 0 : index
    %c0_77 = arith.constant 0 : index
    %145 = vector.load %arg5[%c1_75, %c0_76, %c0_77] : memref<8x1x128xf32, #tpu.memory_space<vmem>>, vector<1x1x128xf32>
    %146 = vector.shape_cast %145 : vector<1x1x128xf32> to vector<1x128xf32>
    %147 = vector.broadcast %146 : vector<1x128xf32> to vector<32x128xf32>
    %148 = arith.mulf %144, %147 : vector<32x128xf32>
    %149 = arith.addf %138, %148 : vector<32x128xf32>
    %c0_78 = arith.constant 0 : index
    %c0_79 = arith.constant 0 : index
    %150 = vector.load %arg8[%c0_78, %c0_79] : memref<32x128xf32, #tpu.memory_space<vmem>>, vector<32x128xf32>
    tpu.vector_store %arg8[%c0_78, %c0_79], %149 {strides = array<i32>} : memref<32x128xf32, #tpu.memory_space<vmem>>, vector<32x128xf32>,
    %c0_80 = arith.constant 0 : index
    %c256 = arith.constant 256 : index
    %151 = vector.load %arg3[%c0_80, %c256] : memref<32x1024xbf16, #tpu.memory_space<vmem>>, vector<32x128xbf16>
    %c32_81 = arith.constant 32 : index
    %c0_82 = arith.constant 0 : index
    %152 = vector.load %arg4[%c32_81, %c0_82] : memref<128x128xi32, #tpu.memory_space<vmem>>, vector<16x128xi32>
    %c15_i32_83 = arith.constant 15 : i32
    %153 = vector.broadcast %c15_i32_83 : i32 to vector<16x128xi32>
    %154 = arith.andi %152, %153 : vector<16x128xi32>
    %155 = arith.sitofp %154 : vector<16x128xi32> to vector<16x128xf32>
    %156 = arith.truncf %155 : vector<16x128xf32> to vector<16x128xbf16>
    %c0_84 = arith.constant 0 : index
    %c0_85 = arith.constant 0 : index
    %157 = vector.load %arg9[%c0_84, %c0_85] : memref<128x128xbf16, #tpu.memory_space<vmem>>, vector<16x128xbf16>
    tpu.vector_store %arg9[%c0_84, %c0_85], %156 {strides = array<i32>} : memref<128x128xbf16, #tpu.memory_space<vmem>>, vector<16x128xbf16>,
    %c4_i32_86 = arith.constant 4 : i32
    %158 = vector.broadcast %c4_i32_86 : i32 to vector<16x128xi32>
    %159 = arith.shrsi %152, %158 : vector<16x128xi32>
    %c15_i32_87 = arith.constant 15 : i32
    %160 = vector.broadcast %c15_i32_87 : i32 to vector<16x128xi32>
    %161 = arith.andi %159, %160 : vector<16x128xi32>
    %162 = arith.sitofp %161 : vector<16x128xi32> to vector<16x128xf32>
    %163 = arith.truncf %162 : vector<16x128xf32> to vector<16x128xbf16>
    %c16_88 = arith.constant 16 : index
    %c0_89 = arith.constant 0 : index
    %164 = vector.load %arg9[%c16_88, %c0_89] : memref<128x128xbf16, #tpu.memory_space<vmem>>, vector<16x128xbf16>
    tpu.vector_store %arg9[%c16_88, %c0_89], %163 {strides = array<i32>} : memref<128x128xbf16, #tpu.memory_space<vmem>>, vector<16x128xbf16>,
    %c8_i32_90 = arith.constant 8 : i32
    %165 = vector.broadcast %c8_i32_90 : i32 to vector<16x128xi32>
    %166 = arith.shrsi %152, %165 : vector<16x128xi32>
    %c15_i32_91 = arith.constant 15 : i32
    %167 = vector.broadcast %c15_i32_91 : i32 to vector<16x128xi32>
    %168 = arith.andi %166, %167 : vector<16x128xi32>
    %169 = arith.sitofp %168 : vector<16x128xi32> to vector<16x128xf32>
    %170 = arith.truncf %169 : vector<16x128xf32> to vector<16x128xbf16>
    %c32_92 = arith.constant 32 : index
    %c0_93 = arith.constant 0 : index
    %171 = vector.load %arg9[%c32_92, %c0_93] : memref<128x128xbf16, #tpu.memory_space<vmem>>, vector<16x128xbf16>
    tpu.vector_store %arg9[%c32_92, %c0_93], %170 {strides = array<i32>} : memref<128x128xbf16, #tpu.memory_space<vmem>>, vector<16x128xbf16>,
    %c12_i32_94 = arith.constant 12 : i32
    %172 = vector.broadcast %c12_i32_94 : i32 to vector<16x128xi32>
    %173 = arith.shrsi %152, %172 : vector<16x128xi32>
    %c15_i32_95 = arith.constant 15 : i32
    %174 = vector.broadcast %c15_i32_95 : i32 to vector<16x128xi32>
    %175 = arith.andi %173, %174 : vector<16x128xi32>
    %176 = arith.sitofp %175 : vector<16x128xi32> to vector<16x128xf32>
    %177 = arith.truncf %176 : vector<16x128xf32> to vector<16x128xbf16>
    %c48_96 = arith.constant 48 : index
    %c0_97 = arith.constant 0 : index
    %178 = vector.load %arg9[%c48_96, %c0_97] : memref<128x128xbf16, #tpu.memory_space<vmem>>, vector<16x128xbf16>
    tpu.vector_store %arg9[%c48_96, %c0_97], %177 {strides = array<i32>} : memref<128x128xbf16, #tpu.memory_space<vmem>>, vector<16x128xbf16>,
    %c16_i32_98 = arith.constant 16 : i32
    %179 = vector.broadcast %c16_i32_98 : i32 to vector<16x128xi32>
    %180 = arith.shrsi %152, %179 : vector<16x128xi32>
    %c15_i32_99 = arith.constant 15 : i32
    %181 = vector.broadcast %c15_i32_99 : i32 to vector<16x128xi32>
    %182 = arith.andi %180, %181 : vector<16x128xi32>
    %183 = arith.sitofp %182 : vector<16x128xi32> to vector<16x128xf32>
    %184 = arith.truncf %183 : vector<16x128xf32> to vector<16x128xbf16>
    %c64_100 = arith.constant 64 : index
    %c0_101 = arith.constant 0 : index
    %185 = vector.load %arg9[%c64_100, %c0_101] : memref<128x128xbf16, #tpu.memory_space<vmem>>, vector<16x128xbf16>
    tpu.vector_store %arg9[%c64_100, %c0_101], %184 {strides = array<i32>} : memref<128x128xbf16, #tpu.memory_space<vmem>>, vector<16x128xbf16>,
    %c20_i32_102 = arith.constant 20 : i32
    %186 = vector.broadcast %c20_i32_102 : i32 to vector<16x128xi32>
    %187 = arith.shrsi %152, %186 : vector<16x128xi32>
    %c15_i32_103 = arith.constant 15 : i32
    %188 = vector.broadcast %c15_i32_103 : i32 to vector<16x128xi32>
    %189 = arith.andi %187, %188 : vector<16x128xi32>
    %190 = arith.sitofp %189 : vector<16x128xi32> to vector<16x128xf32>
    %191 = arith.truncf %190 : vector<16x128xf32> to vector<16x128xbf16>
    %c80_104 = arith.constant 80 : index
    %c0_105 = arith.constant 0 : index
    %192 = vector.load %arg9[%c80_104, %c0_105] : memref<128x128xbf16, #tpu.memory_space<vmem>>, vector<16x128xbf16>
    tpu.vector_store %arg9[%c80_104, %c0_105], %191 {strides = array<i32>} : memref<128x128xbf16, #tpu.memory_space<vmem>>, vector<16x128xbf16>,
    %c24_i32_106 = arith.constant 24 : i32
    %193 = vector.broadcast %c24_i32_106 : i32 to vector<16x128xi32>
    %194 = arith.shrsi %152, %193 : vector<16x128xi32>
    %c15_i32_107 = arith.constant 15 : i32
    %195 = vector.broadcast %c15_i32_107 : i32 to vector<16x128xi32>
    %196 = arith.andi %194, %195 : vector<16x128xi32>
    %197 = arith.sitofp %196 : vector<16x128xi32> to vector<16x128xf32>
    %198 = arith.truncf %197 : vector<16x128xf32> to vector<16x128xbf16>
    %c96_108 = arith.constant 96 : index
    %c0_109 = arith.constant 0 : index
    %199 = vector.load %arg9[%c96_108, %c0_109] : memref<128x128xbf16, #tpu.memory_space<vmem>>, vector<16x128xbf16>
    tpu.vector_store %arg9[%c96_108, %c0_109], %198 {strides = array<i32>} : memref<128x128xbf16, #tpu.memory_space<vmem>>, vector<16x128xbf16>,
    %c28_i32_110 = arith.constant 28 : i32
    %200 = vector.broadcast %c28_i32_110 : i32 to vector<16x128xi32>
    %201 = arith.shrsi %152, %200 : vector<16x128xi32>
    %c15_i32_111 = arith.constant 15 : i32
    %202 = vector.broadcast %c15_i32_111 : i32 to vector<16x128xi32>
    %203 = arith.andi %201, %202 : vector<16x128xi32>
    %204 = arith.sitofp %203 : vector<16x128xi32> to vector<16x128xf32>
    %205 = arith.truncf %204 : vector<16x128xf32> to vector<16x128xbf16>
    %c112_112 = arith.constant 112 : index
    %c0_113 = arith.constant 0 : index
    %206 = vector.load %arg9[%c112_112, %c0_113] : memref<128x128xbf16, #tpu.memory_space<vmem>>, vector<16x128xbf16>
    tpu.vector_store %arg9[%c112_112, %c0_113], %205 {strides = array<i32>} : memref<128x128xbf16, #tpu.memory_space<vmem>>, vector<16x128xbf16>,
    %c0_114 = arith.constant 0 : index
    %c0_115 = arith.constant 0 : index
    %207 = vector.load %arg9[%c0_114, %c0_115] : memref<128x128xbf16, #tpu.memory_space<vmem>>, vector<128x128xbf16>
    %cst_116 = arith.constant dense<0.000000e+00> : vector<32x128xf32>
    %208 = tpu.matmul %151, %207, %cst_116 {dimension_numbers = #tpu.dot_dimension_numbers<[1], [0], [0], [1], [0, 0, 1, 1], [], []>} : vector<32x128xbf16>, vector<128x128xbf16>, vector<32x128xf32> -> vector<32x128xf32>
    %209 = arith.extf %151 : vector<32x128xbf16> to vector<32x128xf32>
    %cst_117 = arith.constant dense<0.000000e+00> : vector<32xf32>
    %210 = vector.multi_reduction <add>, %209, %cst_117 [1] : vector<32x128xf32> to vector<32xf32>
    %211 = vector.shape_cast %210 : vector<32xf32> to vector<32x1xf32>
    %c0_118 = arith.constant 0 : index
    %c0_119 = arith.constant 0 : index
    %212 = vector.load %arg8[%c0_118, %c0_119] : memref<32x128xf32, #tpu.memory_space<vmem>>, vector<32x128xf32>
    %c2 = arith.constant 2 : index
    %c0_120 = arith.constant 0 : index
    %c0_121 = arith.constant 0 : index
    %213 = vector.load %arg6[%c2, %c0_120, %c0_121] : memref<8x1x128xf32, #tpu.memory_space<vmem>>, vector<1x1x128xf32>
    %214 = vector.shape_cast %213 : vector<1x1x128xf32> to vector<1x128xf32>
    %215 = vector.broadcast %211 : vector<32x1xf32> to vector<32x128xf32>
    %216 = vector.broadcast %214 : vector<1x128xf32> to vector<32x128xf32>
    %217 = arith.mulf %215, %216 : vector<32x128xf32>
    %218 = arith.subf %208, %217 : vector<32x128xf32>
    %c2_122 = arith.constant 2 : index
    %c0_123 = arith.constant 0 : index
    %c0_124 = arith.constant 0 : index
    %219 = vector.load %arg5[%c2_122, %c0_123, %c0_124] : memref<8x1x128xf32, #tpu.memory_space<vmem>>, vector<1x1x128xf32>
    %220 = vector.shape_cast %219 : vector<1x1x128xf32> to vector<1x128xf32>
    %221 = vector.broadcast %220 : vector<1x128xf32> to vector<32x128xf32>
    %222 = arith.mulf %218, %221 : vector<32x128xf32>
    %223 = arith.addf %212, %222 : vector<32x128xf32>
    %c0_125 = arith.constant 0 : index
    %c0_126 = arith.constant 0 : index
    %224 = vector.load %arg8[%c0_125, %c0_126] : memref<32x128xf32, #tpu.memory_space<vmem>>, vector<32x128xf32>
    tpu.vector_store %arg8[%c0_125, %c0_126], %223 {strides = array<i32>} : memref<32x128xf32, #tpu.memory_space<vmem>>, vector<32x128xf32>,
    %c0_127 = arith.constant 0 : index
    %c384 = arith.constant 384 : index
    %225 = vector.load %arg3[%c0_127, %c384] : memref<32x1024xbf16, #tpu.memory_space<vmem>>, vector<32x128xbf16>
    %c48_128 = arith.constant 48 : index
    %c0_129 = arith.constant 0 : index
    %226 = vector.load %arg4[%c48_128, %c0_129] : memref<128x128xi32, #tpu.memory_space<vmem>>, vector<16x128xi32>
    %c15_i32_130 = arith.constant 15 : i32
    %227 = vector.broadcast %c15_i32_130 : i32 to vector<16x128xi32>
    %228 = arith.andi %226, %227 : vector<16x128xi32>
    %229 = arith.sitofp %228 : vector<16x128xi32> to vector<16x128xf32>
    %230 = arith.truncf %229 : vector<16x128xf32> to vector<16x128xbf16>
    %c0_131 = arith.constant 0 : index
    %c0_132 = arith.constant 0 : index
    %231 = vector.load %arg9[%c0_131, %c0_132] : memref<128x128xbf16, #tpu.memory_space<vmem>>, vector<16x128xbf16>
    tpu.vector_store %arg9[%c0_131, %c0_132], %230 {strides = array<i32>} : memref<128x128xbf16, #tpu.memory_space<vmem>>, vector<16x128xbf16>,
    %c4_i32_133 = arith.constant 4 : i32
    %232 = vector.broadcast %c4_i32_133 : i32 to vector<16x128xi32>
    %233 = arith.shrsi %226, %232 : vector<16x128xi32>
    %c15_i32_134 = arith.constant 15 : i32
    %234 = vector.broadcast %c15_i32_134 : i32 to vector<16x128xi32>
    %235 = arith.andi %233, %234 : vector<16x128xi32>
    %236 = arith.sitofp %235 : vector<16x128xi32> to vector<16x128xf32>
    %237 = arith.truncf %236 : vector<16x128xf32> to vector<16x128xbf16>
    %c16_135 = arith.constant 16 : index
    %c0_136 = arith.constant 0 : index
    %238 = vector.load %arg9[%c16_135, %c0_136] : memref<128x128xbf16, #tpu.memory_space<vmem>>, vector<16x128xbf16>
    tpu.vector_store %arg9[%c16_135, %c0_136], %237 {strides = array<i32>} : memref<128x128xbf16, #tpu.memory_space<vmem>>, vector<16x128xbf16>,
    %c8_i32_137 = arith.constant 8 : i32
    %239 = vector.broadcast %c8_i32_137 : i32 to vector<16x128xi32>
    %240 = arith.shrsi %226, %239 : vector<16x128xi32>
    %c15_i32_138 = arith.constant 15 : i32
    %241 = vector.broadcast %c15_i32_138 : i32 to vector<16x128xi32>
    %242 = arith.andi %240, %241 : vector<16x128xi32>
    %243 = arith.sitofp %242 : vector<16x128xi32> to vector<16x128xf32>
    %244 = arith.truncf %243 : vector<16x128xf32> to vector<16x128xbf16>
    %c32_139 = arith.constant 32 : index
    %c0_140 = arith.constant 0 : index
    %245 = vector.load %arg9[%c32_139, %c0_140] : memref<128x128xbf16, #tpu.memory_space<vmem>>, vector<16x128xbf16>
    tpu.vector_store %arg9[%c32_139, %c0_140], %244 {strides = array<i32>} : memref<128x128xbf16, #tpu.memory_space<vmem>>, vector<16x128xbf16>,
    %c12_i32_141 = arith.constant 12 : i32
    %246 = vector.broadcast %c12_i32_141 : i32 to vector<16x128xi32>
    %247 = arith.shrsi %226, %246 : vector<16x128xi32>
    %c15_i32_142 = arith.constant 15 : i32
    %248 = vector.broadcast %c15_i32_142 : i32 to vector<16x128xi32>
    %249 = arith.andi %247, %248 : vector<16x128xi32>
    %250 = arith.sitofp %249 : vector<16x128xi32> to vector<16x128xf32>
    %251 = arith.truncf %250 : vector<16x128xf32> to vector<16x128xbf16>
    %c48_143 = arith.constant 48 : index
    %c0_144 = arith.constant 0 : index
    %252 = vector.load %arg9[%c48_143, %c0_144] : memref<128x128xbf16, #tpu.memory_space<vmem>>, vector<16x128xbf16>
    tpu.vector_store %arg9[%c48_143, %c0_144], %251 {strides = array<i32>} : memref<128x128xbf16, #tpu.memory_space<vmem>>, vector<16x128xbf16>,
    %c16_i32_145 = arith.constant 16 : i32
    %253 = vector.broadcast %c16_i32_145 : i32 to vector<16x128xi32>
    %254 = arith.shrsi %226, %253 : vector<16x128xi32>
    %c15_i32_146 = arith.constant 15 : i32
    %255 = vector.broadcast %c15_i32_146 : i32 to vector<16x128xi32>
    %256 = arith.andi %254, %255 : vector<16x128xi32>
    %257 = arith.sitofp %256 : vector<16x128xi32> to vector<16x128xf32>
    %258 = arith.truncf %257 : vector<16x128xf32> to vector<16x128xbf16>
    %c64_147 = arith.constant 64 : index
    %c0_148 = arith.constant 0 : index
    %259 = vector.load %arg9[%c64_147, %c0_148] : memref<128x128xbf16, #tpu.memory_space<vmem>>, vector<16x128xbf16>
    tpu.vector_store %arg9[%c64_147, %c0_148], %258 {strides = array<i32>} : memref<128x128xbf16, #tpu.memory_space<vmem>>, vector<16x128xbf16>,
    %c20_i32_149 = arith.constant 20 : i32
    %260 = vector.broadcast %c20_i32_149 : i32 to vector<16x128xi32>
    %261 = arith.shrsi %226, %260 : vector<16x128xi32>
    %c15_i32_150 = arith.constant 15 : i32
    %262 = vector.broadcast %c15_i32_150 : i32 to vector<16x128xi32>
    %263 = arith.andi %261, %262 : vector<16x128xi32>
    %264 = arith.sitofp %263 : vector<16x128xi32> to vector<16x128xf32>
    %265 = arith.truncf %264 : vector<16x128xf32> to vector<16x128xbf16>
    %c80_151 = arith.constant 80 : index
    %c0_152 = arith.constant 0 : index
    %266 = vector.load %arg9[%c80_151, %c0_152] : memref<128x128xbf16, #tpu.memory_space<vmem>>, vector<16x128xbf16>
    tpu.vector_store %arg9[%c80_151, %c0_152], %265 {strides = array<i32>} : memref<128x128xbf16, #tpu.memory_space<vmem>>, vector<16x128xbf16>,
    %c24_i32_153 = arith.constant 24 : i32
    %267 = vector.broadcast %c24_i32_153 : i32 to vector<16x128xi32>
    %268 = arith.shrsi %226, %267 : vector<16x128xi32>
    %c15_i32_154 = arith.constant 15 : i32
    %269 = vector.broadcast %c15_i32_154 : i32 to vector<16x128xi32>
    %270 = arith.andi %268, %269 : vector<16x128xi32>
    %271 = arith.sitofp %270 : vector<16x128xi32> to vector<16x128xf32>
    %272 = arith.truncf %271 : vector<16x128xf32> to vector<16x128xbf16>
    %c96_155 = arith.constant 96 : index
    %c0_156 = arith.constant 0 : index
    %273 = vector.load %arg9[%c96_155, %c0_156] : memref<128x128xbf16, #tpu.memory_space<vmem>>, vector<16x128xbf16>
    tpu.vector_store %arg9[%c96_155, %c0_156], %272 {strides = array<i32>} : memref<128x128xbf16, #tpu.memory_space<vmem>>, vector<16x128xbf16>,
    %c28_i32_157 = arith.constant 28 : i32
    %274 = vector.broadcast %c28_i32_157 : i32 to vector<16x128xi32>
    %275 = arith.shrsi %226, %274 : vector<16x128xi32>
    %c15_i32_158 = arith.constant 15 : i32
    %276 = vector.broadcast %c15_i32_158 : i32 to vector<16x128xi32>
    %277 = arith.andi %275, %276 : vector<16x128xi32>
    %278 = arith.sitofp %277 : vector<16x128xi32> to vector<16x128xf32>
    %279 = arith.truncf %278 : vector<16x128xf32> to vector<16x128xbf16>
    %c112_159 = arith.constant 112 : index
    %c0_160 = arith.constant 0 : index
    %280 = vector.load %arg9[%c112_159, %c0_160] : memref<128x128xbf16, #tpu.memory_space<vmem>>, vector<16x128xbf16>
    tpu.vector_store %arg9[%c112_159, %c0_160], %279 {strides = array<i32>} : memref<128x128xbf16, #tpu.memory_space<vmem>>, vector<16x128xbf16>,
    %c0_161 = arith.constant 0 : index
    %c0_162 = arith.constant 0 : index
    %281 = vector.load %arg9[%c0_161, %c0_162] : memref<128x128xbf16, #tpu.memory_space<vmem>>, vector<128x128xbf16>
    %cst_163 = arith.constant dense<0.000000e+00> : vector<32x128xf32>
    %282 = tpu.matmul %225, %281, %cst_163 {dimension_numbers = #tpu.dot_dimension_numbers<[1], [0], [0], [1], [0, 0, 1, 1], [], []>} : vector<32x128xbf16>, vector<128x128xbf16>, vector<32x128xf32> -> vector<32x128xf32>
    %283 = arith.extf %225 : vector<32x128xbf16> to vector<32x128xf32>
    %cst_164 = arith.constant dense<0.000000e+00> : vector<32xf32>
    %284 = vector.multi_reduction <add>, %283, %cst_164 [1] : vector<32x128xf32> to vector<32xf32>
    %285 = vector.shape_cast %284 : vector<32xf32> to vector<32x1xf32>
    %c0_165 = arith.constant 0 : index
    %c0_166 = arith.constant 0 : index
    %286 = vector.load %arg8[%c0_165, %c0_166] : memref<32x128xf32, #tpu.memory_space<vmem>>, vector<32x128xf32>
    %c3 = arith.constant 3 : index
    %c0_167 = arith.constant 0 : index
    %c0_168 = arith.constant 0 : index
    %287 = vector.load %arg6[%c3, %c0_167, %c0_168] : memref<8x1x128xf32, #tpu.memory_space<vmem>>, vector<1x1x128xf32>
    %288 = vector.shape_cast %287 : vector<1x1x128xf32> to vector<1x128xf32>
    %289 = vector.broadcast %285 : vector<32x1xf32> to vector<32x128xf32>
    %290 = vector.broadcast %288 : vector<1x128xf32> to vector<32x128xf32>
    %291 = arith.mulf %289, %290 : vector<32x128xf32>
    %292 = arith.subf %282, %291 : vector<32x128xf32>
    %c3_169 = arith.constant 3 : index
    %c0_170 = arith.constant 0 : index
    %c0_171 = arith.constant 0 : index
    %293 = vector.load %arg5[%c3_169, %c0_170, %c0_171] : memref<8x1x128xf32, #tpu.memory_space<vmem>>, vector<1x1x128xf32>
    %294 = vector.shape_cast %293 : vector<1x1x128xf32> to vector<1x128xf32>
    %295 = vector.broadcast %294 : vector<1x128xf32> to vector<32x128xf32>
    %296 = arith.mulf %292, %295 : vector<32x128xf32>
    %297 = arith.addf %286, %296 : vector<32x128xf32>
    %c0_172 = arith.constant 0 : index
    %c0_173 = arith.constant 0 : index
    %298 = vector.load %arg8[%c0_172, %c0_173] : memref<32x128xf32, #tpu.memory_space<vmem>>, vector<32x128xf32>
    tpu.vector_store %arg8[%c0_172, %c0_173], %297 {strides = array<i32>} : memref<32x128xf32, #tpu.memory_space<vmem>>, vector<32x128xf32>,
    %c0_174 = arith.constant 0 : index
    %c512 = arith.constant 512 : index
    %299 = vector.load %arg3[%c0_174, %c512] : memref<32x1024xbf16, #tpu.memory_space<vmem>>, vector<32x128xbf16>
    %c64_175 = arith.constant 64 : index
    %c0_176 = arith.constant 0 : index
    %300 = vector.load %arg4[%c64_175, %c0_176] : memref<128x128xi32, #tpu.memory_space<vmem>>, vector<16x128xi32>
    %c15_i32_177 = arith.constant 15 : i32
    %301 = vector.broadcast %c15_i32_177 : i32 to vector<16x128xi32>
    %302 = arith.andi %300, %301 : vector<16x128xi32>
    %303 = arith.sitofp %302 : vector<16x128xi32> to vector<16x128xf32>
    %304 = arith.truncf %303 : vector<16x128xf32> to vector<16x128xbf16>
    %c0_178 = arith.constant 0 : index
    %c0_179 = arith.constant 0 : index
    %305 = vector.load %arg9[%c0_178, %c0_179] : memref<128x128xbf16, #tpu.memory_space<vmem>>, vector<16x128xbf16>
    tpu.vector_store %arg9[%c0_178, %c0_179], %304 {strides = array<i32>} : memref<128x128xbf16, #tpu.memory_space<vmem>>, vector<16x128xbf16>,
    %c4_i32_180 = arith.constant 4 : i32
    %306 = vector.broadcast %c4_i32_180 : i32 to vector<16x128xi32>
    %307 = arith.shrsi %300, %306 : vector<16x128xi32>
    %c15_i32_181 = arith.constant 15 : i32
    %308 = vector.broadcast %c15_i32_181 : i32 to vector<16x128xi32>
    %309 = arith.andi %307, %308 : vector<16x128xi32>
    %310 = arith.sitofp %309 : vector<16x128xi32> to vector<16x128xf32>
    %311 = arith.truncf %310 : vector<16x128xf32> to vector<16x128xbf16>
    %c16_182 = arith.constant 16 : index
    %c0_183 = arith.constant 0 : index
    %312 = vector.load %arg9[%c16_182, %c0_183] : memref<128x128xbf16, #tpu.memory_space<vmem>>, vector<16x128xbf16>
    tpu.vector_store %arg9[%c16_182, %c0_183], %311 {strides = array<i32>} : memref<128x128xbf16, #tpu.memory_space<vmem>>, vector<16x128xbf16>,
    %c8_i32_184 = arith.constant 8 : i32
    %313 = vector.broadcast %c8_i32_184 : i32 to vector<16x128xi32>
    %314 = arith.shrsi %300, %313 : vector<16x128xi32>
    %c15_i32_185 = arith.constant 15 : i32
    %315 = vector.broadcast %c15_i32_185 : i32 to vector<16x128xi32>
    %316 = arith.andi %314, %315 : vector<16x128xi32>
    %317 = arith.sitofp %316 : vector<16x128xi32> to vector<16x128xf32>
    %318 = arith.truncf %317 : vector<16x128xf32> to vector<16x128xbf16>
    %c32_186 = arith.constant 32 : index
    %c0_187 = arith.constant 0 : index
    %319 = vector.load %arg9[%c32_186, %c0_187] : memref<128x128xbf16, #tpu.memory_space<vmem>>, vector<16x128xbf16>
    tpu.vector_store %arg9[%c32_186, %c0_187], %318 {strides = array<i32>} : memref<128x128xbf16, #tpu.memory_space<vmem>>, vector<16x128xbf16>,
    %c12_i32_188 = arith.constant 12 : i32
    %320 = vector.broadcast %c12_i32_188 : i32 to vector<16x128xi32>
    %321 = arith.shrsi %300, %320 : vector<16x128xi32>
    %c15_i32_189 = arith.constant 15 : i32
    %322 = vector.broadcast %c15_i32_189 : i32 to vector<16x128xi32>
    %323 = arith.andi %321, %322 : vector<16x128xi32>
    %324 = arith.sitofp %323 : vector<16x128xi32> to vector<16x128xf32>
    %325 = arith.truncf %324 : vector<16x128xf32> to vector<16x128xbf16>
    %c48_190 = arith.constant 48 : index
    %c0_191 = arith.constant 0 : index
    %326 = vector.load %arg9[%c48_190, %c0_191] : memref<128x128xbf16, #tpu.memory_space<vmem>>, vector<16x128xbf16>
    tpu.vector_store %arg9[%c48_190, %c0_191], %325 {strides = array<i32>} : memref<128x128xbf16, #tpu.memory_space<vmem>>, vector<16x128xbf16>,
    %c16_i32_192 = arith.constant 16 : i32
    %327 = vector.broadcast %c16_i32_192 : i32 to vector<16x128xi32>
    %328 = arith.shrsi %300, %327 : vector<16x128xi32>
    %c15_i32_193 = arith.constant 15 : i32
    %329 = vector.broadcast %c15_i32_193 : i32 to vector<16x128xi32>
    %330 = arith.andi %328, %329 : vector<16x128xi32>
    %331 = arith.sitofp %330 : vector<16x128xi32> to vector<16x128xf32>
    %332 = arith.truncf %331 : vector<16x128xf32> to vector<16x128xbf16>
    %c64_194 = arith.constant 64 : index
    %c0_195 = arith.constant 0 : index
    %333 = vector.load %arg9[%c64_194, %c0_195] : memref<128x128xbf16, #tpu.memory_space<vmem>>, vector<16x128xbf16>
    tpu.vector_store %arg9[%c64_194, %c0_195], %332 {strides = array<i32>} : memref<128x128xbf16, #tpu.memory_space<vmem>>, vector<16x128xbf16>,
    %c20_i32_196 = arith.constant 20 : i32
    %334 = vector.broadcast %c20_i32_196 : i32 to vector<16x128xi32>
    %335 = arith.shrsi %300, %334 : vector<16x128xi32>
    %c15_i32_197 = arith.constant 15 : i32
    %336 = vector.broadcast %c15_i32_197 : i32 to vector<16x128xi32>
    %337 = arith.andi %335, %336 : vector<16x128xi32>
    %338 = arith.sitofp %337 : vector<16x128xi32> to vector<16x128xf32>
    %339 = arith.truncf %338 : vector<16x128xf32> to vector<16x128xbf16>
    %c80_198 = arith.constant 80 : index
    %c0_199 = arith.constant 0 : index
    %340 = vector.load %arg9[%c80_198, %c0_199] : memref<128x128xbf16, #tpu.memory_space<vmem>>, vector<16x128xbf16>
    tpu.vector_store %arg9[%c80_198, %c0_199], %339 {strides = array<i32>} : memref<128x128xbf16, #tpu.memory_space<vmem>>, vector<16x128xbf16>,
    %c24_i32_200 = arith.constant 24 : i32
    %341 = vector.broadcast %c24_i32_200 : i32 to vector<16x128xi32>
    %342 = arith.shrsi %300, %341 : vector<16x128xi32>
    %c15_i32_201 = arith.constant 15 : i32
    %343 = vector.broadcast %c15_i32_201 : i32 to vector<16x128xi32>
    %344 = arith.andi %342, %343 : vector<16x128xi32>
    %345 = arith.sitofp %344 : vector<16x128xi32> to vector<16x128xf32>
    %346 = arith.truncf %345 : vector<16x128xf32> to vector<16x128xbf16>
    %c96_202 = arith.constant 96 : index
    %c0_203 = arith.constant 0 : index
    %347 = vector.load %arg9[%c96_202, %c0_203] : memref<128x128xbf16, #tpu.memory_space<vmem>>, vector<16x128xbf16>
    tpu.vector_store %arg9[%c96_202, %c0_203], %346 {strides = array<i32>} : memref<128x128xbf16, #tpu.memory_space<vmem>>, vector<16x128xbf16>,
    %c28_i32_204 = arith.constant 28 : i32
    %348 = vector.broadcast %c28_i32_204 : i32 to vector<16x128xi32>
    %349 = arith.shrsi %300, %348 : vector<16x128xi32>
    %c15_i32_205 = arith.constant 15 : i32
    %350 = vector.broadcast %c15_i32_205 : i32 to vector<16x128xi32>
    %351 = arith.andi %349, %350 : vector<16x128xi32>
    %352 = arith.sitofp %351 : vector<16x128xi32> to vector<16x128xf32>
    %353 = arith.truncf %352 : vector<16x128xf32> to vector<16x128xbf16>
    %c112_206 = arith.constant 112 : index
    %c0_207 = arith.constant 0 : index
    %354 = vector.load %arg9[%c112_206, %c0_207] : memref<128x128xbf16, #tpu.memory_space<vmem>>, vector<16x128xbf16>
    tpu.vector_store %arg9[%c112_206, %c0_207], %353 {strides = array<i32>} : memref<128x128xbf16, #tpu.memory_space<vmem>>, vector<16x128xbf16>,
    %c0_208 = arith.constant 0 : index
    %c0_209 = arith.constant 0 : index
    %355 = vector.load %arg9[%c0_208, %c0_209] : memref<128x128xbf16, #tpu.memory_space<vmem>>, vector<128x128xbf16>
    %cst_210 = arith.constant dense<0.000000e+00> : vector<32x128xf32>
    %356 = tpu.matmul %299, %355, %cst_210 {dimension_numbers = #tpu.dot_dimension_numbers<[1], [0], [0], [1], [0, 0, 1, 1], [], []>} : vector<32x128xbf16>, vector<128x128xbf16>, vector<32x128xf32> -> vector<32x128xf32>
    %357 = arith.extf %299 : vector<32x128xbf16> to vector<32x128xf32>
    %cst_211 = arith.constant dense<0.000000e+00> : vector<32xf32>
    %358 = vector.multi_reduction <add>, %357, %cst_211 [1] : vector<32x128xf32> to vector<32xf32>
    %359 = vector.shape_cast %358 : vector<32xf32> to vector<32x1xf32>
    %c0_212 = arith.constant 0 : index
    %c0_213 = arith.constant 0 : index
    %360 = vector.load %arg8[%c0_212, %c0_213] : memref<32x128xf32, #tpu.memory_space<vmem>>, vector<32x128xf32>
    %c4 = arith.constant 4 : index
    %c0_214 = arith.constant 0 : index
    %c0_215 = arith.constant 0 : index
    %361 = vector.load %arg6[%c4, %c0_214, %c0_215] : memref<8x1x128xf32, #tpu.memory_space<vmem>>, vector<1x1x128xf32>
    %362 = vector.shape_cast %361 : vector<1x1x128xf32> to vector<1x128xf32>
    %363 = vector.broadcast %359 : vector<32x1xf32> to vector<32x128xf32>
    %364 = vector.broadcast %362 : vector<1x128xf32> to vector<32x128xf32>
    %365 = arith.mulf %363, %364 : vector<32x128xf32>
    %366 = arith.subf %356, %365 : vector<32x128xf32>
    %c4_216 = arith.constant 4 : index
    %c0_217 = arith.constant 0 : index
    %c0_218 = arith.constant 0 : index
    %367 = vector.load %arg5[%c4_216, %c0_217, %c0_218] : memref<8x1x128xf32, #tpu.memory_space<vmem>>, vector<1x1x128xf32>
    %368 = vector.shape_cast %367 : vector<1x1x128xf32> to vector<1x128xf32>
    %369 = vector.broadcast %368 : vector<1x128xf32> to vector<32x128xf32>
    %370 = arith.mulf %366, %369 : vector<32x128xf32>
    %371 = arith.addf %360, %370 : vector<32x128xf32>
    %c0_219 = arith.constant 0 : index
    %c0_220 = arith.constant 0 : index
    %372 = vector.load %arg8[%c0_219, %c0_220] : memref<32x128xf32, #tpu.memory_space<vmem>>, vector<32x128xf32>
    tpu.vector_store %arg8[%c0_219, %c0_220], %371 {strides = array<i32>} : memref<32x128xf32, #tpu.memory_space<vmem>>, vector<32x128xf32>,
    %c0_221 = arith.constant 0 : index
    %c640 = arith.constant 640 : index
    %373 = vector.load %arg3[%c0_221, %c640] : memref<32x1024xbf16, #tpu.memory_space<vmem>>, vector<32x128xbf16>
    %c80_222 = arith.constant 80 : index
    %c0_223 = arith.constant 0 : index
    %374 = vector.load %arg4[%c80_222, %c0_223] : memref<128x128xi32, #tpu.memory_space<vmem>>, vector<16x128xi32>
    %c15_i32_224 = arith.constant 15 : i32
    %375 = vector.broadcast %c15_i32_224 : i32 to vector<16x128xi32>
    %376 = arith.andi %374, %375 : vector<16x128xi32>
    %377 = arith.sitofp %376 : vector<16x128xi32> to vector<16x128xf32>
    %378 = arith.truncf %377 : vector<16x128xf32> to vector<16x128xbf16>
    %c0_225 = arith.constant 0 : index
    %c0_226 = arith.constant 0 : index
    %379 = vector.load %arg9[%c0_225, %c0_226] : memref<128x128xbf16, #tpu.memory_space<vmem>>, vector<16x128xbf16>
    tpu.vector_store %arg9[%c0_225, %c0_226], %378 {strides = array<i32>} : memref<128x128xbf16, #tpu.memory_space<vmem>>, vector<16x128xbf16>,
    %c4_i32_227 = arith.constant 4 : i32
    %380 = vector.broadcast %c4_i32_227 : i32 to vector<16x128xi32>
    %381 = arith.shrsi %374, %380 : vector<16x128xi32>
    %c15_i32_228 = arith.constant 15 : i32
    %382 = vector.broadcast %c15_i32_228 : i32 to vector<16x128xi32>
    %383 = arith.andi %381, %382 : vector<16x128xi32>
    %384 = arith.sitofp %383 : vector<16x128xi32> to vector<16x128xf32>
    %385 = arith.truncf %384 : vector<16x128xf32> to vector<16x128xbf16>
    %c16_229 = arith.constant 16 : index
    %c0_230 = arith.constant 0 : index
    %386 = vector.load %arg9[%c16_229, %c0_230] : memref<128x128xbf16, #tpu.memory_space<vmem>>, vector<16x128xbf16>
    tpu.vector_store %arg9[%c16_229, %c0_230], %385 {strides = array<i32>} : memref<128x128xbf16, #tpu.memory_space<vmem>>, vector<16x128xbf16>,
    %c8_i32_231 = arith.constant 8 : i32
    %387 = vector.broadcast %c8_i32_231 : i32 to vector<16x128xi32>
    %388 = arith.shrsi %374, %387 : vector<16x128xi32>
    %c15_i32_232 = arith.constant 15 : i32
    %389 = vector.broadcast %c15_i32_232 : i32 to vector<16x128xi32>
    %390 = arith.andi %388, %389 : vector<16x128xi32>
    %391 = arith.sitofp %390 : vector<16x128xi32> to vector<16x128xf32>
    %392 = arith.truncf %391 : vector<16x128xf32> to vector<16x128xbf16>
    %c32_233 = arith.constant 32 : index
    %c0_234 = arith.constant 0 : index
    %393 = vector.load %arg9[%c32_233, %c0_234] : memref<128x128xbf16, #tpu.memory_space<vmem>>, vector<16x128xbf16>
    tpu.vector_store %arg9[%c32_233, %c0_234], %392 {strides = array<i32>} : memref<128x128xbf16, #tpu.memory_space<vmem>>, vector<16x128xbf16>,
    %c12_i32_235 = arith.constant 12 : i32
    %394 = vector.broadcast %c12_i32_235 : i32 to vector<16x128xi32>
    %395 = arith.shrsi %374, %394 : vector<16x128xi32>
    %c15_i32_236 = arith.constant 15 : i32
    %396 = vector.broadcast %c15_i32_236 : i32 to vector<16x128xi32>
    %397 = arith.andi %395, %396 : vector<16x128xi32>
    %398 = arith.sitofp %397 : vector<16x128xi32> to vector<16x128xf32>
    %399 = arith.truncf %398 : vector<16x128xf32> to vector<16x128xbf16>
    %c48_237 = arith.constant 48 : index
    %c0_238 = arith.constant 0 : index
    %400 = vector.load %arg9[%c48_237, %c0_238] : memref<128x128xbf16, #tpu.memory_space<vmem>>, vector<16x128xbf16>
    tpu.vector_store %arg9[%c48_237, %c0_238], %399 {strides = array<i32>} : memref<128x128xbf16, #tpu.memory_space<vmem>>, vector<16x128xbf16>,
    %c16_i32_239 = arith.constant 16 : i32
    %401 = vector.broadcast %c16_i32_239 : i32 to vector<16x128xi32>
    %402 = arith.shrsi %374, %401 : vector<16x128xi32>
    %c15_i32_240 = arith.constant 15 : i32
    %403 = vector.broadcast %c15_i32_240 : i32 to vector<16x128xi32>
    %404 = arith.andi %402, %403 : vector<16x128xi32>
    %405 = arith.sitofp %404 : vector<16x128xi32> to vector<16x128xf32>
    %406 = arith.truncf %405 : vector<16x128xf32> to vector<16x128xbf16>
    %c64_241 = arith.constant 64 : index
    %c0_242 = arith.constant 0 : index
    %407 = vector.load %arg9[%c64_241, %c0_242] : memref<128x128xbf16, #tpu.memory_space<vmem>>, vector<16x128xbf16>
    tpu.vector_store %arg9[%c64_241, %c0_242], %406 {strides = array<i32>} : memref<128x128xbf16, #tpu.memory_space<vmem>>, vector<16x128xbf16>,
    %c20_i32_243 = arith.constant 20 : i32
    %408 = vector.broadcast %c20_i32_243 : i32 to vector<16x128xi32>
    %409 = arith.shrsi %374, %408 : vector<16x128xi32>
    %c15_i32_244 = arith.constant 15 : i32
    %410 = vector.broadcast %c15_i32_244 : i32 to vector<16x128xi32>
    %411 = arith.andi %409, %410 : vector<16x128xi32>
    %412 = arith.sitofp %411 : vector<16x128xi32> to vector<16x128xf32>
    %413 = arith.truncf %412 : vector<16x128xf32> to vector<16x128xbf16>
    %c80_245 = arith.constant 80 : index
    %c0_246 = arith.constant 0 : index
    %414 = vector.load %arg9[%c80_245, %c0_246] : memref<128x128xbf16, #tpu.memory_space<vmem>>, vector<16x128xbf16>
    tpu.vector_store %arg9[%c80_245, %c0_246], %413 {strides = array<i32>} : memref<128x128xbf16, #tpu.memory_space<vmem>>, vector<16x128xbf16>,
    %c24_i32_247 = arith.constant 24 : i32
    %415 = vector.broadcast %c24_i32_247 : i32 to vector<16x128xi32>
    %416 = arith.shrsi %374, %415 : vector<16x128xi32>
    %c15_i32_248 = arith.constant 15 : i32
    %417 = vector.broadcast %c15_i32_248 : i32 to vector<16x128xi32>
    %418 = arith.andi %416, %417 : vector<16x128xi32>
    %419 = arith.sitofp %418 : vector<16x128xi32> to vector<16x128xf32>
    %420 = arith.truncf %419 : vector<16x128xf32> to vector<16x128xbf16>
    %c96_249 = arith.constant 96 : index
    %c0_250 = arith.constant 0 : index
    %421 = vector.load %arg9[%c96_249, %c0_250] : memref<128x128xbf16, #tpu.memory_space<vmem>>, vector<16x128xbf16>
    tpu.vector_store %arg9[%c96_249, %c0_250], %420 {strides = array<i32>} : memref<128x128xbf16, #tpu.memory_space<vmem>>, vector<16x128xbf16>,
    %c28_i32_251 = arith.constant 28 : i32
    %422 = vector.broadcast %c28_i32_251 : i32 to vector<16x128xi32>
    %423 = arith.shrsi %374, %422 : vector<16x128xi32>
    %c15_i32_252 = arith.constant 15 : i32
    %424 = vector.broadcast %c15_i32_252 : i32 to vector<16x128xi32>
    %425 = arith.andi %423, %424 : vector<16x128xi32>
    %426 = arith.sitofp %425 : vector<16x128xi32> to vector<16x128xf32>
    %427 = arith.truncf %426 : vector<16x128xf32> to vector<16x128xbf16>
    %c112_253 = arith.constant 112 : index
    %c0_254 = arith.constant 0 : index
    %428 = vector.load %arg9[%c112_253, %c0_254] : memref<128x128xbf16, #tpu.memory_space<vmem>>, vector<16x128xbf16>
    tpu.vector_store %arg9[%c112_253, %c0_254], %427 {strides = array<i32>} : memref<128x128xbf16, #tpu.memory_space<vmem>>, vector<16x128xbf16>,
    %c0_255 = arith.constant 0 : index
    %c0_256 = arith.constant 0 : index
    %429 = vector.load %arg9[%c0_255, %c0_256] : memref<128x128xbf16, #tpu.memory_space<vmem>>, vector<128x128xbf16>
    %cst_257 = arith.constant dense<0.000000e+00> : vector<32x128xf32>
    %430 = tpu.matmul %373, %429, %cst_257 {dimension_numbers = #tpu.dot_dimension_numbers<[1], [0], [0], [1], [0, 0, 1, 1], [], []>} : vector<32x128xbf16>, vector<128x128xbf16>, vector<32x128xf32> -> vector<32x128xf32>
    %431 = arith.extf %373 : vector<32x128xbf16> to vector<32x128xf32>
    %cst_258 = arith.constant dense<0.000000e+00> : vector<32xf32>
    %432 = vector.multi_reduction <add>, %431, %cst_258 [1] : vector<32x128xf32> to vector<32xf32>
    %433 = vector.shape_cast %432 : vector<32xf32> to vector<32x1xf32>
    %c0_259 = arith.constant 0 : index
    %c0_260 = arith.constant 0 : index
    %434 = vector.load %arg8[%c0_259, %c0_260] : memref<32x128xf32, #tpu.memory_space<vmem>>, vector<32x128xf32>
    %c5 = arith.constant 5 : index
    %c0_261 = arith.constant 0 : index
    %c0_262 = arith.constant 0 : index
    %435 = vector.load %arg6[%c5, %c0_261, %c0_262] : memref<8x1x128xf32, #tpu.memory_space<vmem>>, vector<1x1x128xf32>
    %436 = vector.shape_cast %435 : vector<1x1x128xf32> to vector<1x128xf32>
    %437 = vector.broadcast %433 : vector<32x1xf32> to vector<32x128xf32>
    %438 = vector.broadcast %436 : vector<1x128xf32> to vector<32x128xf32>
    %439 = arith.mulf %437, %438 : vector<32x128xf32>
    %440 = arith.subf %430, %439 : vector<32x128xf32>
    %c5_263 = arith.constant 5 : index
    %c0_264 = arith.constant 0 : index
    %c0_265 = arith.constant 0 : index
    %441 = vector.load %arg5[%c5_263, %c0_264, %c0_265] : memref<8x1x128xf32, #tpu.memory_space<vmem>>, vector<1x1x128xf32>
    %442 = vector.shape_cast %441 : vector<1x1x128xf32> to vector<1x128xf32>
    %443 = vector.broadcast %442 : vector<1x128xf32> to vector<32x128xf32>
    %444 = arith.mulf %440, %443 : vector<32x128xf32>
    %445 = arith.addf %434, %444 : vector<32x128xf32>
    %c0_266 = arith.constant 0 : index
    %c0_267 = arith.constant 0 : index
    %446 = vector.load %arg8[%c0_266, %c0_267] : memref<32x128xf32, #tpu.memory_space<vmem>>, vector<32x128xf32>
    tpu.vector_store %arg8[%c0_266, %c0_267], %445 {strides = array<i32>} : memref<32x128xf32, #tpu.memory_space<vmem>>, vector<32x128xf32>,
    %c0_268 = arith.constant 0 : index
    %c768 = arith.constant 768 : index
    %447 = vector.load %arg3[%c0_268, %c768] : memref<32x1024xbf16, #tpu.memory_space<vmem>>, vector<32x128xbf16>
    %c96_269 = arith.constant 96 : index
    %c0_270 = arith.constant 0 : index
    %448 = vector.load %arg4[%c96_269, %c0_270] : memref<128x128xi32, #tpu.memory_space<vmem>>, vector<16x128xi32>
    %c15_i32_271 = arith.constant 15 : i32
    %449 = vector.broadcast %c15_i32_271 : i32 to vector<16x128xi32>
    %450 = arith.andi %448, %449 : vector<16x128xi32>
    %451 = arith.sitofp %450 : vector<16x128xi32> to vector<16x128xf32>
    %452 = arith.truncf %451 : vector<16x128xf32> to vector<16x128xbf16>
    %c0_272 = arith.constant 0 : index
    %c0_273 = arith.constant 0 : index
    %453 = vector.load %arg9[%c0_272, %c0_273] : memref<128x128xbf16, #tpu.memory_space<vmem>>, vector<16x128xbf16>
    tpu.vector_store %arg9[%c0_272, %c0_273], %452 {strides = array<i32>} : memref<128x128xbf16, #tpu.memory_space<vmem>>, vector<16x128xbf16>,
    %c4_i32_274 = arith.constant 4 : i32
    %454 = vector.broadcast %c4_i32_274 : i32 to vector<16x128xi32>
    %455 = arith.shrsi %448, %454 : vector<16x128xi32>
    %c15_i32_275 = arith.constant 15 : i32
    %456 = vector.broadcast %c15_i32_275 : i32 to vector<16x128xi32>
    %457 = arith.andi %455, %456 : vector<16x128xi32>
    %458 = arith.sitofp %457 : vector<16x128xi32> to vector<16x128xf32>
    %459 = arith.truncf %458 : vector<16x128xf32> to vector<16x128xbf16>
    %c16_276 = arith.constant 16 : index
    %c0_277 = arith.constant 0 : index
    %460 = vector.load %arg9[%c16_276, %c0_277] : memref<128x128xbf16, #tpu.memory_space<vmem>>, vector<16x128xbf16>
    tpu.vector_store %arg9[%c16_276, %c0_277], %459 {strides = array<i32>} : memref<128x128xbf16, #tpu.memory_space<vmem>>, vector<16x128xbf16>,
    %c8_i32_278 = arith.constant 8 : i32
    %461 = vector.broadcast %c8_i32_278 : i32 to vector<16x128xi32>
    %462 = arith.shrsi %448, %461 : vector<16x128xi32>
    %c15_i32_279 = arith.constant 15 : i32
    %463 = vector.broadcast %c15_i32_279 : i32 to vector<16x128xi32>
    %464 = arith.andi %462, %463 : vector<16x128xi32>
    %465 = arith.sitofp %464 : vector<16x128xi32> to vector<16x128xf32>
    %466 = arith.truncf %465 : vector<16x128xf32> to vector<16x128xbf16>
    %c32_280 = arith.constant 32 : index
    %c0_281 = arith.constant 0 : index
    %467 = vector.load %arg9[%c32_280, %c0_281] : memref<128x128xbf16, #tpu.memory_space<vmem>>, vector<16x128xbf16>
    tpu.vector_store %arg9[%c32_280, %c0_281], %466 {strides = array<i32>} : memref<128x128xbf16, #tpu.memory_space<vmem>>, vector<16x128xbf16>,
    %c12_i32_282 = arith.constant 12 : i32
    %468 = vector.broadcast %c12_i32_282 : i32 to vector<16x128xi32>
    %469 = arith.shrsi %448, %468 : vector<16x128xi32>
    %c15_i32_283 = arith.constant 15 : i32
    %470 = vector.broadcast %c15_i32_283 : i32 to vector<16x128xi32>
    %471 = arith.andi %469, %470 : vector<16x128xi32>
    %472 = arith.sitofp %471 : vector<16x128xi32> to vector<16x128xf32>
    %473 = arith.truncf %472 : vector<16x128xf32> to vector<16x128xbf16>
    %c48_284 = arith.constant 48 : index
    %c0_285 = arith.constant 0 : index
    %474 = vector.load %arg9[%c48_284, %c0_285] : memref<128x128xbf16, #tpu.memory_space<vmem>>, vector<16x128xbf16>
    tpu.vector_store %arg9[%c48_284, %c0_285], %473 {strides = array<i32>} : memref<128x128xbf16, #tpu.memory_space<vmem>>, vector<16x128xbf16>,
    %c16_i32_286 = arith.constant 16 : i32
    %475 = vector.broadcast %c16_i32_286 : i32 to vector<16x128xi32>
    %476 = arith.shrsi %448, %475 : vector<16x128xi32>
    %c15_i32_287 = arith.constant 15 : i32
    %477 = vector.broadcast %c15_i32_287 : i32 to vector<16x128xi32>
    %478 = arith.andi %476, %477 : vector<16x128xi32>
    %479 = arith.sitofp %478 : vector<16x128xi32> to vector<16x128xf32>
    %480 = arith.truncf %479 : vector<16x128xf32> to vector<16x128xbf16>
    %c64_288 = arith.constant 64 : index
    %c0_289 = arith.constant 0 : index
    %481 = vector.load %arg9[%c64_288, %c0_289] : memref<128x128xbf16, #tpu.memory_space<vmem>>, vector<16x128xbf16>
    tpu.vector_store %arg9[%c64_288, %c0_289], %480 {strides = array<i32>} : memref<128x128xbf16, #tpu.memory_space<vmem>>, vector<16x128xbf16>,
    %c20_i32_290 = arith.constant 20 : i32
    %482 = vector.broadcast %c20_i32_290 : i32 to vector<16x128xi32>
    %483 = arith.shrsi %448, %482 : vector<16x128xi32>
    %c15_i32_291 = arith.constant 15 : i32
    %484 = vector.broadcast %c15_i32_291 : i32 to vector<16x128xi32>
    %485 = arith.andi %483, %484 : vector<16x128xi32>
    %486 = arith.sitofp %485 : vector<16x128xi32> to vector<16x128xf32>
    %487 = arith.truncf %486 : vector<16x128xf32> to vector<16x128xbf16>
    %c80_292 = arith.constant 80 : index
    %c0_293 = arith.constant 0 : index
    %488 = vector.load %arg9[%c80_292, %c0_293] : memref<128x128xbf16, #tpu.memory_space<vmem>>, vector<16x128xbf16>
    tpu.vector_store %arg9[%c80_292, %c0_293], %487 {strides = array<i32>} : memref<128x128xbf16, #tpu.memory_space<vmem>>, vector<16x128xbf16>,
    %c24_i32_294 = arith.constant 24 : i32
    %489 = vector.broadcast %c24_i32_294 : i32 to vector<16x128xi32>
    %490 = arith.shrsi %448, %489 : vector<16x128xi32>
    %c15_i32_295 = arith.constant 15 : i32
    %491 = vector.broadcast %c15_i32_295 : i32 to vector<16x128xi32>
    %492 = arith.andi %490, %491 : vector<16x128xi32>
    %493 = arith.sitofp %492 : vector<16x128xi32> to vector<16x128xf32>
    %494 = arith.truncf %493 : vector<16x128xf32> to vector<16x128xbf16>
    %c96_296 = arith.constant 96 : index
    %c0_297 = arith.constant 0 : index
    %495 = vector.load %arg9[%c96_296, %c0_297] : memref<128x128xbf16, #tpu.memory_space<vmem>>, vector<16x128xbf16>
    tpu.vector_store %arg9[%c96_296, %c0_297], %494 {strides = array<i32>} : memref<128x128xbf16, #tpu.memory_space<vmem>>, vector<16x128xbf16>,
    %c28_i32_298 = arith.constant 28 : i32
    %496 = vector.broadcast %c28_i32_298 : i32 to vector<16x128xi32>
    %497 = arith.shrsi %448, %496 : vector<16x128xi32>
    %c15_i32_299 = arith.constant 15 : i32
    %498 = vector.broadcast %c15_i32_299 : i32 to vector<16x128xi32>
    %499 = arith.andi %497, %498 : vector<16x128xi32>
    %500 = arith.sitofp %499 : vector<16x128xi32> to vector<16x128xf32>
    %501 = arith.truncf %500 : vector<16x128xf32> to vector<16x128xbf16>
    %c112_300 = arith.constant 112 : index
    %c0_301 = arith.constant 0 : index
    %502 = vector.load %arg9[%c112_300, %c0_301] : memref<128x128xbf16, #tpu.memory_space<vmem>>, vector<16x128xbf16>
    tpu.vector_store %arg9[%c112_300, %c0_301], %501 {strides = array<i32>} : memref<128x128xbf16, #tpu.memory_space<vmem>>, vector<16x128xbf16>,
    %c0_302 = arith.constant 0 : index
    %c0_303 = arith.constant 0 : index
    %503 = vector.load %arg9[%c0_302, %c0_303] : memref<128x128xbf16, #tpu.memory_space<vmem>>, vector<128x128xbf16>
    %cst_304 = arith.constant dense<0.000000e+00> : vector<32x128xf32>
    %504 = tpu.matmul %447, %503, %cst_304 {dimension_numbers = #tpu.dot_dimension_numbers<[1], [0], [0], [1], [0, 0, 1, 1], [], []>} : vector<32x128xbf16>, vector<128x128xbf16>, vector<32x128xf32> -> vector<32x128xf32>
    %505 = arith.extf %447 : vector<32x128xbf16> to vector<32x128xf32>
    %cst_305 = arith.constant dense<0.000000e+00> : vector<32xf32>
    %506 = vector.multi_reduction <add>, %505, %cst_305 [1] : vector<32x128xf32> to vector<32xf32>
    %507 = vector.shape_cast %506 : vector<32xf32> to vector<32x1xf32>
    %c0_306 = arith.constant 0 : index
    %c0_307 = arith.constant 0 : index
    %508 = vector.load %arg8[%c0_306, %c0_307] : memref<32x128xf32, #tpu.memory_space<vmem>>, vector<32x128xf32>
    %c6 = arith.constant 6 : index
    %c0_308 = arith.constant 0 : index
    %c0_309 = arith.constant 0 : index
    %509 = vector.load %arg6[%c6, %c0_308, %c0_309] : memref<8x1x128xf32, #tpu.memory_space<vmem>>, vector<1x1x128xf32>
    %510 = vector.shape_cast %509 : vector<1x1x128xf32> to vector<1x128xf32>
    %511 = vector.broadcast %507 : vector<32x1xf32> to vector<32x128xf32>
    %512 = vector.broadcast %510 : vector<1x128xf32> to vector<32x128xf32>
    %513 = arith.mulf %511, %512 : vector<32x128xf32>
    %514 = arith.subf %504, %513 : vector<32x128xf32>
    %c6_310 = arith.constant 6 : index
    %c0_311 = arith.constant 0 : index
    %c0_312 = arith.constant 0 : index
    %515 = vector.load %arg5[%c6_310, %c0_311, %c0_312] : memref<8x1x128xf32, #tpu.memory_space<vmem>>, vector<1x1x128xf32>
    %516 = vector.shape_cast %515 : vector<1x1x128xf32> to vector<1x128xf32>
    %517 = vector.broadcast %516 : vector<1x128xf32> to vector<32x128xf32>
    %518 = arith.mulf %514, %517 : vector<32x128xf32>
    %519 = arith.addf %508, %518 : vector<32x128xf32>
    %c0_313 = arith.constant 0 : index
    %c0_314 = arith.constant 0 : index
    %520 = vector.load %arg8[%c0_313, %c0_314] : memref<32x128xf32, #tpu.memory_space<vmem>>, vector<32x128xf32>
    tpu.vector_store %arg8[%c0_313, %c0_314], %519 {strides = array<i32>} : memref<32x128xf32, #tpu.memory_space<vmem>>, vector<32x128xf32>,
    %c0_315 = arith.constant 0 : index
    %c896 = arith.constant 896 : index
    %521 = vector.load %arg3[%c0_315, %c896] : memref<32x1024xbf16, #tpu.memory_space<vmem>>, vector<32x128xbf16>
    %c112_316 = arith.constant 112 : index
    %c0_317 = arith.constant 0 : index
    %522 = vector.load %arg4[%c112_316, %c0_317] : memref<128x128xi32, #tpu.memory_space<vmem>>, vector<16x128xi32>
    %c15_i32_318 = arith.constant 15 : i32
    %523 = vector.broadcast %c15_i32_318 : i32 to vector<16x128xi32>
    %524 = arith.andi %522, %523 : vector<16x128xi32>
    %525 = arith.sitofp %524 : vector<16x128xi32> to vector<16x128xf32>
    %526 = arith.truncf %525 : vector<16x128xf32> to vector<16x128xbf16>
    %c0_319 = arith.constant 0 : index
    %c0_320 = arith.constant 0 : index
    %527 = vector.load %arg9[%c0_319, %c0_320] : memref<128x128xbf16, #tpu.memory_space<vmem>>, vector<16x128xbf16>
    tpu.vector_store %arg9[%c0_319, %c0_320], %526 {strides = array<i32>} : memref<128x128xbf16, #tpu.memory_space<vmem>>, vector<16x128xbf16>,
    %c4_i32_321 = arith.constant 4 : i32
    %528 = vector.broadcast %c4_i32_321 : i32 to vector<16x128xi32>
    %529 = arith.shrsi %522, %528 : vector<16x128xi32>
    %c15_i32_322 = arith.constant 15 : i32
    %530 = vector.broadcast %c15_i32_322 : i32 to vector<16x128xi32>
    %531 = arith.andi %529, %530 : vector<16x128xi32>
    %532 = arith.sitofp %531 : vector<16x128xi32> to vector<16x128xf32>
    %533 = arith.truncf %532 : vector<16x128xf32> to vector<16x128xbf16>
    %c16_323 = arith.constant 16 : index
    %c0_324 = arith.constant 0 : index
    %534 = vector.load %arg9[%c16_323, %c0_324] : memref<128x128xbf16, #tpu.memory_space<vmem>>, vector<16x128xbf16>
    tpu.vector_store %arg9[%c16_323, %c0_324], %533 {strides = array<i32>} : memref<128x128xbf16, #tpu.memory_space<vmem>>, vector<16x128xbf16>,
    %c8_i32_325 = arith.constant 8 : i32
    %535 = vector.broadcast %c8_i32_325 : i32 to vector<16x128xi32>
    %536 = arith.shrsi %522, %535 : vector<16x128xi32>
    %c15_i32_326 = arith.constant 15 : i32
    %537 = vector.broadcast %c15_i32_326 : i32 to vector<16x128xi32>
    %538 = arith.andi %536, %537 : vector<16x128xi32>
    %539 = arith.sitofp %538 : vector<16x128xi32> to vector<16x128xf32>
    %540 = arith.truncf %539 : vector<16x128xf32> to vector<16x128xbf16>
    %c32_327 = arith.constant 32 : index
    %c0_328 = arith.constant 0 : index
    %541 = vector.load %arg9[%c32_327, %c0_328] : memref<128x128xbf16, #tpu.memory_space<vmem>>, vector<16x128xbf16>
    tpu.vector_store %arg9[%c32_327, %c0_328], %540 {strides = array<i32>} : memref<128x128xbf16, #tpu.memory_space<vmem>>, vector<16x128xbf16>,
    %c12_i32_329 = arith.constant 12 : i32
    %542 = vector.broadcast %c12_i32_329 : i32 to vector<16x128xi32>
    %543 = arith.shrsi %522, %542 : vector<16x128xi32>
    %c15_i32_330 = arith.constant 15 : i32
    %544 = vector.broadcast %c15_i32_330 : i32 to vector<16x128xi32>
    %545 = arith.andi %543, %544 : vector<16x128xi32>
    %546 = arith.sitofp %545 : vector<16x128xi32> to vector<16x128xf32>
    %547 = arith.truncf %546 : vector<16x128xf32> to vector<16x128xbf16>
    %c48_331 = arith.constant 48 : index
    %c0_332 = arith.constant 0 : index
    %548 = vector.load %arg9[%c48_331, %c0_332] : memref<128x128xbf16, #tpu.memory_space<vmem>>, vector<16x128xbf16>
    tpu.vector_store %arg9[%c48_331, %c0_332], %547 {strides = array<i32>} : memref<128x128xbf16, #tpu.memory_space<vmem>>, vector<16x128xbf16>,
    %c16_i32_333 = arith.constant 16 : i32
    %549 = vector.broadcast %c16_i32_333 : i32 to vector<16x128xi32>
    %550 = arith.shrsi %522, %549 : vector<16x128xi32>
    %c15_i32_334 = arith.constant 15 : i32
    %551 = vector.broadcast %c15_i32_334 : i32 to vector<16x128xi32>
    %552 = arith.andi %550, %551 : vector<16x128xi32>
    %553 = arith.sitofp %552 : vector<16x128xi32> to vector<16x128xf32>
    %554 = arith.truncf %553 : vector<16x128xf32> to vector<16x128xbf16>
    %c64_335 = arith.constant 64 : index
    %c0_336 = arith.constant 0 : index
    %555 = vector.load %arg9[%c64_335, %c0_336] : memref<128x128xbf16, #tpu.memory_space<vmem>>, vector<16x128xbf16>
    tpu.vector_store %arg9[%c64_335, %c0_336], %554 {strides = array<i32>} : memref<128x128xbf16, #tpu.memory_space<vmem>>, vector<16x128xbf16>,
    %c20_i32_337 = arith.constant 20 : i32
    %556 = vector.broadcast %c20_i32_337 : i32 to vector<16x128xi32>
    %557 = arith.shrsi %522, %556 : vector<16x128xi32>
    %c15_i32_338 = arith.constant 15 : i32
    %558 = vector.broadcast %c15_i32_338 : i32 to vector<16x128xi32>
    %559 = arith.andi %557, %558 : vector<16x128xi32>
    %560 = arith.sitofp %559 : vector<16x128xi32> to vector<16x128xf32>
    %561 = arith.truncf %560 : vector<16x128xf32> to vector<16x128xbf16>
    %c80_339 = arith.constant 80 : index
    %c0_340 = arith.constant 0 : index
    %562 = vector.load %arg9[%c80_339, %c0_340] : memref<128x128xbf16, #tpu.memory_space<vmem>>, vector<16x128xbf16>
    tpu.vector_store %arg9[%c80_339, %c0_340], %561 {strides = array<i32>} : memref<128x128xbf16, #tpu.memory_space<vmem>>, vector<16x128xbf16>,
    %c24_i32_341 = arith.constant 24 : i32
    %563 = vector.broadcast %c24_i32_341 : i32 to vector<16x128xi32>
    %564 = arith.shrsi %522, %563 : vector<16x128xi32>
    %c15_i32_342 = arith.constant 15 : i32
    %565 = vector.broadcast %c15_i32_342 : i32 to vector<16x128xi32>
    %566 = arith.andi %564, %565 : vector<16x128xi32>
    %567 = arith.sitofp %566 : vector<16x128xi32> to vector<16x128xf32>
    %568 = arith.truncf %567 : vector<16x128xf32> to vector<16x128xbf16>
    %c96_343 = arith.constant 96 : index
    %c0_344 = arith.constant 0 : index
    %569 = vector.load %arg9[%c96_343, %c0_344] : memref<128x128xbf16, #tpu.memory_space<vmem>>, vector<16x128xbf16>
    tpu.vector_store %arg9[%c96_343, %c0_344], %568 {strides = array<i32>} : memref<128x128xbf16, #tpu.memory_space<vmem>>, vector<16x128xbf16>,
    %c28_i32_345 = arith.constant 28 : i32
    %570 = vector.broadcast %c28_i32_345 : i32 to vector<16x128xi32>
    %571 = arith.shrsi %522, %570 : vector<16x128xi32>
    %c15_i32_346 = arith.constant 15 : i32
    %572 = vector.broadcast %c15_i32_346 : i32 to vector<16x128xi32>
    %573 = arith.andi %571, %572 : vector<16x128xi32>
    %574 = arith.sitofp %573 : vector<16x128xi32> to vector<16x128xf32>
    %575 = arith.truncf %574 : vector<16x128xf32> to vector<16x128xbf16>
    %c112_347 = arith.constant 112 : index
    %c0_348 = arith.constant 0 : index
    %576 = vector.load %arg9[%c112_347, %c0_348] : memref<128x128xbf16, #tpu.memory_space<vmem>>, vector<16x128xbf16>
    tpu.vector_store %arg9[%c112_347, %c0_348], %575 {strides = array<i32>} : memref<128x128xbf16, #tpu.memory_space<vmem>>, vector<16x128xbf16>,
    %c0_349 = arith.constant 0 : index
    %c0_350 = arith.constant 0 : index
    %577 = vector.load %arg9[%c0_349, %c0_350] : memref<128x128xbf16, #tpu.memory_space<vmem>>, vector<128x128xbf16>
    %cst_351 = arith.constant dense<0.000000e+00> : vector<32x128xf32>
    %578 = tpu.matmul %521, %577, %cst_351 {dimension_numbers = #tpu.dot_dimension_numbers<[1], [0], [0], [1], [0, 0, 1, 1], [], []>} : vector<32x128xbf16>, vector<128x128xbf16>, vector<32x128xf32> -> vector<32x128xf32>
    %579 = arith.extf %521 : vector<32x128xbf16> to vector<32x128xf32>
    %cst_352 = arith.constant dense<0.000000e+00> : vector<32xf32>
    %580 = vector.multi_reduction <add>, %579, %cst_352 [1] : vector<32x128xf32> to vector<32xf32>
    %581 = vector.shape_cast %580 : vector<32xf32> to vector<32x1xf32>
    %c0_353 = arith.constant 0 : index
    %c0_354 = arith.constant 0 : index
    %582 = vector.load %arg8[%c0_353, %c0_354] : memref<32x128xf32, #tpu.memory_space<vmem>>, vector<32x128xf32>
    %c7 = arith.constant 7 : index
    %c0_355 = arith.constant 0 : index
    %c0_356 = arith.constant 0 : index
    %583 = vector.load %arg6[%c7, %c0_355, %c0_356] : memref<8x1x128xf32, #tpu.memory_space<vmem>>, vector<1x1x128xf32>
    %584 = vector.shape_cast %583 : vector<1x1x128xf32> to vector<1x128xf32>
    %585 = vector.broadcast %581 : vector<32x1xf32> to vector<32x128xf32>
    %586 = vector.broadcast %584 : vector<1x128xf32> to vector<32x128xf32>
    %587 = arith.mulf %585, %586 : vector<32x128xf32>
    %588 = arith.subf %578, %587 : vector<32x128xf32>
    %c7_357 = arith.constant 7 : index
    %c0_358 = arith.constant 0 : index
    %c0_359 = arith.constant 0 : index
    %589 = vector.load %arg5[%c7_357, %c0_358, %c0_359] : memref<8x1x128xf32, #tpu.memory_space<vmem>>, vector<1x1x128xf32>
    %590 = vector.shape_cast %589 : vector<1x1x128xf32> to vector<1x128xf32>
    %591 = vector.broadcast %590 : vector<1x128xf32> to vector<32x128xf32>
    %592 = arith.mulf %588, %591 : vector<32x128xf32>
    %593 = arith.addf %582, %592 : vector<32x128xf32>
    %c0_360 = arith.constant 0 : index
    %c0_361 = arith.constant 0 : index
    %594 = vector.load %arg8[%c0_360, %c0_361] : memref<32x128xf32, #tpu.memory_space<vmem>>, vector<32x128xf32>
    tpu.vector_store %arg8[%c0_360, %c0_361], %593 {strides = array<i32>} : memref<32x128xf32, #tpu.memory_space<vmem>>, vector<32x128xf32>,
    return
  }
  func.func @transform_0(%arg0: i32, %arg1: i32, %arg2: i32) -> (i32, i32) {
    %c0_i32 = arith.constant 0 : i32
    return %arg0, %arg2 : i32, i32
  }
  func.func @transform_1(%arg0: i32, %arg1: i32, %arg2: i32) -> (i32, i32) {
    %c0_i32 = arith.constant 0 : i32
    return %arg2, %arg1 : i32, i32
  }
  func.func @transform_2(%arg0: i32, %arg1: i32, %arg2: i32) -> (i32, i32, i32) {
    %c0_i32 = arith.constant 0 : i32
    %c0_i32_0 = arith.constant 0 : i32
    return %arg2, %c0_i32, %arg1 : i32, i32, i32
  }
  func.func @transform_3(%arg0: i32, %arg1: i32, %arg2: i32) -> (i32, i32, i32) {
    %c0_i32 = arith.constant 0 : i32
    %c0_i32_0 = arith.constant 0 : i32
    return %arg2, %c0_i32, %arg1 : i32, i32, i32
  }
  func.func @transform_4(%arg0: i32, %arg1: i32, %arg2: i32) -> (i32, i32) {
    %c0_i32 = arith.constant 0 : i32
    %c0_i32_0 = arith.constant 0 : i32
    return %c0_i32, %arg1 : i32, i32
  }
  func.func @transform_5(%arg0: i32, %arg1: i32, %arg2: i32) -> (i32, i32) {
    %c0_i32 = arith.constant 0 : i32
    return %arg0, %arg1 : i32, i32
  }
}

</mosaic_0001>

<bundles_post_ra>
// kernel: weight_only_qlinear.1
= control target key start
LH: loop header
LB: loop body
LE: loop exit
PB: predicated region body
PF: predicated region fallthrough
CT: control target
= control target key end

     0   :  { %10 = vsyncpa [#allocation7], 0  ;;  %s4335_s0 = inlined_call_operand.vmem [shape: bf16[32,1024], index: 0, kind: input, shape index: {}]   ;;  %s4336_s1 = inlined_call_operand.vmem [shape: s32[128,256], index: 1, kind: input, shape index: {}]   ;;  %s4337_s2 = inlined_call_operand.vmem [shape: f32[8,1,256], index: 2, kind: input, shape index: {}]   ;;  %s4338_s3 = inlined_call_operand.vmem [shape: f32[8,1,256], index: 3, kind: input, shape index: {}]   ;;  %s4339_s4 = inlined_call_operand.vmem [shape: f32[1,256], index: 4, kind: input, shape index: {}]   ;;  %s4340_s5 = inlined_call_operand.hbm [shape: f32[32,256], index: 5, kind: output, shape index: {}]  }
   0x1   :  { %12 = vsyncpa [#allocation7 + $0x1], 0  ;;  %s3584_s18 = smov 0   ;;  %s3586_s19 = smov 0  }
   0x2   :  { %s3588_s20 = smov 0   ;;  %s3590_s21 = smov 0  }
   0x3   :  { %s3592_s22 = smov 0   ;;  %s3594_s23 = smov 0  }
   0x4 LB: > { %s2572_s24 = sadd.s32 4294967295, %s3549_s23   ;;  %s2573_s25 = sadd.s32 4294967294, %s3549_s23   ;;  %s3549_s23 = sphi %s3594_s23, %s18_s23   ;;  %s3545_s22 = sphi %s3592_s22, %s4348_s22   ;;  %s3541_s21 = sphi %s3590_s21, %s4347_s21   ;;  %s3537_s20 = sphi %s3588_s20, %s4346_s20   ;;  %s3533_s19 = sphi %s3586_s19, %s4345_s19   ;;  %s3529_s18 = sphi %s3584_s18, %s4344_s18  }
   0x5   : > { %s33_s26 = sadd.s32 1, %s3545_s22  ;;  %s74_s27 = sadd.s32 1, %s3537_s20 }
   0x6   : > { %p35_p0 = scmp.ge.s32.totalorder %s33_s26, 2  ;;  %p81_p1 = scmp.ne.s32.totalorder %s3537_s20, %s3533_s19 }
   0x7   : > { %p82_p2 = scmp.eq.s32.totalorder %s3549_s23, 0  ;;  %p195_p3 = scmp.eq.s32.totalorder %s2572_s24, 1 }
   0x8   : > { %s4350_s26 = smov (%p35_p0, %s33_s26), 0  ;;  %p200_p6 = scmp.ne.s32.totalorder %s3533_s19, %s3529_s18 }
   0x9   : > { %p3623_p4 = por %p82_p2, %p81_p1  ;;  %p3627_p5 = por %p195_p3, %p81_p1 }
   0xa   : > { %s70_s30 = ssub.s32 %s3545_s22, %s4350_s26  ;;  %p201_p8 = scmp.eq.s32.totalorder %s2573_s25, 1 }
   0xb   : > { %p72_p7 = scmp.eq.s32.totalorder %s70_s30, 0  ;;  %p2576_p10 = scmp.ge.s32.totalorder %s3549_s23, 2 }
   0xc   : > { %p3638_p9 = por %p201_p8, %p200_p6 }
   0xd   : > { %s3636_s6 = scalar_select %p72_p7, %s3537_s20, %s74_s27  }
   0xe   : > { %232 = sbr.rel (%p2576_p10) target bundleno = 63 (0x3f), region = 20 }
  0x13   : > { %235 = sbr.rel (!%p3623_p4) target bundleno = 39 (0x27), region = 24  ;;  %s237_s8 = sand.u32 (%p3623_p4), 1, %s3537_s20  }
  0x14   : > { %s2578_s9 = sshll.u32 (%p3623_p4), %s3545_s22, 3  ;;  %s2577_s10 = sshll.u32 (%p3623_p4), %s237_s8, 7 }
  0x15   : > { %s3652_s13 = scalar_lea.vmem (%p3623_p4), %s4336_s1, %s2578_s9  ;;  %s239_s14 = scalar_lea.vmem (%p3623_p4), [#allocation3], %s2577_s10 }
  0x16   : > { %v303_v0 = vld [vmem:[%s3652_s13] sm:$0xff] (%p3623_p4)  ;;  %v305_v1 = vld [vmem:[%s3652_s13 + $0x10] sm:$0xff] (%p3623_p4) }
  0x17   : > { %v307_v2 = vld [vmem:[%s3652_s13 + $0x20] sm:$0xff] (%p3623_p4)  ;;  %304 = vst [vmem:[%s239_s14] sm:$0xff] (%p3623_p4), %v303_v0  ;;  %v309_v3 = vld [vmem:[%s3652_s13 + $0x30] sm:$0xff] (%p3623_p4) }
  0x18   : > { %306 = vst [vmem:[%s239_s14 + $0x8] sm:$0xff] %v305_v1  ;;  %v311_v4 = vld [vmem:[%s3652_s13 + $0x40] sm:$0xff]  ;;  %v313_v5 = vld [vmem:[%s3652_s13 + $0x50] sm:$0xff] }
  0x19   : > { %308 = vst [vmem:[%s239_s14 + $0x10] sm:$0xff] %v307_v2  ;;  %v315_v6 = vld [vmem:[%s3652_s13 + $0x60] sm:$0xff]  ;;  %v317_v7 = vld [vmem:[%s3652_s13 + $0x70] sm:$0xff] }
  0x1a   : > { %310 = vst [vmem:[%s239_s14 + $0x18] sm:$0xff] %v309_v3  ;;  %v319_v8 = vld [vmem:[%s3652_s13 + $0x80] sm:$0xff]  ;;  %v321_v9 = vld [vmem:[%s3652_s13 + $0x90] sm:$0xff] }
  0x1b   : > { %312 = vst [vmem:[%s239_s14 + $0x20] sm:$0xff] %v311_v4  ;;  %v323_v10 = vld [vmem:[%s3652_s13 + $0xa0] sm:$0xff]  ;;  %v325_v11 = vld [vmem:[%s3652_s13 + $0xb0] sm:$0xff] }
  0x1c   : > { %314 = vst [vmem:[%s239_s14 + $0x28] sm:$0xff] %v313_v5  ;;  %v327_v12 = vld [vmem:[%s3652_s13 + $0xc0] sm:$0xff]  ;;  %v329_v13 = vld [vmem:[%s3652_s13 + $0xd0] sm:$0xff] }
  0x1d   : > { %316 = vst [vmem:[%s239_s14 + $0x30] sm:$0xff] %v315_v6  ;;  %v331_v14 = vld [vmem:[%s3652_s13 + $0xe0] sm:$0xff]  ;;  %v333_v15 = vld [vmem:[%s3652_s13 + $0xf0] sm:$0xff] }
  0x1e   : > { %318 = vst [vmem:[%s239_s14 + $0x38] sm:$0xff] %v317_v7 }
  0x1f   : > { %320 = vst [vmem:[%s239_s14 + $0x40] sm:$0xff] %v319_v8 }
  0x20   : > { %322 = vst [vmem:[%s239_s14 + $0x48] sm:$0xff] %v321_v9 }
  0x21   : > { %324 = vst [vmem:[%s239_s14 + $0x50] sm:$0xff] %v323_v10 }
  0x22   : > { %326 = vst [vmem:[%s239_s14 + $0x58] sm:$0xff] %v325_v11 }
  0x23   : > { %328 = vst [vmem:[%s239_s14 + $0x60] sm:$0xff] %v327_v12 }
  0x24   : > { %330 = vst [vmem:[%s239_s14 + $0x68] sm:$0xff] %v329_v13 }
  0x25   : > { %332 = vst [vmem:[%s239_s14 + $0x70] sm:$0xff] %v331_v14 }
  0x26   : > { %334 = vst [vmem:[%s239_s14 + $0x78] sm:$0xff] %v333_v15 }
  0x27 PF: > { %340 = sbr.rel (!%p3623_p4) target bundleno = 51 (0x33), region = 62  ;;  %s342_s15 = sand.u32 (%p3623_p4), 1, %s3537_s20  }
  0x28   : > { %s348_s24 = scalar_lea.vmem (%p3623_p4), %s4337_s2, %s3545_s22  ;;  %s2579_s25 = sshll.u32 (%p3623_p4), %s342_s15, 3 }
  0x29   : > { %v365_v16 = vld [vmem:[%s348_s24] sm:$0x1] (%p3623_p4)  ;;  %v367_v17 = vld [vmem:[%s348_s24 + $0x2] sm:$0x1] (%p3623_p4)  ;;  %v369_v18 = vld [vmem:[%s348_s24 + $0x4] sm:$0x1] (%p3623_p4) }
  0x2a   : > { %s344_s27 = scalar_lea.vmem (%p3623_p4), [#allocation4], %s2579_s25  ;;  %v371_v19 = vld [vmem:[%s348_s24 + $0x6] sm:$0x1] (%p3623_p4)  ;;  %v373_v20 = vld [vmem:[%s348_s24 + $0x8] sm:$0x1] (%p3623_p4) }
  0x2b   : > { %366 = vst [vmem:[%s344_s27] sm:$0x1] (%p3623_p4), %v365_v16  ;;  %v375_v21 = vld [vmem:[%s348_s24 + $0xa] sm:$0x1] (%p3623_p4)  ;;  %v377_v22 = vld [vmem:[%s348_s24 + $0xc] sm:$0x1] (%p3623_p4) }
  0x2c   : > { %368 = vst [vmem:[%s344_s27 + $0x1] sm:$0x1] %v367_v17  ;;  %v379_v23 = vld [vmem:[%s348_s24 + $0xe] sm:$0x1] }
  0x2d   : > { %370 = vst [vmem:[%s344_s27 + $0x2] sm:$0x1] %v369_v18 }
  0x2e   : > { %372 = vst [vmem:[%s344_s27 + $0x3] sm:$0x1] %v371_v19 }
  0x2f   : > { %374 = vst [vmem:[%s344_s27 + $0x4] sm:$0x1] %v373_v20 }
  0x30   : > { %376 = vst [vmem:[%s344_s27 + $0x5] sm:$0x1] %v375_v21 }
  0x31   : > { %378 = vst [vmem:[%s344_s27 + $0x6] sm:$0x1] %v377_v22 }
  0x32   : > { %380 = vst [vmem:[%s344_s27 + $0x7] sm:$0x1] %v379_v23 }
  0x33 PF: > { %420 = sbr.rel (!%p3623_p4) target bundleno = 63 (0x3f), region = 103  ;;  %s422_s30 = sand.u32 (%p3623_p4), 1, %s3537_s20  }
  0x34   : > { %s428_s10 = scalar_lea.vmem (%p3623_p4), %s4338_s3, %s3545_s22  ;;  %s2580_s11 = sshll.u32 (%p3623_p4), %s422_s30, 3 }
  0x35   : > { %v445_v24 = vld [vmem:[%s428_s10] sm:$0x1] (%p3623_p4)  ;;  %v447_v25 = vld [vmem:[%s428_s10 + $0x2] sm:$0x1] (%p3623_p4)  ;;  %v449_v26 = vld [vmem:[%s428_s10 + $0x4] sm:$0x1] (%p3623_p4) }
  0x36   : > { %s424_s12 = scalar_lea.vmem (%p3623_p4), [#allocation5], %s2580_s11  ;;  %v451_v27 = vld [vmem:[%s428_s10 + $0x6] sm:$0x1] (%p3623_p4)  ;;  %v453_v28 = vld [vmem:[%s428_s10 + $0x8] sm:$0x1] (%p3623_p4) }
  0x37   : > { %446 = vst [vmem:[%s424_s12] sm:$0x1] (%p3623_p4), %v445_v24  ;;  %v455_v29 = vld [vmem:[%s428_s10 + $0xa] sm:$0x1] (%p3623_p4)  ;;  %v457_v30 = vld [vmem:[%s428_s10 + $0xc] sm:$0x1] (%p3623_p4) }
  0x38   : > { %448 = vst [vmem:[%s424_s12 + $0x1] sm:$0x1] %v447_v25  ;;  %v459_v31 = vld [vmem:[%s428_s10 + $0xe] sm:$0x1] }
  0x39   : > { %450 = vst [vmem:[%s424_s12 + $0x2] sm:$0x1] %v449_v26 }
  0x3a   : > { %452 = vst [vmem:[%s424_s12 + $0x3] sm:$0x1] %v451_v27 }
  0x3b   : > { %454 = vst [vmem:[%s424_s12 + $0x4] sm:$0x1] %v453_v28 }
  0x3c   : > { %456 = vst [vmem:[%s424_s12 + $0x5] sm:$0x1] %v455_v29 }
  0x3d   : > { %458 = vst [vmem:[%s424_s12 + $0x6] sm:$0x1] %v457_v30 }
  0x3e   : > { %460 = vst [vmem:[%s424_s12 + $0x7] sm:$0x1] %v459_v31 }
  0x3f PF: > { %p2581_p11 = scmp.ge.s32.totalorder %s3549_s23, 1  ;;  %p505_p12 = scmp.lt.s32.totalorder %s3549_s23, 3 }
  0x41   : > { %p506_p13 = pnand %p2581_p11, %p505_p12 }
  0x42   : > { %s3687_s28 = sand.u32 (!%p506_p13), 1, %s3533_s19   ;;  %p589_p0 = scmp.lt.s32.totalorder (!%p506_p13), %s3541_s21, 1 }
  0x43   : > { %509 = sbr.rel (%p506_p13) target bundleno = 373 (0x175), region = 148  ;;  %s2582_s13 = sshll.u32 (!%p506_p13), %s3687_s28, 7 }
  0x44   : > { %s3690_s14 = scalar_lea.vmem (!%p506_p13), [#allocation3], %s2582_s13  ;;  %s2583_s17 = sshll.u32 (!%p506_p13), %s3687_s28, 3 }
  0x45   : > { %s3803_s27 = scalar_lea.vmem (!%p506_p13), [#allocation5], %s2583_s17  ;;  %s3830_s9 = scalar_lea.vmem (!%p506_p13), [#allocation4], %s2583_s17 }
  0x46   : > { %s2404_s8 = scalar_lea.sflag (!%p506_p13), [#allocation7], %s3687_s28  ;;  %s3491_s15 = scalar_lea.hbm (!%p506_p13), %s4340_s5, 64 }
  0x48   : > { %v3693_v32 = vld [vmem:[%s3690_s14] sm:$0xff]  ;;  %v3696_v33 = vld [vmem:[%s3690_s14 + $0x8] sm:$0xff]  ;;  %v3699_v34 = vld [vmem:[%s3690_s14 + $0x10] sm:$0xff]  ;;  %s3834_s10 = scalar_select %p589_p0, %s3541_s21, 1 }
  0x49   : > { %v2586_v35 = vshrl.u32 %v3693_v32, 28  ;;  %v2587_v36 = vshrl.u32 %v3696_v33, 28  ;;  %v3704_v37 = vld [vmem:[%s3690_s14 + $0x18] sm:$0xff]  ;;  %v2628_v38 = vshrl.u32 %v3699_v34, 28  ;;  %v669_v39 = vshra.s32 %v3693_v32, 24  ;;  %v3715_v56 = vld [vmem:[%s3690_s14 + $0x20] sm:$0xff] }
  0x4a   : > { %v2629_v40 = vshrl.u32 %v3704_v37, 28  ;;  %v670_v41 = vshra.s32 %v3696_v33, 24  ;;  %v892_v42 = vshra.s32 %v3699_v34, 24  ;;  %v893_v43 = vshra.s32 %v3704_v37, 24  ;;  %v3718_v57 = vld [vmem:[%s3690_s14 + $0x28] sm:$0xff]  ;;  %s591_s30 = scalar_lea.vmem %s4339_s4, %s3834_s10  ;;  %s2937_s10 = sshll.u32 %s3541_s21, 3 }
  0x4b   : > { %v683_v44 = vcvt.s32.f32 %v2586_v35  ;;  %v684_v45 = vcvt.s32.f32 %v2587_v36  ;;  %v906_v46 = vcvt.s32.f32 %v2628_v38  ;;  %v671_v47 = vand.u32 15, %v669_v39  ;;  %s2417_s24 = scalar_lea.hbm %s4340_s5, %s2937_s10 }
  0x4c   : > { %v907_v48 = vcvt.s32.f32 %v2629_v40  ;;  %v672_v49 = vand.u32 15, %v670_v41  ;;  %v894_v50 = vand.u32 15, %v892_v42  ;;  %v895_v51 = vand.u32 15, %v893_v43  ;;  %s2420_s21 = sshll.u32 %s2417_s24, 4  ;;  %s2421_s21 = int_to_ptr.hbm [resolvable:$true] %s2420_s21 }
  0x4d   : > { %v3058_v52 = vpack.c.bf16 %v684_v45, %v683_v44  ;;  %v673_v53 = vcvt.s32.f32 %v671_v47  ;;  %v659_v54 = vshra.s32 %v3693_v32, 20  ;;  %v660_v55 = vshra.s32 %v3696_v33, 20  ;;  %s3485_s11 = sshra.s32 %s2421_s21, 4  ;;  %s3486_s11 = int_to_ptr.hbm [resolvable:$true] %s3485_s11 }
  0x4e   : > { %v3098_v58 = vpack.c.bf16 %v907_v48, %v906_v46  ;;  %v674_v59 = vcvt.s32.f32 %v672_v49  ;;  %v896_v60 = vcvt.s32.f32 %v894_v50  ;;  %v897_v61 = vcvt.s32.f32 %v895_v51  ;;  %v3741_v48 = vld [vmem:[%s3690_s14 + $0x30] sm:$0xff]  ;;  %v3744_v49 = vld [vmem:[%s3690_s14 + $0x38] sm:$0xff]  ;;  %s3487_s12 = scalar_lea.hbm %s3486_s11, 32  ;;  %p3492_p4 = scmp.lt.s32.totalorder %s3486_s11, %s4340_s5 }
  0x4f   : > { %3346 = vst [vmem:[#allocation2 + $0x38] sm:$0xff] %v3058_v52   ;;  %v661_v62 = vand.u32 15, %v659_v54  ;;  %v662_v63 = vand.u32 15, %v660_v55  ;;  %v882_v0 = vshra.s32 %v3699_v34, 20  ;;  %v883_v1 = vshra.s32 %v3704_v37, 20  ;;  %p3488_p1 = scmp.ne.s32.totalorder %s3486_s11, %s3487_s12  ;;  %p3493_p6 = scmp.lt.s32.totalorder %s3491_s15, %s3487_s12 }
  0x50   : > { %v3053_v2 = vpack.c.bf16 %v674_v59, %v673_v53  ;;  %v3093_v3 = vpack.c.bf16 %v897_v61, %v896_v60  ;;  %v2672_v4 = vshrl.u32 %v3715_v56, 28  ;;  %v2673_v5 = vshrl.u32 %v3718_v57, 28 }
  0x51   : > { %v663_v6 = vcvt.s32.f32 %v661_v62  ;;  %v664_v7 = vcvt.s32.f32 %v662_v63  ;;  %v884_v8 = vand.u32 15, %v882_v0  ;;  %v885_v9 = vand.u32 15, %v883_v1  ;;  %p3489_p2 = pnand %p3488_p1, %p3627_p5  ;;  %p3494_p7 = por %p3493_p6, %p3492_p4 }
  0x52   : > { %3345 = vst [vmem:[#allocation2 + $0x28] sm:$0xff] %v3053_v2   ;;  %v3724_v10 = vcvt.s32.f32 %v2672_v4  ;;  %v3726_v11 = vcvt.s32.f32 %v2673_v5  ;;  %v649_v12 = vshra.s32 %v3693_v32, 16  ;;  %v650_v13 = vshra.s32 %v3696_v33, 16 }
  0x53   : > { %v3048_v14 = vpack.c.bf16 %v664_v7, %v663_v6  ;;  %v886_v15 = vcvt.s32.f32 %v884_v8  ;;  %v887_v16 = vcvt.s32.f32 %v885_v9  ;;  %v872_v17 = vshra.s32 %v3699_v34, 16  ;;  %p3490_p3 = pneg %p3489_p2 }
  0x54   : > { %v3138_v18 = vpack.c.bf16 %v3726_v11, %v3724_v10  ;;  %v651_v19 = vand.u32 15, %v649_v12  ;;  %v652_v20 = vand.u32 15, %v650_v13  ;;  %v873_v21 = vshra.s32 %v3704_v37, 16 }
  0x55   : > { %3344 = vst [vmem:[#allocation2 + $0x20] sm:$0xff] %v3048_v14   ;;  %v3088_v22 = vpack.c.bf16 %v887_v16, %v886_v15  ;;  %v874_v23 = vand.u32 15, %v872_v17  ;;  %v1117_v24 = vshra.s32 %v3715_v56, 24  ;;  %v1118_v25 = vshra.s32 %v3718_v57, 24  ;;  %p3495_p8 = pnand %p3494_p7, %p3490_p3 }
  0x56   : > { %v2949_v26 = vld [vmem:[#allocation2 + $0x38] sm:$0xff]  ;;  %v653_v27 = vcvt.s32.f32 %v651_v19  ;;  %v654_v28 = vcvt.s32.f32 %v652_v20  ;;  %v875_v29 = vand.u32 15, %v873_v21  ;;  %v639_v30 = vshra.s32 %v3693_v32, 12 }
  0x57   : > { %3353 = vst [vmem:[#allocation2 + $0x38] sm:$0xff] %v3098_v58   ;;  %v876_v31 = vcvt.s32.f32 %v874_v23  ;;  %v1119_v35 = vand.u32 15, %v1117_v24  ;;  %v1120_v36 = vand.u32 15, %v1118_v25  ;;  %v640_v38 = vshra.s32 %v3696_v33, 12  ;;  %765 = vmatpush.bf16.msra.mxu0 %v2949_v26 }
  0x58   : > { %v3043_v39 = vpack.c.bf16 %v654_v28, %v653_v27  ;;  %v877_v40 = vcvt.s32.f32 %v875_v29  ;;  %v641_v41 = vand.u32 15, %v639_v30  ;;  %v862_v42 = vshra.s32 %v3699_v34, 12 }
  0x59   : > { %v2948_v43 = vld [vmem:[#allocation2 + $0x28] sm:$0xff]  ;;  %v1121_v44 = vcvt.s32.f32 %v1119_v35  ;;  %v1122_v45 = vcvt.s32.f32 %v1120_v36  ;;  %v642_v46 = vand.u32 15, %v640_v38  ;;  %v863_v47 = vshra.s32 %v3704_v37, 12 }
  0x5a   : > { %3352 = vst [vmem:[#allocation2 + $0x28] sm:$0xff] %v3093_v3   ;;  %v3083_v50 = vpack.c.bf16 %v877_v40, %v876_v31  ;;  %v643_v51 = vcvt.s32.f32 %v641_v41  ;;  %v864_v52 = vand.u32 15, %v862_v42  ;;  %v1107_v53 = vshra.s32 %v3715_v56, 20 }
  0x5b   : > { %3343 = vst [vmem:[#allocation2 + $0x8] sm:$0xff] %v3043_v39   ;;  %v3133_v54 = vpack.c.bf16 %v1122_v45, %v1121_v44  ;;  %v644_v55 = vcvt.s32.f32 %v642_v46  ;;  %v865_v58 = vand.u32 15, %v863_v47  ;;  %v1108_v59 = vshra.s32 %v3718_v57, 20  ;;  %766 = vmatpush.bf16.msra.mxu0 %v2948_v43 }
  0x5c   : > { %v2947_v60 = vld [vmem:[#allocation2 + $0x20] sm:$0xff]  ;;  %v866_v61 = vcvt.s32.f32 %v864_v52  ;;  %v1109_v62 = vand.u32 15, %v1107_v53  ;;  %v2716_v63 = vshrl.u32 %v3741_v48, 28  ;;  %v2717_v0 = vshrl.u32 %v3744_v49, 28 }
  0x5d   : > { %3351 = vst [vmem:[#allocation2 + $0x20] sm:$0xff] %v3088_v22   ;;  %v3038_v1 = vpack.c.bf16 %v644_v55, %v643_v51  ;;  %v867_v2 = vcvt.s32.f32 %v865_v58  ;;  %v1110_v3 = vand.u32 15, %v1108_v59  ;;  %v629_v4 = vshra.s32 %v3693_v32, 8 }
  0x5e   : > { %v2959_v5 = vld [vmem:[#allocation2 + $0x38] sm:$0xff]  ;;  %v1111_v6 = vcvt.s32.f32 %v1109_v62  ;;  %v1356_v7 = vcvt.s32.f32 %v2716_v63  ;;  %v1357_v8 = vcvt.s32.f32 %v2717_v0  ;;  %v630_v9 = vshra.s32 %v3696_v33, 8  ;;  %v3765_v63 = vld [vmem:[%s3690_s14 + $0x40] sm:$0xff] }
  0x5f   : > { %3360 = vst [vmem:[#allocation2 + $0x38] sm:$0xff] %v3138_v18   ;;  %v3078_v10 = vpack.c.bf16 %v867_v2, %v866_v61  ;;  %v1112_v11 = vcvt.s32.f32 %v1110_v3  ;;  %v631_v12 = vand.u32 15, %v629_v4  ;;  %v852_v13 = vshra.s32 %v3699_v34, 8  ;;  %767 = vmatpush.bf16.msra.mxu0 %v2947_v60  ;;  %988 = vmatpush.bf16.msra.mxu1 %v2959_v5  ;;  %v3770_v5 = vld [vmem:[%s3690_s14 + $0x48] sm:$0xff] }
  0x60   : > { %3342 = vst [vmem:[#allocation2 + $0x10] sm:$0xff] %v3038_v1   ;;  %v3178_v14 = vpack.c.bf16 %v1357_v8, %v1356_v7  ;;  %v632_v15 = vand.u32 15, %v630_v9  ;;  %v853_v16 = vshra.s32 %v3704_v37, 8  ;;  %v1097_v17 = vshra.s32 %v3715_v56, 16 }
  0x61   : > { %v2958_v19 = vld [vmem:[#allocation2 + $0x28] sm:$0xff]  ;;  %v3128_v20 = vpack.c.bf16 %v1112_v11, %v1111_v6  ;;  %v633_v21 = vcvt.s32.f32 %v631_v12  ;;  %v854_v22 = vand.u32 15, %v852_v13  ;;  %v1098_v18 = vshra.s32 %v3718_v57, 16 }
  0x62   : > { %v2946_v23 = vld [vmem:[#allocation2 + $0x8] sm:$0xff]  ;;  %3359 = vst [vmem:[#allocation2 + $0x28] sm:$0xff] %v3133_v54   ;;  %v634_v24 = vcvt.s32.f32 %v632_v15  ;;  %v855_v25 = vand.u32 15, %v853_v16  ;;  %v1099_v26 = vand.u32 15, %v1097_v17  ;;  %v1342_v27 = vshra.s32 %v3741_v48, 24 }
  0x63   : > { %3350 = vst [vmem:[#allocation2 + $0x8] sm:$0xff] %v3083_v50   ;;  %v856_v28 = vcvt.s32.f32 %v854_v22  ;;  %v1100_v29 = vand.u32 15, %v1098_v18  ;;  %v1343_v30 = vshra.s32 %v3744_v49, 24  ;;  %v619_v31 = vshra.s32 %v3693_v32, 4  ;;  %768 = vmatpush.bf16.msra.mxu0 %v2946_v23  ;;  %989 = vmatpush.bf16.msra.mxu1 %v2958_v19 }
  0x64   : > { %v2957_v35 = vld [vmem:[#allocation2 + $0x20] sm:$0xff]  ;;  %v3033_v36 = vpack.c.bf16 %v634_v24, %v633_v21  ;;  %v857_v38 = vcvt.s32.f32 %v855_v25  ;;  %v1101_v39 = vcvt.s32.f32 %v1099_v26  ;;  %v1344_v40 = vand.u32 15, %v1342_v27 }
  0x65   : > { %3358 = vst [vmem:[#allocation2 + $0x20] sm:$0xff] %v3128_v20   ;;  %v1102_v41 = vcvt.s32.f32 %v1100_v29  ;;  %v1345_v42 = vand.u32 15, %v1343_v30  ;;  %v620_v43 = vshra.s32 %v3696_v33, 4  ;;  %v621_v44 = vand.u32 15, %v619_v31 }
  0x66   : > { %v2969_v45 = vld [vmem:[#allocation2 + $0x38] sm:$0xff]  ;;  %3341 = vst [vmem:[#allocation2 + $0x18] sm:$0xff] %v3033_v36   ;;  %v3073_v46 = vpack.c.bf16 %v857_v38, %v856_v28  ;;  %v1346_v47 = vcvt.s32.f32 %v1344_v40  ;;  %v842_v50 = vshra.s32 %v3699_v34, 4  ;;  %v843_v51 = vshra.s32 %v3704_v37, 4 }
  0x67   : > { %v2945_v52 = vld [vmem:[#allocation2 + $0x10] sm:$0xff]  ;;  %3367 = vst [vmem:[#allocation2 + $0x38] sm:$0xff] %v3178_v14   ;;  %v3123_v53 = vpack.c.bf16 %v1102_v41, %v1101_v39  ;;  %v1347_v54 = vcvt.s32.f32 %v1345_v42  ;;  %v622_v55 = vand.u32 15, %v620_v43  ;;  %v623_v58 = vcvt.s32.f32 %v621_v44  ;;  %990 = vmatpush.bf16.msra.mxu1 %v2957_v35  ;;  %1213 = vmatpush.bf16.msra.mxu2 %v2969_v45  ;;  %v3795_v44 = vld [vmem:[%s4335_s0 + $0x1c] sm:$0xf0] }
  0x68   : > { %3349 = vst [vmem:[#allocation2 + $0x10] sm:$0xff] %v3078_v10   ;;  %v844_v59 = vand.u32 15, %v842_v50  ;;  %v845_v60 = vand.u32 15, %v843_v51  ;;  %v1087_v61 = vshra.s32 %v3715_v56, 12  ;;  %v1088_v62 = vshra.s32 %v3718_v57, 12  ;;  %769 = vmatpush.bf16.msra.mxu0 %v2945_v52 }
  0x69   : > { %v2968_v0 = vld [vmem:[#allocation2 + $0x28] sm:$0xff]  ;;  %v3173_v1 = vpack.c.bf16 %v1347_v54, %v1346_v47  ;;  %v624_v2 = vcvt.s32.f32 %v622_v55  ;;  %v1332_v3 = vshra.s32 %v3741_v48, 20  ;;  %v1333_v4 = vshra.s32 %v3744_v49, 20 }
  0x6a   : > { %v2956_v6 = vld [vmem:[#allocation2 + $0x8] sm:$0xff]  ;;  %v846_v7 = vcvt.s32.f32 %v844_v59  ;;  %v847_v8 = vcvt.s32.f32 %v845_v60  ;;  %v1089_v9 = vand.u32 15, %v1087_v61  ;;  %v1090_v10 = vand.u32 15, %v1088_v62 }
  0x6b   : > { %3357 = vst [vmem:[#allocation2 + $0x8] sm:$0xff] %v3123_v53   ;;  %v3028_v11 = vpack.c.bf16 %v624_v2, %v623_v58  ;;  %v1334_v12 = vand.u32 15, %v1332_v3  ;;  %v1335_v13 = vand.u32 15, %v1333_v4  ;;  %v2760_v14 = vshrl.u32 %v3765_v63, 28  ;;  %991 = vmatpush.bf16.msra.mxu1 %v2956_v6  ;;  %1214 = vmatpush.bf16.msra.mxu2 %v2968_v0 }
  0x6c   : > { %3366 = vst [vmem:[#allocation2 + $0x28] sm:$0xff] %v3173_v1   ;;  %v3068_v15 = vpack.c.bf16 %v847_v8, %v846_v7  ;;  %v1091_v16 = vcvt.s32.f32 %v1089_v9  ;;  %v1092_v17 = vcvt.s32.f32 %v1090_v10  ;;  %v2967_v19 = vld [vmem:[#allocation2 + $0x20] sm:$0xff]  ;;  %v2761_v20 = vshrl.u32 %v3770_v5, 28 }
  0x6d   : > { %v2944_v21 = vld [vmem:[#allocation2 + $0x18] sm:$0xff]  ;;  %3340 = vst [vmem:[#allocation2] sm:$0xff] %v3028_v11   ;;  %v1336_v22 = vcvt.s32.f32 %v1334_v12  ;;  %v1337_v18 = vcvt.s32.f32 %v1335_v13  ;;  %v1581_v23 = vcvt.s32.f32 %v2760_v14  ;;  %v611_v24 = vand.u32 15, %v3693_v32  ;;  %v3811_v11 = vld [vmem:[%s3690_s14 + $0x50] sm:$0xff] }
  0x6e   : > { %3348 = vst [vmem:[#allocation2 + $0x18] sm:$0xff] %v3073_v46   ;;  %v3118_v25 = vpack.c.bf16 %v1092_v17, %v1091_v16  ;;  %v2979_v26 = vld [vmem:[#allocation2 + $0x38] sm:$0xff]  ;;  %v1582_v27 = vcvt.s32.f32 %v2761_v20  ;;  %v612_v28 = vand.u32 15, %v3696_v33  ;;  %v834_v29 = vand.u32 15, %v3699_v34  ;;  %770 = vmatpush.bf16.msra.mxu0 %v2944_v21  ;;  %v3785_v34 = vld [vmem:[%s4335_s0] sm:$0xf] }
  0x6f   : > { %v2955_v30 = vld [vmem:[#allocation2 + $0x10] sm:$0xff]  ;;  %v3168_v31 = vpack.c.bf16 %v1337_v18, %v1336_v22  ;;  %v613_v35 = vcvt.s32.f32 %v611_v24  ;;  %v835_v36 = vand.u32 15, %v3704_v37  ;;  %v1077_v38 = vshra.s32 %v3715_v56, 8  ;;  %1215 = vmatpush.bf16.msra.mxu2 %v2967_v19  ;;  %1438 = vmatpush.bf16.msra.mxu3 %v2979_v26  ;;  %v3815_v17 = vld [vmem:[%s3690_s14 + $0x58] sm:$0xff] }
  0x70   : > { %3356 = vst [vmem:[#allocation2 + $0x10] sm:$0xff] %v3118_v25   ;;  %v3218_v32 = vpack.c.bf16 %v1582_v27, %v1581_v23  ;;  %v614_v39 = vcvt.s32.f32 %v612_v28  ;;  %v3779_v40 = vcvt.s32.f32 %v834_v29  ;;  %v1078_v33 = vshra.s32 %v3718_v57, 8  ;;  %992 = vmatpush.bf16.msra.mxu1 %v2955_v30  ;;  %v3822_v23 = vld [vmem:[%s4335_s0] sm:$0xff]  }
  0x71   : > { %3365 = vst [vmem:[#allocation2 + $0x20] sm:$0xff] %v3168_v31   ;;  %v3788_v37 = vcvt.s32.f32 %v835_v36  ;;  %v1079_v41 = vand.u32 15, %v1077_v38  ;;  %v1322_v42 = vshra.s32 %v3741_v48, 16  ;;  %v1323_v43 = vshra.s32 %v3744_v49, 16 }
  0x72   : > { %3374 = vst [vmem:[#allocation2 + $0x38] sm:$0xff] %v3218_v32   ;;  %v3023_v45 = vpack.c.bf16 %v614_v39, %v613_v35  ;;  %v1080_v46 = vand.u32 15, %v1078_v33  ;;  %v2966_v47 = vld [vmem:[#allocation2 + $0x8] sm:$0xff]  ;;  %v1567_v50 = vshra.s32 %v3765_v63, 24  ;;  %v1568_v51 = vshra.s32 %v3770_v5, 24 }
  0x73   : > { %v3063_v52 = vpack.c.bf16 %v3788_v37, %v3779_v40  ;;  %v1081_v53 = vcvt.s32.f32 %v1079_v41  ;;  %v1324_v54 = vand.u32 15, %v1322_v42  ;;  %v1325_v55 = vand.u32 15, %v1323_v43  ;;  %v2978_v58 = vld [vmem:[#allocation2 + $0x28] sm:$0xff]  ;;  %1216 = vmatpush.bf16.msra.mxu2 %v2966_v47 }
  0x74   : > { %v2943_v59 = vld [vmem:[#allocation2] sm:$0xff]  ;;  %3024 = vst [vmem:[#allocation2 + $0x30] sm:$0xff] %v3023_v45   ;;  %v1082_v60 = vcvt.s32.f32 %v1080_v46  ;;  %v1569_v61 = vand.u32 15, %v1567_v50  ;;  %v1570_v62 = vand.u32 15, %v1568_v51  ;;  %v2591_v0 = vor.u32 %v3795_v44, %v3785_v34  ;;  %1439 = vmatpush.bf16.msra.mxu3 %v2978_v58 }
  0x75   : > { %3347 = vst [vmem:[#allocation2] sm:$0xff] %v3068_v15   ;;  %v2954_v1 = vld [vmem:[#allocation2 + $0x18] sm:$0xff]  ;;  %v1326_v2 = vcvt.s32.f32 %v1324_v54  ;;  %v1327_v3 = vcvt.s32.f32 %v1325_v55  ;;  %v1067_v4 = vshra.s32 %v3715_v56, 4  ;;  %v1068_v6 = vshra.s32 %v3718_v57, 4  ;;  %771 = vmatpush.bf16.msra.mxu0 %v2943_v59  ;;  %v3842_v51 = vld [vmem:[%s4335_s0 + $0x40] sm:$0xff]  }
  0x76   : > { %v3113_v7 = vpack.c.bf16 %v1082_v60, %v1081_v53  ;;  %v1571_v8 = vcvt.s32.f32 %v1569_v61  ;;  %v1572_v9 = vcvt.s32.f32 %v1570_v62  ;;  %v1312_v10 = vshra.s32 %v3741_v48, 12  ;;  %993 = vmatpush.bf16.msra.mxu1 %v2954_v1  ;;  %v2950_v55 = vld [vmem:[%s4335_s0 + $0x20] sm:$0xf0] }
  0x77   : > { %v3163_v12 = vpack.c.bf16 %v1327_v3, %v1326_v2  ;;  %v1069_v13 = vand.u32 15, %v1067_v4  ;;  %v1070_v14 = vand.u32 15, %v1068_v6  ;;  %v2965_v15 = vld [vmem:[#allocation2 + $0x10] sm:$0xff]  ;;  %v1313_v16 = vshra.s32 %v3744_v49, 12 }
  0x78   : > { %3355 = vst [vmem:[#allocation2 + $0x18] sm:$0xff] %v3113_v7   ;;  %v3213_v19 = vpack.c.bf16 %v1572_v9, %v1571_v8  ;;  %v1314_v20 = vand.u32 15, %v1312_v10  ;;  %v2977_v21 = vld [vmem:[#allocation2 + $0x20] sm:$0xff]  ;;  %v1557_v22 = vshra.s32 %v3765_v63, 20  ;;  %v1558_v18 = vshra.s32 %v3770_v5, 20  ;;  %1217 = vmatpush.bf16.msra.mxu2 %v2965_v15 }
  0x79   : > { %3364 = vst [vmem:[#allocation2 + $0x8] sm:$0xff] %v3163_v12   ;;  %v1071_v24 = vcvt.s32.f32 %v1069_v13  ;;  %v1072_v25 = vcvt.s32.f32 %v1070_v14  ;;  %v1315_v26 = vand.u32 15, %v1313_v16  ;;  %v2989_v27 = vld [vmem:[#allocation2 + $0x38] sm:$0xff]  ;;  %v2804_v28 = vshrl.u32 %v3811_v11, 28  ;;  %1440 = vmatpush.bf16.msra.mxu3 %v2977_v21 }
  0x7a   : > { %3373 = vst [vmem:[#allocation2 + $0x28] sm:$0xff] %v3213_v19   ;;  %v1316_v29 = vcvt.s32.f32 %v1314_v20  ;;  %v1559_v30 = vand.u32 15, %v1557_v22  ;;  %v1560_v31 = vand.u32 15, %v1558_v18  ;;  %v2805_v35 = vshrl.u32 %v3815_v17, 28 }
  0x7b   : > { %v2942_v36 = vld [vmem:[#allocation2 + $0x30] sm:$0xff]  ;;  %v3108_v38 = vpack.c.bf16 %v1072_v25, %v1071_v24  ;;  %v1317_v32 = vcvt.s32.f32 %v1315_v26  ;;  %v1806_v39 = vcvt.s32.f32 %v2804_v28  ;;  %v784_v40 = vunpack.c.l.bf16 %v3822_v23 }
  0x7c   : > { %3064 = vst [vmem:[#allocation2 + $0x30] sm:$0xff] %v3063_v52   ;;  %v2953_v33 = vld [vmem:[#allocation2] sm:$0xff]  ;;  %v1561_v37 = vcvt.s32.f32 %v1559_v30  ;;  %v1562_v41 = vcvt.s32.f32 %v1560_v31  ;;  %v1807_v42 = vcvt.s32.f32 %v2805_v35  ;;  %v1059_v43 = vand.u32 15, %v3715_v56  ;;  %772 = vmatpush.bf16.msra.mxu0 %v2942_v36 }
  0x7d   : > { %3354 = vst [vmem:[#allocation2] sm:$0xff] %v3108_v38   ;;  %v3158_v45 = vpack.c.bf16 %v1317_v32, %v1316_v29  ;;  %788 = vadd.xlane.f32.xlu0 %v784_v40  ;;  %v1060_v46 = vand.u32 15, %v3718_v57  ;;  %v1302_v47 = vshra.s32 %v3741_v48, 8  ;;  %v1303_v50 = vshra.s32 %v3744_v49, 8  ;;  %994 = vmatpush.bf16.msra.mxu1 %v2953_v33  ;;  %v3848_v57 = vld [vmem:[%s4335_s0 + $0x4] sm:$0xf] }
  0x7e   : > { %v3208_v52 = vpack.c.bf16 %v1562_v41, %v1561_v37  ;;  %v3258_v56 = vpack.c.bf16 %v1807_v42, %v1806_v39  ;;  %v1061_v53 = vcvt.s32.f32 %v1059_v43  ;;  %v1547_v54 = vshra.s32 %v3765_v63, 16  ;;  %v3878_v32 = vld [vmem:[%s3690_s14 + $0x60] sm:$0xff] }
  0x7f   : > { %3363 = vst [vmem:[#allocation2 + $0x10] sm:$0xff] %v3158_v45   ;;  %v1062_v58 = vcvt.s32.f32 %v1060_v46  ;;  %v2964_v59 = vld [vmem:[#allocation2 + $0x18] sm:$0xff]  ;;  %v1304_v60 = vand.u32 15, %v1302_v47  ;;  %v1305_v61 = vand.u32 15, %v1303_v50  ;;  %v1548_v62 = vshra.s32 %v3770_v5, 16  ;;  %773 = vmatmul.bf16.vlgmr.msra.gmra.mxu0 %v2591_v0  ;;  %v3883_v50 = vld [vmem:[%s3690_s14 + $0x68] sm:$0xff] }
  0x80   : > { %1663 = vmatpush.bf16.msrb.mxu0 %v2989_v27  ;;  %3372 = vst [vmem:[#allocation2 + $0x20] sm:$0xff] %v3208_v52   ;;  %v2976_v1 = vld [vmem:[#allocation2 + $0x8] sm:$0xff]  ;;  %v1549_v2 = vand.u32 15, %v1547_v54  ;;  %v786_v3 = vunpack.c.l.bf16 %v3842_v51  ;;  %v1792_v4 = vshra.s32 %v3811_v11, 24  ;;  %v1793_v6 = vshra.s32 %v3815_v17, 24  ;;  %1218 = vmatpush.bf16.msra.mxu2 %v2964_v59  ;;  %v3888_v52 = vld [vmem:[%s4335_s0 + $0x60] sm:$0xff]  }
  0x81   : > { %3381 = vst [vmem:[#allocation2 + $0x38] sm:$0xff] %v3258_v56   ;;  %v3103_v7 = vpack.c.bf16 %v1062_v58, %v1061_v53  ;;  %v1306_v8 = vcvt.s32.f32 %v1304_v60  ;;  %v1307_v9 = vcvt.s32.f32 %v1305_v61  ;;  %v1550_v34 = vand.u32 15, %v1548_v62  ;;  %v2988_v44 = vld [vmem:[#allocation2 + $0x28] sm:$0xff]  ;;  %1441 = vmatpush.bf16.msra.mxu3 %v2976_v1  ;;  %v2594_v60 = vld [vmem:[%s4335_s0 + $0x40] sm:$0xf] }
  0x82   : > { %v1551_v0 = vcvt.s32.f32 %v1549_v2  ;;  %792 = vadd.xlane.f32.xlu1 %v786_v3  ;;  %v1794_v10 = vand.u32 15, %v1792_v4  ;;  %v1795_v12 = vand.u32 15, %v1793_v6  ;;  %v1007_v13 = vunpack.c.h.bf16 %v3822_v23  ;;  %v3872_v23 = vld [vmem:[%s4335_s0 + $0x20] sm:$0xff]  }
  0x83   : > { %v2952_v14 = vld [vmem:[#allocation2 + $0x30] sm:$0xff]  ;;  %v3153_v15 = vpack.c.bf16 %v1307_v9, %v1306_v8  ;;  %v1552_v16 = vcvt.s32.f32 %v1550_v34  ;;  %v2633_v19 = vor.u32 %v2950_v55, %v3848_v57  ;;  %v1292_v20 = vshra.s32 %v3741_v48, 4  ;;  %v2941_v61 = vld [vmem:[%s4335_s0 + $0x5c] sm:$0xf0] }
  0x84   : > { %1664 = vmatpush.bf16.msrb.mxu0 %v2988_v44  ;;  %3104 = vst [vmem:[#allocation2 + $0x30] sm:$0xff] %v3103_v7   ;;  %v1796_v21 = vcvt.s32.f32 %v1794_v10  ;;  %v1797_v22 = vcvt.s32.f32 %v1795_v12  ;;  %1011 = vadd.xlane.f32.xlu2 %v1007_v13  ;;  %v2963_v18 = vld [vmem:[#allocation2] sm:$0xff]  ;;  %v1293_v24 = vshra.s32 %v3744_v49, 4  ;;  %v1537_v25 = vshra.s32 %v3765_v63, 12  ;;  %v2960_v44 = vld [vmem:[%s4335_s0 + $0x24] sm:$0xf0] }
  0x85   : > { %995 = vmatpush.bf16.msra.mxu1 %v2952_v14  ;;  %3362 = vst [vmem:[#allocation2 + $0x18] sm:$0xff] %v3153_v15   ;;  %v3203_v26 = vpack.c.bf16 %v1552_v16, %v1551_v0  ;;  %v1294_v27 = vand.u32 15, %v1292_v20  ;;  %v1538_v28 = vshra.s32 %v3770_v5, 12  ;;  %v1782_v29 = vshra.s32 %v3811_v11, 20  ;;  %1219 = vmatpush.bf16.msra.mxu2 %v2963_v18 }
  0x86   : > { %v3253_v30 = vpack.c.bf16 %v1797_v22, %v1796_v21  ;;  %v1295_v31 = vand.u32 15, %v1293_v24  ;;  %v2975_v35 = vld [vmem:[#allocation2 + $0x10] sm:$0xff]  ;;  %v1539_v36 = vand.u32 15, %v1537_v25  ;;  %v1783_v38 = vshra.s32 %v3815_v17, 20 }
  0x87   : > { %3371 = vst [vmem:[#allocation2 + $0x8] sm:$0xff] %v3203_v26   ;;  %v1296_v39 = vcvt.s32.f32 %v1294_v27  ;;  %v1540_v40 = vand.u32 15, %v1538_v28  ;;  %v2987_v33 = vld [vmem:[#allocation2 + $0x20] sm:$0xff]  ;;  %v1784_v37 = vand.u32 15, %v1782_v29  ;;  %v785_v41 = vunpack.c.l.bf16 %v3872_v23  ;;  %1442 = vmatpush.bf16.msra.mxu3 %v2975_v35  ;;  %v3913_v26 = vld [vmem:[%s3690_s14 + $0x70] sm:$0xff]  ;;  %v3916_v27 = vld [vmem:[%s3690_s14 + $0x78] sm:$0xff] }
  0x88   : > { %3380 = vst [vmem:[#allocation2 + $0x28] sm:$0xff] %v3253_v30   ;;  %996 = vmatmul.bf16.vlgmr.msra.gmra.mxu1 %v2633_v19  ;;  %v1297_v42 = vcvt.s32.f32 %v1295_v31  ;;  %v1541_v43 = vcvt.s32.f32 %v1539_v36  ;;  %v1785_v45 = vand.u32 15, %v1783_v38  ;;  %v1284_v46 = vand.u32 15, %v3741_v48  ;;  %v2999_v47 = vld [vmem:[#allocation2 + $0x38] sm:$0xff]  ;;  %1665 = vmatpush.bf16.msrb.mxu0 %v2987_v33 }
  0x89   : > { %v1542_v56 = vcvt.s32.f32 %v1540_v40  ;;  %v1786_v53 = vcvt.s32.f32 %v1784_v37  ;;  %790 = vadd.xlane.f32.xlu0 %v785_v41  ;;  %v1285_v54 = vand.u32 15, %v3744_v49  ;;  %v1527_v57 = vshra.s32 %v3765_v63, 8  ;;  %1888 = vmatpush.bf16.msrb.mxu1 %v2999_v47  ;;  %v2676_v49 = vld [vmem:[%s4335_s0 + $0x8] sm:$0xf] }
  0x8a   : > { %v3148_v55 = vpack.c.bf16 %v1297_v42, %v1296_v39  ;;  %v1787_v58 = vcvt.s32.f32 %v1785_v45  ;;  %v1286_v59 = vcvt.s32.f32 %v1284_v46  ;;  %v1528_v48 = vshra.s32 %v3770_v5, 8 }
  0x8b   : > { %v3198_v62 = vpack.c.bf16 %v1542_v56, %v1541_v43  ;;  %v2962_v1 = vld [vmem:[#allocation2 + $0x30] sm:$0xff]  ;;  %v1287_v2 = vcvt.s32.f32 %v1285_v54  ;;  %v1529_v3 = vand.u32 15, %v1527_v57  ;;  %v2848_v4 = vshrl.u32 %v3878_v32, 28 }
  0x8c   : > { %3361 = vst [vmem:[#allocation2] sm:$0xff] %v3148_v55   ;;  %v3248_v6 = vpack.c.bf16 %v1787_v58, %v1786_v53  ;;  %v2974_v7 = vld [vmem:[#allocation2 + $0x18] sm:$0xff]  ;;  %v1530_v8 = vand.u32 15, %v1528_v48  ;;  %v2849_v9 = vshrl.u32 %v3883_v50, 28  ;;  %v787_v34 = vunpack.c.l.bf16 %v3888_v52  ;;  %1220 = vmatpush.bf16.msra.mxu2 %v2962_v1 }
  0x8d   : > { %3370 = vst [vmem:[#allocation2 + $0x10] sm:$0xff] %v3198_v62   ;;  %v3143_v0 = vpack.c.bf16 %v1287_v2, %v1286_v59  ;;  %v1531_v10 = vcvt.s32.f32 %v1529_v3  ;;  %v2031_v12 = vcvt.s32.f32 %v2848_v4  ;;  %v1772_v13 = vshra.s32 %v3811_v11, 16  ;;  %1443 = vmatpush.bf16.msra.mxu3 %v2974_v7 }
  0x8e   : > { %3379 = vst [vmem:[#allocation2 + $0x20] sm:$0xff] %v3248_v6   ;;  %v1532_v14 = vcvt.s32.f32 %v1530_v8  ;;  %v2032_v15 = vcvt.s32.f32 %v2849_v9  ;;  %794 = vadd.xlane.f32.xlu1 %v787_v34  ;;  %v2986_v16 = vld [vmem:[#allocation2 + $0x8] sm:$0xff]  ;;  %v1773_v19 = vshra.s32 %v3815_v17, 16  ;;  %v1008_v20 = vunpack.c.h.bf16 %v3872_v23 }
  0x8f   : > { %3144 = vst [vmem:[#allocation2 + $0x30] sm:$0xff] %v3143_v0   ;;  %v1774_v21 = vand.u32 15, %v1772_v13  ;;  %v2595_v22 = vor.u32 %v2941_v61, %v2594_v60  ;;  %v2677_v18 = vor.u32 %v2960_v44, %v2676_v49  ;;  %v1517_v24 = vshra.s32 %v3765_v63, 4  ;;  %v2998_v25 = vld [vmem:[#allocation2 + $0x28] sm:$0xff]  ;;  %1666 = vmatpush.bf16.msrb.mxu0 %v2986_v16 }
  0x90   : > { %v3193_v28 = vpack.c.bf16 %v1532_v14, %v1531_v10  ;;  %v3298_v29 = vpack.c.bf16 %v2032_v15, %v2031_v12  ;;  %v1775_v30 = vand.u32 15, %v1773_v19  ;;  %1013 = vadd.xlane.f32.xlu2 %v1008_v20  ;;  %v1518_v31 = vshra.s32 %v3770_v5, 4  ;;  %1889 = vmatpush.bf16.msrb.mxu1 %v2998_v25  ;;  %v2720_v14 = vld [vmem:[%s4335_s0 + $0xc] sm:$0xf] }
  0x91   : > { %v1776_v35 = vcvt.s32.f32 %v1774_v21  ;;  %778 = vmatmul.bf16.gmra.mxu0 %v2595_v22  ;;  %1221 = vmatmul.bf16.vlgmr.msra.gmra.mxu2 %v2677_v18  ;;  %v1519_v23 = vand.u32 15, %v1517_v24  ;;  %v2017_v36 = vshra.s32 %v3878_v32, 24  ;;  %v2018_v38 = vshra.s32 %v3883_v50, 24  ;;  %v3946_v22 = vld [vmem:[%s4335_s0 + $0x8] sm:$0xff]  }
  0x92   : > { %3369 = vst [vmem:[#allocation2 + $0x18] sm:$0xff] %v3193_v28   ;;  %v1777_v39 = vcvt.s32.f32 %v1775_v30  ;;  %v1520_v40 = vand.u32 15, %v1518_v31  ;;  %v2892_v33 = vshrl.u32 %v3913_v26, 28  ;;  %v2893_v37 = vshrl.u32 %v3916_v27, 28  ;;  %v2970_v28 = vld [vmem:[%s4335_s0 + $0x28] sm:$0xf0] }
  0x93   : > { %3388 = vst [vmem:[#allocation2 + $0x38] sm:$0xff] %v3298_v29   ;;  %v2973_v41 = vld [vmem:[#allocation2] sm:$0xff]  ;;  %v1521_v42 = vcvt.s32.f32 %v1519_v23  ;;  %v2019_v43 = vand.u32 15, %v2017_v36  ;;  %v2020_v45 = vand.u32 15, %v2018_v38  ;;  %v1762_v46 = vshra.s32 %v3811_v11, 12 }
  0x94   : > { %v3243_v47 = vpack.c.bf16 %v1777_v39, %v1776_v35  ;;  %v1522_v56 = vcvt.s32.f32 %v1520_v40  ;;  %v2256_v53 = vcvt.s32.f32 %v2892_v33  ;;  %v2257_v54 = vcvt.s32.f32 %v2893_v37  ;;  %v2985_v57 = vld [vmem:[#allocation2 + $0x10] sm:$0xff]  ;;  %1444 = vmatpush.bf16.msra.mxu3 %v2973_v41 }
  0x95   : > { %v2021_v55 = vcvt.s32.f32 %v2019_v43  ;;  %v2022_v58 = vcvt.s32.f32 %v2020_v45  ;;  %v1763_v59 = vshra.s32 %v3815_v17, 12  ;;  %v1764_v48 = vand.u32 15, %v1762_v46  ;;  %v2997_v60 = vld [vmem:[#allocation2 + $0x20] sm:$0xff]  ;;  %1667 = vmatpush.bf16.msrb.mxu0 %v2985_v57  ;;  %v3957_v43 = vld [vmem:[%s4335_s0 + $0x28] sm:$0xff]  }
  0x96   : > { %3378 = vst [vmem:[#allocation2 + $0x8] sm:$0xff] %v3243_v47   ;;  %v3188_v61 = vpack.c.bf16 %v1522_v56, %v1521_v42  ;;  %v3338_v49 = vpack.c.bf16 %v2257_v54, %v2256_v53  ;;  %v1009_v62 = vunpack.c.h.bf16 %v3842_v51  ;;  %v2972_v1 = vld [vmem:[#allocation2 + $0x30] sm:$0xff]  ;;  %v1509_v2 = vand.u32 15, %v3765_v63  ;;  %1890 = vmatpush.bf16.msrb.mxu1 %v2997_v60  ;;  %v2636_v51 = vld [vmem:[%s4335_s0 + $0x44] sm:$0xf] }
  0x97   : > { %v3293_v3 = vpack.c.bf16 %v2022_v58, %v2021_v55  ;;  %v1765_v4 = vand.u32 15, %v1763_v59  ;;  %v1766_v6 = vcvt.s32.f32 %v1764_v48  ;;  %v1510_v7 = vand.u32 15, %v3770_v5  ;;  %v2951_v63 = vld [vmem:[%s4335_s0 + $0x60] sm:$0xf0] }
  0x98   : > { %3368 = vst [vmem:[#allocation2] sm:$0xff] %v3188_v61   ;;  %1015 = vadd.xlane.f32.xlu0 %v1009_v62  ;;  %v1511_v8 = vcvt.s32.f32 %v1509_v2  ;;  %v2007_v9 = vshra.s32 %v3878_v32, 20  ;;  %v2008_v34 = vshra.s32 %v3883_v50, 20  ;;  %v2242_v44 = vshra.s32 %v3913_v26, 24  ;;  %1445 = vmatpush.bf16.msra.mxu3 %v2972_v1 }
  0x99   : > { %3387 = vst [vmem:[#allocation2 + $0x28] sm:$0xff] %v3293_v3   ;;  %v1767_v5 = vcvt.s32.f32 %v1765_v4  ;;  %v1512_v0 = vcvt.s32.f32 %v1510_v7  ;;  %v2243_v10 = vshra.s32 %v3916_v27, 24  ;;  %v1010_v12 = vunpack.c.h.bf16 %v3888_v52  ;;  %v2984_v13 = vld [vmem:[#allocation2 + $0x18] sm:$0xff] }
  0x9a   : > { %v3009_v15 = vld [vmem:[#allocation2 + $0x38] sm:$0xff]  ;;  %v2009_v16 = vand.u32 15, %v2007_v9  ;;  %v2010_v19 = vand.u32 15, %v2008_v34  ;;  %v2244_v20 = vand.u32 15, %v2242_v44  ;;  %v1752_v21 = vshra.s32 %v3811_v11, 8  ;;  %1668 = vmatpush.bf16.msrb.mxu0 %v2984_v13  ;;  %v3970_v34 = vld [vmem:[%s4335_s0 + $0x48] sm:$0xff]  }
  0x9b   : > { %3395 = vst [vmem:[#allocation2 + $0x38] sm:$0xff] %v3338_v49   ;;  %v3238_v18 = vpack.c.bf16 %v1767_v5, %v1766_v6  ;;  %v3183_v24 = vpack.c.bf16 %v1512_v0, %v1511_v8  ;;  %v2245_v52 = vand.u32 15, %v2243_v10  ;;  %1017 = vadd.xlane.f32.xlu1 %v1010_v12  ;;  %v1753_v25 = vshra.s32 %v3815_v17, 8  ;;  %2113 = vmatpush.bf16.msrb.mxu2 %v3009_v15  ;;  %v3976_v10 = vld [vmem:[%s4335_s0 + $0x68] sm:$0xff]  }
  0x9c   : > { %v2011_v29 = vcvt.s32.f32 %v2009_v16  ;;  %v2012_v30 = vcvt.s32.f32 %v2010_v19  ;;  %v2246_v31 = vcvt.s32.f32 %v2244_v20  ;;  %v1754_v35 = vand.u32 15, %v1752_v21  ;;  %v2680_v12 = vld [vmem:[%s4335_s0 + $0x48] sm:$0xf] }
  0x9d   : > { %3377 = vst [vmem:[#allocation2 + $0x10] sm:$0xff] %v3238_v18   ;;  %v2247_v23 = vcvt.s32.f32 %v2245_v52  ;;  %v1755_v36 = vand.u32 15, %v1753_v25  ;;  %v1232_v38 = vunpack.c.l.bf16 %v3946_v22  ;;  %v2637_v39 = vor.u32 %v2951_v63, %v2636_v51  ;;  %v2996_v40 = vld [vmem:[#allocation2 + $0x8] sm:$0xff] }
  0x9e   : > { %3184 = vst [vmem:[#allocation2 + $0x30] sm:$0xff] %v3183_v24   ;;  %v3288_v33 = vpack.c.bf16 %v2012_v30, %v2011_v29  ;;  %v1756_v37 = vcvt.s32.f32 %v1754_v35  ;;  %v2721_v41 = vor.u32 %v2970_v28, %v2720_v14  ;;  %v1997_v42 = vshra.s32 %v3878_v32, 16  ;;  %1891 = vmatpush.bf16.msrb.mxu1 %v2996_v40  ;;  %v2961_v20 = vld [vmem:[%s4335_s0 + $0x64] sm:$0xf0]  ;;  %v2764_v35 = vld [vmem:[%s4335_s0 + $0x10] sm:$0xf] }
  0x9f   : > { %v3333_v45 = vpack.c.bf16 %v2247_v23, %v2246_v31  ;;  %v1757_v46 = vcvt.s32.f32 %v1755_v36  ;;  %1236 = vadd.xlane.f32.xlu2 %v1232_v38  ;;  %1001 = vmatmul.bf16.gmra.mxu1 %v2637_v39  ;;  %v1998_v47 = vshra.s32 %v3883_v50, 16  ;;  %v2232_v56 = vshra.s32 %v3913_v26, 20  ;;  %v2983_v53 = vld [vmem:[#allocation2] sm:$0xff] }
  0xa0   : > { %3386 = vst [vmem:[#allocation2 + $0x20] sm:$0xff] %v3288_v33   ;;  %v3008_v54 = vld [vmem:[#allocation2 + $0x28] sm:$0xff]  ;;  %1446 = vmatmul.bf16.vlgmr.msra.gmra.mxu3 %v2721_v41  ;;  %v1999_v57 = vand.u32 15, %v1997_v42  ;;  %v2233_v55 = vshra.s32 %v3916_v27, 20  ;;  %v1742_v58 = vshra.s32 %v3811_v11, 4  ;;  %v1743_v59 = vshra.s32 %v3815_v17, 4  ;;  %1669 = vmatpush.bf16.msrb.mxu0 %v2983_v53 }
  0xa1   : > { %3394 = vst [vmem:[#allocation2 + $0x28] sm:$0xff] %v3333_v45   ;;  %v3233_v48 = vpack.c.bf16 %v1757_v46, %v1756_v37  ;;  %v2000_v60 = vand.u32 15, %v1998_v47  ;;  %v2234_v61 = vand.u32 15, %v2232_v56  ;;  %v1233_v49 = vunpack.c.l.bf16 %v3957_v43  ;;  %2114 = vmatpush.bf16.msrb.mxu2 %v3008_v54  ;;  %v2980_v33 = vld [vmem:[%s4335_s0 + $0x2c] sm:$0xf0] }
  0xa2   : > { %v2001_v62 = vcvt.s32.f32 %v1999_v57  ;;  %v2235_v1 = vand.u32 15, %v2233_v55  ;;  %v1744_v2 = vand.u32 15, %v1742_v58  ;;  %v1745_v3 = vand.u32 15, %v1743_v59  ;;  %v3019_v4 = vld [vmem:[#allocation2 + $0x38] sm:$0xff] }
  0xa3   : > { %3376 = vst [vmem:[#allocation2 + $0x18] sm:$0xff] %v3233_v48   ;;  %v2002_v6 = vcvt.s32.f32 %v2000_v60  ;;  %v2236_v7 = vcvt.s32.f32 %v2234_v61  ;;  %1238 = vadd.xlane.f32.xlu0 %v1233_v49  ;;  %v1987_v8 = vshra.s32 %v3878_v32, 12  ;;  %v1988_v9 = vshra.s32 %v3883_v50, 12  ;;  %2338 = vmatpush.bf16.msrb.mxu3 %v3019_v4 }
  0xa4   : > { %v2237_v44 = vcvt.s32.f32 %v2235_v1  ;;  %v1746_v51 = vcvt.s32.f32 %v1744_v2  ;;  %v1747_v63 = vcvt.s32.f32 %v1745_v3  ;;  %v2995_v5 = vld [vmem:[#allocation2 + $0x10] sm:$0xff]  ;;  %v2222_v0 = vshra.s32 %v3913_v26, 16  ;;  %v2724_v2 = vld [vmem:[%s4335_s0 + $0x4c] sm:$0xf] }
  0xa5   : > { %v3283_v13 = vpack.c.bf16 %v2002_v6, %v2001_v62  ;;  %v1989_v14 = vand.u32 15, %v1987_v8  ;;  %v1990_v15 = vand.u32 15, %v1988_v9  ;;  %v2223_v16 = vshra.s32 %v3916_v27, 16  ;;  %v2982_v19 = vld [vmem:[#allocation2 + $0x30] sm:$0xff]  ;;  %1892 = vmatpush.bf16.msrb.mxu1 %v2995_v5  ;;  %v2971_v8 = vld [vmem:[%s4335_s0 + $0x68] sm:$0xf0] }
  0xa6   : > { %v3328_v21 = vpack.c.bf16 %v2237_v44, %v2236_v7  ;;  %v3228_v18 = vpack.c.bf16 %v1747_v63, %v1746_v51  ;;  %v2224_v24 = vand.u32 15, %v2222_v0  ;;  %v1234_v52 = vunpack.c.l.bf16 %v3970_v34  ;;  %1670 = vmatpush.bf16.msrb.mxu0 %v2982_v19 }
  0xa7   : > { %3385 = vst [vmem:[#allocation2 + $0x8] sm:$0xff] %v3283_v13   ;;  %v3007_v25 = vld [vmem:[#allocation2 + $0x20] sm:$0xff]  ;;  %v1991_v28 = vcvt.s32.f32 %v1989_v14  ;;  %v1992_v29 = vcvt.s32.f32 %v1990_v15  ;;  %v2225_v30 = vand.u32 15, %v2223_v16  ;;  %v1734_v31 = vand.u32 15, %v3811_v11 }
  0xa8   : > { %3393 = vst [vmem:[#allocation2 + $0x20] sm:$0xff] %v3328_v21   ;;  %v2226_v23 = vcvt.s32.f32 %v2224_v24  ;;  %1240 = vadd.xlane.f32.xlu1 %v1234_v52  ;;  %v1735_v36 = vand.u32 15, %v3815_v17  ;;  %v3018_v38 = vld [vmem:[#allocation2 + $0x28] sm:$0xff]  ;;  %v1235_v39 = vunpack.c.l.bf16 %v3976_v10  ;;  %v2681_v40 = vor.u32 %v2961_v20, %v2680_v12  ;;  %2115 = vmatpush.bf16.msrb.mxu2 %v3007_v25 }
  0xa9   : > { %3375 = vst [vmem:[#allocation2] sm:$0xff] %v3228_v18   ;;  %v3278_v11 = vpack.c.bf16 %v1992_v29, %v1991_v28  ;;  %v2227_v37 = vcvt.s32.f32 %v2225_v30  ;;  %v1736_v41 = vcvt.s32.f32 %v1734_v31  ;;  %v1977_v42 = vshra.s32 %v3878_v32, 8  ;;  %2339 = vmatpush.bf16.msrb.mxu3 %v3018_v38  ;;  %v2808_v18 = vld [vmem:[%s4335_s0 + $0x14] sm:$0xf] }
  0xaa   : > { %v1737_v45 = vcvt.s32.f32 %v1735_v36  ;;  %1242 = vadd.xlane.f32.xlu2 %v1235_v39  ;;  %v2994_v46 = vld [vmem:[#allocation2 + $0x18] sm:$0xff]  ;;  %v1978_v17 = vshra.s32 %v3883_v50, 8  ;;  %v2212_v47 = vshra.s32 %v3913_v26, 12  ;;  %v2213_v56 = vshra.s32 %v3916_v27, 12  ;;  %1226 = vmatmul.bf16.gmra.mxu2 %v2681_v40  ;;  %v1503_v29 = vld [vmem:[%s4335_s0 + $0x10] sm:$0xff]  }
  0xab   : > { %3384 = vst [vmem:[#allocation2 + $0x10] sm:$0xff] %v3278_v11   ;;  %v3323_v53 = vpack.c.bf16 %v2227_v37, %v2226_v23  ;;  %v1979_v54 = vand.u32 15, %v1977_v42  ;;  %v2765_v57 = vor.u32 %v2980_v33, %v2764_v35  ;;  %v1457_v55 = vunpack.c.h.bf16 %v3946_v22  ;;  %1893 = vmatpush.bf16.msrb.mxu1 %v2994_v46  ;;  %v1504_v23 = vld [vmem:[%s4335_s0 + $0x30] sm:$0xff]  }
  0xac   : > { %v3223_v58 = vpack.c.bf16 %v1737_v45, %v1736_v41  ;;  %v1980_v59 = vand.u32 15, %v1978_v17  ;;  %v2214_v48 = vand.u32 15, %v2212_v47  ;;  %v2215_v60 = vand.u32 15, %v2213_v56  ;;  %v2768_v47 = vld [vmem:[%s4335_s0 + $0x50] sm:$0xf] }
  0xad   : > { %v1981_v61 = vcvt.s32.f32 %v1979_v54  ;;  %1671 = vmatmul.bf16.vlgmr.msrb.gmra.mxu0 %v2765_v57  ;;  %1461 = vadd.xlane.f32.xlu0 %v1457_v55  ;;  %v1967_v49 = vshra.s32 %v3878_v32, 4  ;;  %v1968_v62 = vshra.s32 %v3883_v50, 4  ;;  %v2202_v1 = vshra.s32 %v3913_v26, 8 }
  0xae   : > { %v3006_v3 = vld [vmem:[#allocation2 + $0x8] sm:$0xff]  ;;  %3224 = vst [vmem:[#allocation2 + $0x30] sm:$0xff] %v3223_v58   ;;  %v1982_v22 = vcvt.s32.f32 %v1980_v59  ;;  %v2216_v4 = vcvt.s32.f32 %v2214_v48  ;;  %v2217_v6 = vcvt.s32.f32 %v2215_v60  ;;  %v2203_v7 = vshra.s32 %v3916_v27, 8  ;;  %v1506_v48 = vld [vmem:[%s4335_s0 + $0x70] sm:$0xff]  }
  0xaf   : > { %3392 = vst [vmem:[#allocation2 + $0x8] sm:$0xff] %v3323_v53   ;;  %v3017_v9 = vld [vmem:[#allocation2 + $0x20] sm:$0xff]  ;;  %v1969_v44 = vand.u32 15, %v1967_v49  ;;  %v1970_v51 = vand.u32 15, %v1968_v62  ;;  %v2204_v63 = vand.u32 15, %v2202_v1  ;;  %v1458_v5 = vunpack.c.h.bf16 %v3957_v43  ;;  %2116 = vmatpush.bf16.msrb.mxu2 %v3006_v3 }
  0xb0   : > { %v3273_v0 = vpack.c.bf16 %v1982_v22, %v1981_v61  ;;  %v3318_v12 = vpack.c.bf16 %v2217_v6, %v2216_v4  ;;  %v2993_v13 = vld [vmem:[#allocation2] sm:$0xff]  ;;  %v2205_v14 = vand.u32 15, %v2203_v7  ;;  %v1459_v15 = vunpack.c.h.bf16 %v3970_v34  ;;  %2340 = vmatpush.bf16.msrb.mxu3 %v3017_v9  ;;  %v2990_v43 = vld [vmem:[%s4335_s0 + $0x30] sm:$0xf0]  ;;  %v3000_v3 = vld [vmem:[%s4335_s0 + $0x34] sm:$0xf0] }
  0xb1   : > { %v1971_v16 = vcvt.s32.f32 %v1969_v44  ;;  %v1972_v19 = vcvt.s32.f32 %v1970_v51  ;;  %v2206_v20 = vcvt.s32.f32 %v2204_v63  ;;  %1463 = vadd.xlane.f32.xlu1 %v1458_v5  ;;  %v2725_v21 = vor.u32 %v2971_v8, %v2724_v2  ;;  %1894 = vmatpush.bf16.msrb.mxu1 %v2993_v13  ;;  %v2852_v2 = vld [vmem:[%s4335_s0 + $0x18] sm:$0xf]  ;;  %v2812_v7 = vld [vmem:[%s4335_s0 + $0x54] sm:$0xf]  ;;  %v3010_v13 = vld [vmem:[%s4335_s0 + $0x38] sm:$0xf0] }
  0xb2   : > { %3383 = vst [vmem:[#allocation2 + $0x18] sm:$0xff] %v3273_v0   ;;  %v3005_v24 = vld [vmem:[#allocation2 + $0x10] sm:$0xff]  ;;  %v2207_v52 = vcvt.s32.f32 %v2205_v14  ;;  %1465 = vadd.xlane.f32.xlu2 %v1459_v15  ;;  %v1959_v34 = vand.u32 15, %v3878_v32  ;;  %v1960_v25 = vand.u32 15, %v3883_v50  ;;  %v2192_v28 = vshra.s32 %v3913_v26, 4  ;;  %v1953_v5 = vld [vmem:[%s4335_s0 + $0x18] sm:$0xff]  }
  0xb3   : > { %3391 = vst [vmem:[#allocation2 + $0x10] sm:$0xff] %v3318_v12   ;;  %v3268_v30 = vpack.c.bf16 %v1972_v19, %v1971_v16  ;;  %1451 = vmatmul.bf16.gmra.mxu3 %v2725_v21  ;;  %v2193_v31 = vshra.s32 %v3916_v27, 4  ;;  %v1460_v35 = vunpack.c.h.bf16 %v3976_v10  ;;  %2117 = vmatpush.bf16.msrb.mxu2 %v3005_v24  ;;  %v2809_v38 = vor.u32 %v2990_v43, %v2808_v18  ;;  %v1505_v10 = vld [vmem:[%s4335_s0 + $0x50] sm:$0xff]   ;;  %v2896_v12 = vld [vmem:[%s4335_s0 + $0x1c] sm:$0xf] }
  0xb4   : > { %v1961_v32 = vcvt.s32.f32 %v1959_v34  ;;  %v1962_v50 = vcvt.s32.f32 %v1960_v25  ;;  %v2194_v36 = vand.u32 15, %v2192_v28  ;;  %v2184_v33 = vand.u32 15, %v3913_v26  ;;  %v2981_v26 = vld [vmem:[%s4335_s0 + $0x6c] sm:$0xf0]  ;;  %v2991_v8 = vld [vmem:[%s4335_s0 + $0x70] sm:$0xf0] }
  0xb5   : > { %3382 = vst [vmem:[#allocation2] sm:$0xff] %v3268_v30   ;;  %v2992_v39 = vld [vmem:[#allocation2 + $0x30] sm:$0xff]  ;;  %v2195_v40 = vand.u32 15, %v2193_v31  ;;  %1467 = vadd.xlane.f32.xlu0 %v1460_v35  ;;  %v2185_v11 = vand.u32 15, %v3916_v27  ;;  %v1682_v37 = vunpack.c.l.bf16 %v1503_v29  ;;  %v3313_v41 = vpack.c.bf16 %v2207_v52, %v2206_v20  ;;  %v1954_v16 = vld [vmem:[%s4335_s0 + $0x38] sm:$0xff]  }
  0xb6   : > { %v3016_v42 = vld [vmem:[#allocation2 + $0x8] sm:$0xff]  ;;  %v3263_v45 = vpack.c.bf16 %v1962_v50, %v1961_v32  ;;  %v2196_v46 = vcvt.s32.f32 %v2194_v36  ;;  %v1683_v17 = vunpack.c.l.bf16 %v1504_v23  ;;  %1895 = vmatpush.bf16.msrb.mxu1 %v2992_v39  ;;  %v2186_v56 = vcvt.s32.f32 %v2184_v33  ;;  %v1955_v19 = vld [vmem:[%s4335_s0 + $0x58] sm:$0xff]  }
  0xb7   : > { %v2197_v27 = vcvt.s32.f32 %v2195_v40  ;;  %2341 = vmatpush.bf16.msrb.mxu3 %v3016_v42  ;;  %v2187_v53 = vcvt.s32.f32 %v2185_v11  ;;  %v2769_v55 = vor.u32 %v2981_v26, %v2768_v47  ;;  %v1684_v58 = vunpack.c.l.bf16 %v1505_v10  ;;  %v1956_v18 = vld [vmem:[%s4335_s0 + $0x78] sm:$0xff]  }
  0xb8   : > { %3264 = vst [vmem:[#allocation2 + $0x30] sm:$0xff] %v3263_v45   ;;  %v1685_v49 = vunpack.c.l.bf16 %v1506_v48  ;;  %v1907_v62 = vunpack.c.h.bf16 %v1503_v29  ;;  %v1908_v4 = vunpack.c.h.bf16 %v1504_v23  ;;  %v2853_v6 = vor.u32 %v3000_v3, %v2852_v2  ;;  %v2856_v43 = vld [vmem:[%s4335_s0 + $0x58] sm:$0xf]  ;;  %v2900_v29 = vld [vmem:[%s4335_s0 + $0x5c] sm:$0xf] }
  0xb9   : > { %v3004_v54 = vld [vmem:[#allocation2 + $0x18] sm:$0xff]  ;;  %v3308_v57 = vpack.c.bf16 %v2197_v27, %v2196_v46  ;;  %1686 = vadd.xlane.f32.xlu1 %v1682_v37  ;;  %1896 = vmatmul.bf16.vlgmr.msrb.gmra.mxu1 %v2809_v38  ;;  %v3303_v61 = vpack.c.bf16 %v2187_v53, %v2186_v56  ;;  %v1909_v44 = vunpack.c.h.bf16 %v1505_v10  ;;  %v2813_v51 = vor.u32 %v2991_v8, %v2812_v7  ;;  %v4125_v2 = vld [vmem:[%s3830_s9 + $0x1] ss:$0 sm:$0xff] }
  0xba   : > { %3390 = vst [vmem:[#allocation2 + $0x18] sm:$0xff] %v3313_v41   ;;  %v3015_v59 = vld [vmem:[#allocation2 + $0x10] sm:$0xff]  ;;  %1688 = vadd.xlane.f32.xlu2 %v1683_v17  ;;  %2118 = vmatpush.bf16.msrb.mxu2 %v3004_v54  ;;  %v1910_v63 = vunpack.c.h.bf16 %v1506_v48  ;;  %v2132_v14 = vunpack.c.l.bf16 %v1953_v5  ;;  %v2897_v15 = vor.u32 %v3010_v13, %v2896_v12  ;;  %v2133_v20 = vunpack.c.l.bf16 %v1954_v16  ;;  %v3001_v24 = vld [vmem:[%s4335_s0 + $0x74] sm:$0xf0]  ;;  %v3011_v30 = vld [vmem:[%s4335_s0 + $0x78] sm:$0xf0] }
  0xbb   : > { %2342 = vmatpush.bf16.msrb.mxu3 %v3015_v59  ;;  %v2134_v21 = vunpack.c.l.bf16 %v1955_v19  ;;  %v2135_v52 = vunpack.c.l.bf16 %v1956_v18  ;;  %v2857_v34 = vor.u32 %v3001_v24, %v2856_v43  ;;  %v2357_v25 = vunpack.c.h.bf16 %v1953_v5  ;;  %v4100_v47 = vld [vmem:[%s3803_s27] ss:$0 sm:$0xff]  ;;  %v4113_v59 = vld [vmem:[%s3830_s9] ss:$0 sm:$0xff] }
  0xbc   : > { %v3003_v60 = vld [vmem:[#allocation2] sm:$0xff]  ;;  %v2358_v28 = vunpack.c.h.bf16 %v1954_v16  ;;  %v2359_v31 = vunpack.c.h.bf16 %v1955_v19  ;;  %v2901_v35 = vor.u32 %v3011_v30, %v2900_v29  ;;  %v2360_v23 = vunpack.c.h.bf16 %v1956_v18  ;;  %v4149_v16 = vld [vmem:[%s3803_s27 + $0x2] ss:$0 sm:$0xff]  ;;  %v4155_v18 = vld [vmem:[%s3803_s27 + $0x3] ss:$0 sm:$0xff] }
  0xbd   : > { %3389 = vst [vmem:[#allocation2] sm:$0xff] %v3308_v57   ;;  %1676 = vmatmul.bf16.gmra.mxu0 %v2769_v55  ;;  %1690 = vadd.xlane.f32.xlu0 %v1684_v58  ;;  %v4110_v58 = vld [vmem:[%s3803_s27 + $0x1] ss:$0 sm:$0xff] }
  0xbe   : > { %2119 = vmatpush.bf16.msrb.mxu2 %v3003_v60 }
  0xbf   : > { %v3002_v1 = vld [vmem:[#allocation2 + $0x30] sm:$0xff] }
  0xc0   : > { %3304 = vst [vmem:[#allocation2 + $0x30] sm:$0xff] %v3303_v61  }
  0xc1   : > { %v3014_v22 = vld [vmem:[#allocation2 + $0x18] sm:$0xff]  ;;  %1692 = vadd.xlane.f32.xlu1 %v1685_v49 }
  0xc2   : > { %1911 = vadd.xlane.f32.xlu2 %v1907_v62  ;;  %2120 = vmatpush.bf16.msrb.mxu2 %v3002_v1  ;;  %v4122_v1 = vld [vmem:[%s591_s30] ss:$0 sm:$0xff] }
  0xc3   : > { %2343 = vmatpush.bf16.msrb.mxu3 %v3014_v22 }
  0xc4   : > { %v3013_v9 = vld [vmem:[#allocation2] sm:$0xff] }
  0xc5   : > { %1913 = vadd.xlane.f32.xlu0 %v1908_v4  ;;  %2121 = vmatmul.bf16.vlgmr.msrb.gmra.mxu2 %v2853_v6 }
  0xc7   : > { %2344 = vmatpush.bf16.msrb.mxu3 %v3013_v9  ;;  %v3012_v0 = vld [vmem:[#allocation2 + $0x30] sm:$0xff] }
  0xc9   : > { %1915 = vadd.xlane.f32.xlu1 %v1909_v44  ;;  %1901 = vmatmul.bf16.gmra.mxu1 %v2813_v51 }
  0xca   : > { %1917 = vadd.xlane.f32.xlu2 %v1910_v63 }
  0xcb   : > { %2345 = vmatpush.bf16.msrb.mxu3 %v3012_v0 }
  0xcd   : > { %2136 = vadd.xlane.f32.xlu0 %v2132_v14 }
  0xce   : > { %2346 = vmatmul.bf16.vlgmr.msrb.gmra.mxu3 %v2897_v15 }
  0xd1   : > { %2138 = vadd.xlane.f32.xlu1 %v2133_v20 }
  0xd2   : > { %2140 = vadd.xlane.f32.xlu2 %v2134_v21 }
  0xd5   : > { %2142 = vadd.xlane.f32.xlu0 %v2135_v52  ;;  %2126 = vmatmul.bf16.gmra.mxu2 %v2857_v34 }
  0xd9   : > { %2361 = vadd.xlane.f32.xlu1 %v2357_v25 }
  0xda   : > { %2363 = vadd.xlane.f32.xlu2 %v2358_v28 }
  0xdd   : > { %2365 = vadd.xlane.f32.xlu0 %v2359_v31 }
  0xde   : > { %2351 = vmatmul.bf16.gmra.mxu3 %v2901_v35 }
  0xe1   : > { %2367 = vadd.xlane.f32.xlu1 %v2360_v23  ;;  %v4171_v23 = vld [vmem:[%s3803_s27 + $0x4] ss:$0 sm:$0xff] }
  0xf0   : > { %v789_v32 = vpop.xlane.xlu0 %788 }
  0xf1   : > { %v804_v15 = vmul.f32 %v4100_v47, %v789_v32 }
  0xf5   : > { %v4085_v50 = vpop.xlane.xlu1 %792 }
  0xf7   : > { %v1012_v38 = vpop.xlane.xlu2 %1011 }
  0xf8   : > { %v1028_v20 = vmul.f32 %v4110_v58, %v1012_v38 }
  0xfc   : > { %v774_v36 = vpop.f32.mrf.mxu0  ;;  %v791_v39 = vpop.xlane.xlu0 %790 }
  0xfd   : > { %v808_v21 = vsub.f32 %v774_v36, %v804_v15  ;;  %v805_v52 = vmul.f32 %v4100_v47, %v791_v39 }
  0xff   : > { %v816_v30 = vmul.f32 %v4113_v59, %v808_v21 }
 0x101   : > { %v795_v40 = vpop.xlane.xlu1 %794 }
 0x102   : > { %v807_v53 = vmul.f32 %v4100_v47, %v795_v40  ;;  %v4176_v40 = vld [vmem:[%s3830_s9 + $0x2] ss:$0 sm:$0xff] }
 0x103   : > { %v1014_v37 = vpop.xlane.xlu2 %1013 }
 0x104   : > { %v4087_v33 = vpop.f32.mrf.mxu0  ;;  %v1029_v36 = vmul.f32 %v4110_v58, %v1014_v37 }
 0x105   : > { %v4089_v11 = vpop.f32.mrf.mxu1  ;;  %v809_v38 = vsub.f32 %v4087_v33, %v805_v52 }
 0x106   : > { %v1032_v31 = vsub.f32 %v4089_v11, %v1028_v20  ;;  %v4184_v11 = vld [vmem:[%s3830_s9 + $0x3] ss:$0 sm:$0xff] }
 0x10b   : > { %v4091_v10 = vpop.xlane.xlu0 %1015 }
 0x10d   : > { %v4095_v45 = vpop.f32.mrf.mxu1 }
 0x10e   : > { %v1018_v41 = vpop.xlane.xlu1 %1017  ;;  %v4093_v42 = vpop.f32.mrf.mxu0 }
 0x10f   : > { %v1031_v60 = vmul.f32 %v4110_v58, %v1018_v41  ;;  %v4179_v41 = vld [vmem:[%s3803_s27 + $0x5] ss:$0 sm:$0xff] }
 0x112   : > { %v1237_v46 = vpop.xlane.xlu2 %1236 }
 0x113   : > { %v1253_v34 = vmul.f32 %v4149_v16, %v1237_v46  ;;  %v820_v46 = vadd.f32 %v4122_v1, %v816_v30 }
 0x114   : > { %v1222_v48 = vpop.f32.mrf.mxu2 }
 0x115   : > { %v1257_v39 = vsub.f32 %v1222_v48, %v1253_v34  ;;  %v817_v48 = vmul.f32 %v4113_v59, %v809_v38 }
 0x116   : > { %v4097_v17 = vpop.xlane.xlu0 %1238  ;;  %v781_v27 = vpop.f32.mrf.mxu0 }
 0x117   : > { %v811_v57 = vsub.f32 %v781_v27, %v807_v53  ;;  %v1041_v27 = vmul.f32 %v4125_v2, %v1032_v31  ;;  %v1254_v33 = vmul.f32 %v4149_v16, %v4097_v17  ;;  %v4201_v17 = vld [vmem:[%s3830_s9 + $0x4] ss:$0 sm:$0xff] }
 0x119   : > { %v819_v61 = vmul.f32 %v4113_v59, %v811_v57 }
 0x11b   : > { %v4102_v26 = vpop.xlane.xlu1 %1240  ;;  %v823_v4 = vadd.f32 %v4122_v1, %v819_v61  ;;  %v1033_v61 = vsub.f32 %v4095_v45, %v1029_v36  ;;  %v806_v36 = vmul.f32 %v4100_v47, %v4085_v50 }
 0x11c   : > { %v4104_v56 = vpop.f32.mrf.mxu1  ;;  %v4135_v44 = vpop.f32.mrf.mxu2 }
 0x11d   : > { %v4107_v54 = vpop.xlane.xlu2 %1242  ;;  %v1258_v45 = vsub.f32 %v4135_v44, %v1254_v33  ;;  %v1042_v34 = vmul.f32 %v4125_v2, %v1033_v61  ;;  %v1030_v33 = vmul.f32 %v4110_v58, %v4091_v10  ;;  %v1255_v61 = vmul.f32 %v4149_v16, %v4102_v26 }
 0x11f   : > { %v1267_v50 = vmul.f32 %v4176_v40, %v1258_v45 }
 0x120   : > { %v1462_v55 = vpop.xlane.xlu0 %1461 }
 0x121   : > { %v1478_v35 = vmul.f32 %v4155_v18, %v1462_v55 }
 0x123   : > { %v1447_v8 = vpop.f32.mrf.mxu3 }
 0x124   : > { %v1464_v49 = vpop.xlane.xlu1 %1463  ;;  %v1004_v62 = vpop.f32.mrf.mxu1  ;;  %v1482_v53 = vsub.f32 %v1447_v8, %v1478_v35  ;;  %v1045_v8 = vadd.f32 %v1041_v27, %v820_v46  ;;  %v4210_v35 = vld [vmem:[%s3830_s9 + $0x5] ss:$0 sm:$0xff] }
 0x125   : > { %v4127_v3 = vpop.xlane.xlu2 %1465  ;;  %v1035_v22 = vsub.f32 %v1004_v62, %v1031_v60  ;;  %v4188_v60 = vld [vmem:[%s3803_s27 + $0x6] ss:$0 sm:$0xff]  ;;  %v1266_v62 = vmul.f32 %v4176_v40, %v1257_v39 }
 0x126   : > { %v1480_v10 = vmul.f32 %v4155_v18, %v4127_v3 }
 0x127   : > { %v1044_v6 = vmul.f32 %v4125_v2, %v1035_v22  ;;  %v1270_v30 = vadd.f32 %v1266_v62, %v1045_v8  ;;  %v1034_v62 = vsub.f32 %v4104_v56, %v1030_v33 }
 0x128   : > { %v4131_v7 = vpop.xlane.xlu0 %1467 }
 0x129   : > { %v4133_v9 = vadd.f32 %v1044_v6, %v823_v4  ;;  %v1479_v4 = vmul.f32 %v4155_v18, %v1464_v49  ;;  %v821_v49 = vadd.f32 %v4122_v1, %v817_v48 }
 0x12a   : > { %v1672_v25 = vpop.f32.mrf.mxu0 }
 0x12b   : > { %v4141_v0 = vpop.f32.mrf.mxu3  ;;  %v1046_v47 = vadd.f32 %v1042_v34, %v821_v49 }
 0x12c   : > { %v1687_v51 = vpop.xlane.xlu1 %1686  ;;  %v1483_v38 = vsub.f32 %v4141_v0, %v1479_v4 }
 0x12d   : > { %v4137_v63 = vpop.xlane.xlu2 %1688  ;;  %v4145_v13 = vpop.f32.mrf.mxu2  ;;  %v1703_v57 = vmul.f32 %v4171_v23, %v1687_v51  ;;  %v1491_v51 = vmul.f32 %v4184_v11, %v1482_v53  ;;  %v1271_v26 = vadd.f32 %v1267_v50, %v1046_v47 }
 0x12e   : > { %v1704_v27 = vmul.f32 %v4171_v23, %v4137_v63  ;;  %v1259_v56 = vsub.f32 %v4145_v13, %v1255_v61 }
 0x12f   : > { %v1707_v15 = vsub.f32 %v1672_v25, %v1703_v57  ;;  %v4213_v25 = vld [vmem:[%s3803_s27 + $0x7] ss:$0 sm:$0xff]  ;;  %v1495_v39 = vadd.f32 %v1491_v51, %v1270_v30  ;;  %v4222_v57 = vld [vmem:[%s3830_s9 + $0x6] ss:$0 sm:$0xff]  ;;  %s2585_s27 = sshll.u32 %s3687_s28, 5 }
 0x130   : > { %v4139_v5 = vpop.xlane.xlu0 %1690 }
 0x131   : > { %v1716_v46 = vmul.f32 %v4201_v17, %v1707_v15  ;;  %v1705_v34 = vmul.f32 %v4171_v23, %v4139_v5 }
 0x132   : > { %v1674_v20 = vpop.f32.mrf.mxu0 }
 0x133   : > { %v1720_v58 = vadd.f32 %v1716_v46, %v1495_v39 }
 0x134   : > { %v4143_v12 = vpop.xlane.xlu1 %1692 }
 0x135   : > { %v1912_v14 = vpop.xlane.xlu2 %1911  ;;  %v4163_v28 = vpop.f32.mrf.mxu2 }
 0x136   : > { %v4159_v24 = vpop.f32.mrf.mxu3  ;;  %v1897_v32 = vpop.f32.mrf.mxu1  ;;  %v1928_v22 = vmul.f32 %v4179_v41, %v1912_v14 }
 0x137   : > { %v1484_v30 = vsub.f32 %v4159_v24, %v1480_v10 }
 0x138   : > { %v4151_v19 = vpop.xlane.xlu0 %1913  ;;  %v1932_v31 = vsub.f32 %v1897_v32, %v1928_v22  ;;  %v1708_v22 = vsub.f32 %v1674_v20, %v1704_v27  ;;  %v1043_v20 = vmul.f32 %v4125_v2, %v1034_v62 }
 0x139   : > { %v1929_v48 = vmul.f32 %v4179_v41, %v4151_v19  ;;  %v4241_v19 = vld [vmem:[%s3830_s9 + $0x7] ss:$0 sm:$0xff]  ;;  %s4266_s9 = scalar_lea.vmem [#allocation6], %s2585_s27 }
 0x13a   : > { %v1941_v0 = vmul.f32 %v4210_v35, %v1932_v31  ;;  %v1677_v31 = vpop.f32.mrf.mxu0  ;;  %s2418_s25 = sshll.u32 %s4266_s9, 4  ;;  %s2419_s25 = int_to_ptr.vmem [resolvable:$true] %s2418_s25 }
 0x13b   : > { %v1709_v47 = vsub.f32 %v1677_v31, %v1705_v34 }
 0x13c   : > { %v4157_v43 = vpop.xlane.xlu1 %1915  ;;  %v1945_v3 = vadd.f32 %v1941_v0, %v1720_v58 }
 0x13d   : > { %v4165_v29 = vpop.xlane.xlu2 %1917  ;;  %v1930_v2 = vmul.f32 %v4179_v41, %v4157_v43  ;;  %v1481_v43 = vmul.f32 %v4155_v18, %v4131_v7  ;;  %v1706_v7 = vmul.f32 %v4171_v23, %v4143_v12 }
 0x13e   : > { %v4197_v6 = vpop.f32.mrf.mxu3  ;;  %v1899_v44 = vpop.f32.mrf.mxu1 }
 0x140   : > { %v2137_v37 = vpop.xlane.xlu0 %2136 }
 0x141   : > { %v2153_v21 = vmul.f32 %v4188_v60, %v2137_v37  ;;  %v810_v37 = vsub.f32 %v4093_v42, %v806_v36  ;;  %v1492_v42 = vmul.f32 %v4184_v11, %v1483_v38 }
 0x143   : > { %v818_v15 = vmul.f32 %v4113_v59, %v810_v37  ;;  %v1717_v59 = vmul.f32 %v4201_v17, %v1708_v22  ;;  %v1493_v37 = vmul.f32 %v4184_v11, %v1484_v30  ;;  %v1718_v22 = vmul.f32 %v4201_v17, %v1709_v47 }
 0x144   : > { %v2139_v55 = vpop.xlane.xlu1 %2138 }
 0x145   : > { %v4205_v14 = vpop.xlane.xlu2 %2140  ;;  %v2154_v4 = vmul.f32 %v4188_v60, %v2139_v55  ;;  %v1496_v55 = vadd.f32 %v1492_v42, %v1271_v26  ;;  %v822_v46 = vadd.f32 %v4122_v1, %v818_v15  ;;  %v1931_v26 = vmul.f32 %v4179_v41, %v4165_v29 }
 0x146   : > { %v1902_v27 = vpop.f32.mrf.mxu1  ;;  %v2155_v1 = vmul.f32 %v4188_v60, %v4205_v14  ;;  %v1485_v14 = vsub.f32 %v4197_v6, %v1481_v43 }
 0x147   : > { %v1047_v33 = vadd.f32 %v1043_v20, %v822_v46  ;;  %v1721_v50 = vadd.f32 %v1717_v59, %v1496_v55  ;;  %v1934_v62 = vsub.f32 %v1902_v27, %v1930_v2 }
 0x148   : > { %v2122_v52 = vpop.f32.mrf.mxu2  ;;  %v4243_v51 = vpop.xlane.xlu0 %2142 }
 0x149   : > { %v2157_v53 = vsub.f32 %v2122_v52, %v2153_v21  ;;  %v1933_v52 = vsub.f32 %v1899_v44, %v1929_v48  ;;  %v1268_v44 = vmul.f32 %v4176_v40, %v1259_v56  ;;  %v1943_v56 = vmul.f32 %v4210_v35, %v1934_v62 }
 0x14a   : > { %v2156_v12 = vmul.f32 %v4188_v60, %v4243_v51 }
 0x14b   : > { %v2166_v8 = vmul.f32 %v4222_v57, %v2157_v53  ;;  %v1942_v5 = vmul.f32 %v4210_v35, %v1933_v52  ;;  %v1272_v48 = vadd.f32 %v1268_v44, %v1047_v33 }
 0x14c   : > { %v2362_v32 = vpop.xlane.xlu1 %2361 }
 0x14d   : > { %v2378_v63 = vmul.f32 %v4213_v25, %v2362_v32  ;;  %v2364_v36 = vpop.xlane.xlu2 %2363  ;;  %v2170_v38 = vadd.f32 %v2166_v8, %v1945_v3  ;;  %v1256_v32 = vmul.f32 %v4149_v16, %v4107_v54  ;;  %v1946_v61 = vadd.f32 %v1942_v5, %v1721_v50 }
 0x14e   : > { %v2379_v24 = vmul.f32 %v4213_v25, %v2364_v36  ;;  %v1497_v42 = vadd.f32 %v1493_v37, %v1272_v48  ;;  %v1904_v3 = vpop.f32.mrf.mxu1 }
 0x14f   : > { %v1260_v54 = vsub.f32 %v4163_v28, %v1256_v32  ;;  %v1679_v28 = vpop.f32.mrf.mxu0  ;;  %v1935_v55 = vsub.f32 %v1904_v3, %v1931_v26 }
 0x150   : > { %v2124_v21 = vpop.f32.mrf.mxu2  ;;  %v2366_v58 = vpop.xlane.xlu0 %2365  ;;  %v1722_v52 = vadd.f32 %v1718_v22, %v1497_v42 }
 0x151   : > { %v2347_v45 = vpop.f32.mrf.mxu3  ;;  %v2158_v13 = vsub.f32 %v2124_v21, %v2154_v4  ;;  %v1269_v18 = vmul.f32 %v4176_v40, %v1260_v54  ;;  %v2380_v21 = vmul.f32 %v4213_v25, %v2366_v58  ;;  %v1944_v60 = vmul.f32 %v4210_v35, %v1935_v55 }
 0x152   : > { %v2382_v49 = vsub.f32 %v2347_v45, %v2378_v63  ;;  %v1494_v45 = vmul.f32 %v4184_v11, %v1485_v14  ;;  %v1947_v41 = vadd.f32 %v1943_v56, %v1722_v52 }
 0x153   : > { %v2167_v0 = vmul.f32 %v4222_v57, %v2158_v13  ;;  %v1273_v23 = vadd.f32 %v1269_v18, %v4133_v9 }
 0x154   : > { %v2391_v39 = vmul.f32 %v4241_v19, %v2382_v49  ;;  %v1710_v49 = vsub.f32 %v1679_v28, %v1706_v7  ;;  %v2368_v30 = vpop.xlane.xlu1 %2367 }
 0x155   : > { %v2171_v4 = vadd.f32 %v2167_v0, %v1946_v61  ;;  %v1498_v11 = vadd.f32 %v1494_v45, %v1273_v23  ;;  %v2381_v9 = vmul.f32 %v4213_v25, %v2368_v30 }
 0x156   : > { %v2395_v53 = vadd.f32 %v2391_v39, %v2170_v38  ;;  %v1719_v31 = vmul.f32 %v4201_v17, %v1710_v49 }
 0x158   : > { %2399 = vst [vmem:[%s4266_s9] sm:$0xff] %v2395_v53  ;;  %v2127_v16 = vpop.f32.mrf.mxu2  ;;  %v1723_v13 = vadd.f32 %v1719_v31, %v1498_v11 }
 0x159   : > { %v2349_v63 = vpop.f32.mrf.mxu3  ;;  %v2159_v8 = vsub.f32 %v2127_v16, %v2155_v1 }
 0x15a   : > { %v2383_v10 = vsub.f32 %v2349_v63, %v2379_v24  ;;  %v1948_v46 = vadd.f32 %v1944_v60, %v1723_v13 }
 0x15b   : > { %v2168_v20 = vmul.f32 %v4222_v57, %v2159_v8 }
 0x15c   : > { %v2392_v15 = vmul.f32 %v4241_v19, %v2383_v10 }
 0x15d   : > { %v2172_v36 = vadd.f32 %v2168_v20, %v1947_v41 }
 0x15e   : > { %v2396_v6 = vadd.f32 %v2392_v15, %v2171_v4 }
 0x160   : > { %2400 = vst [vmem:[%s4266_s9 + $0x8] sm:$0xff] %v2396_v6  ;;  %v2129_v29 = vpop.f32.mrf.mxu2 }
 0x161   : > { %v2352_v40 = vpop.f32.mrf.mxu3  ;;  %v2160_v59 = vsub.f32 %v2129_v29, %v2156_v12 }
 0x162   : > { %v2384_v34 = vsub.f32 %v2352_v40, %v2380_v21 }
 0x163   : > { %v2169_v39 = vmul.f32 %v4222_v57, %v2160_v59 }
 0x164   : > { %v2393_v38 = vmul.f32 %v4241_v19, %v2384_v34 }
 0x165   : > { %v2173_v35 = vadd.f32 %v2169_v39, %v1948_v46 }
 0x166   : > { %v2397_v51 = vadd.f32 %v2393_v38, %v2172_v36 }
 0x168   : > { %2401 = vst [vmem:[%s4266_s9 + $0x10] sm:$0xff] %v2397_v51 }
 0x169   : > { %v2354_v17 = vpop.f32.mrf.mxu3 }
 0x16a   : > { %v2385_v44 = vsub.f32 %v2354_v17, %v2381_v9 }
 0x16c   : > { %v2394_v25 = vmul.f32 %v4241_v19, %v2385_v44 }
 0x16e   : > { %v2398_v27 = vadd.f32 %v2394_v25, %v2173_v35 }
 0x170   : > { %2402 = vst [vmem:[%s4266_s9 + $0x18] sm:$0xff] %v2398_v27 }
 0x171   : > { %3498 = shalt.err (!%p3495_p8)
}
 0x172   : > { %s3551_s28 = smov 128   ;;  %s3552_s9 = smov 256  }
 0x173   : > { %s3553_s10 = smov 8  }
 0x174   : > { %3396 = dma.vmem_to_hbm [thread:$0]  (%p3627_p5), %s2419_s25, 512, %s2421_s21, %s2404_s8, %s3551_s28, %s3552_s9, %s3553_s10  }
 0x175 PF: > { %s2435_s30 = sand.u32 1, %s3529_s18   ;;  %p3399_p11 = pnand %p2576_p10, %p3638_p9 }
 0x176   : > { %s2436_s17 = scalar_lea.sflag [#allocation7], %s2435_s30 }
 0x177   : > { %p3400_p12 = pneg %p3399_p11 }
 0x179   : > { %3524 = dma.done.wait (%p3400_p12), %s2436_s17, 512  }
 0x17a   : > { %3526 = vsyncadd (%p3400_p12), %s2436_s17, 4294966784  ;;  %s18_s23 = sadd.s32 1, %s3549_s23   ;;  %s4344_s18 = smov %s3533_s19 }
 0x17b   : > { %p15_p13 = scmp.ge.s32.totalorder %s18_s23, 4   ;;  %s4345_s19 = smov %s3537_s20 }
 0x17c   : > { %s4346_s20 = smov %s3636_s6  ;;  %s4347_s21 = smov %s3545_s22 }
 0x17d   : > { %s4348_s22 = smov %s4350_s26  ;;  %17 = sbr.rel (!%p15_p13) target bundleno = 4 (0x4), region = 240 }
 0x182   :  { %2442 = vsyncpa [#allocation7], 1 }
 0x183   :  { %2444 = vsyncpa [#allocation7 + $0x1], 1 }

</bundles_post_ra>
